<compile_context>
chip_gen: v7x
topology: tpu7x:2x2x1
jax: 0.10.0
libtpu: 0.0.40
codegen_flags: <defaults>
</compile_context>

<pallas_src>
import functools

import jax
import jax.numpy as jnp
from jax.experimental import pallas as pl
from jax.experimental.pallas import tpu as pltpu


def _default_vmem_limit():
    """Per-generation scoped-VMEM budget: ~75% of physical, clamped to
    [32 MiB, 100 MiB].  v5e/v6e (128 MiB phys) -> 96 MiB, v7x (64 MiB) -> 48 MiB."""
    try:
        cap = int(pltpu.get_tpu_info().vmem_capacity_bytes)
        return int(max(32 << 20, min((cap * 3) // 4, 100 << 20)))
    except Exception:
        return 32 << 20


_VMEM_LIMIT = _default_vmem_limit()
_WDTYPE = jnp.bfloat16  # native MXU input dtype on v5e/v6e/v7x


def _round_up(x, m):
    return ((x + m - 1) // m) * m


def _pick_m_tile(m, block_m):
    """Pick an M tile <= block_m (multiple of 8), preferring >=2 grid steps so
    both v7x TensorCores get work (harmless on single-TC v5e/v6e)."""
    if m <= 8:
        return m, 1
    tm = min(block_m, _round_up(pl.cdiv(m, 2), 8))
    if tm >= m:
        return m, 1
    return tm, pl.cdiv(m, tm)


# ---------------------------------------------------------------------------
# Pallas kernel: y = x_tile @ W + b, optional ReLU  (conv-as-matmul layers)
# ---------------------------------------------------------------------------
def _matmul_bias_kernel(x_ref, w_ref, b_ref, o_ref, *, relu):
    y = jnp.dot(x_ref[...], w_ref[...], preferred_element_type=jnp.float32)
    y = y + b_ref[...]                      # bias/ReLU epilogue in f32
    if relu:
        y = jnp.maximum(y, 0.0)
    o_ref[...] = y.astype(o_ref.dtype)


def pallas_linear(x, w, b2, *, relu=False, block_m=2048, out_dtype=None):
    """x:(M,K) @ w:(K,N) + b2:(1,N) [-> relu], M-tiled, weights VMEM-resident.

    K and N use full-dim blocks (legal per the "(8,128) or full dim" rule).
    Ragged final M tiles are masked by Pallas.
    """
    M, K = x.shape
    Kw, N = w.shape
    assert K == Kw and b2.shape == (1, N)
    out_dtype = out_dtype or x.dtype

    tm, steps = _pick_m_tile(M, block_m)

    return pl.pallas_call(
        functools.partial(_matmul_bias_kernel, relu=relu),
        out_shape=jax.ShapeDtypeStruct((M, N), out_dtype),
        grid=(steps,),
        in_specs=[
            pl.BlockSpec((tm, K), lambda i: (i, 0)),
            pl.BlockSpec((K, N), lambda i: (0, 0)),   # resident across M tiles
            pl.BlockSpec((1, N), lambda i: (0, 0)),   # resident across M tiles
        ],
        out_specs=pl.BlockSpec((tm, N), lambda i: (i, 0)),
        compiler_params=pltpu.CompilerParams(
            dimension_semantics=("parallel",),
            vmem_limit_bytes=_VMEM_LIMIT),
    )(x, w, b2)


# ---------------------------------------------------------------------------
# Pallas kernel: fused head
#   fc1 -> relu -> fc2 -> relu -> {actor1 -> relu -> actor2,
#                                  relu(extra)+feat -> critic_ext / critic_int}
# Outputs packed into a single (tm, output_size + 2) tile:
#   [:, :output_size] = policy, [:, -2] = value_ext, [:, -1] = value_int
# ---------------------------------------------------------------------------
def _head_kernel(x_ref,
                 fc1_w_ref, fc1_b_ref, fc2_w_ref, fc2_b_ref,
                 a1_w_ref, a1_b_ref, a2_w_ref, a2_b_ref,
                 ex_w_ref, ex_b_ref,
                 ce_w_ref, ce_b_ref, ci_w_ref, ci_b_ref,
                 out_ref, *, output_size):
    def dense(x, w_ref, b_ref, relu):
        y = jnp.dot(x.astype(_WDTYPE), w_ref[...],
                    preferred_element_type=jnp.float32)
        y = y + b_ref[...]
        return jnp.maximum(y, 0.0) if relu else y

    h = dense(x_ref[...], fc1_w_ref, fc1_b_ref, True)         # (tm, 256)
    feat = dense(h, fc2_w_ref, fc2_b_ref, True)                # (tm, 448)

    a1 = dense(feat, a1_w_ref, a1_b_ref, True)                 # (tm, 448)
    policy = dense(a1, a2_w_ref, a2_b_ref, False)              # (tm, out)

    h2 = dense(feat, ex_w_ref, ex_b_ref, True) + feat          # relu(extra)+x
    v_ext = dense(h2, ce_w_ref, ce_b_ref, False)               # (tm, 1)
    v_int = dense(h2, ci_w_ref, ci_b_ref, False)               # (tm, 1)

    out_ref[:, :output_size] = policy.astype(out_ref.dtype)
    out_ref[:, output_size:output_size + 1] = v_ext.astype(out_ref.dtype)
    out_ref[:, output_size + 1:output_size + 2] = v_int.astype(out_ref.dtype)


_HEAD_PARAM_NAMES = (
    "fc1_w", "fc1_b", "fc2_w", "fc2_b",
    "actor1_w", "actor1_b", "actor2_w", "actor2_b",
    "extra_w", "extra_b",
    "cext_w", "cext_b", "cint_w", "cint_b",
)


def pallas_head(flat, params, output_size, *, block_m=1024):
    """Fused head: one pallas_call, weights VMEM-resident, B-rows tiled,
    packed single output (B, output_size + 2)."""
    B, K = flat.shape
    tm, steps = _pick_m_tile(B, block_m)

    weights = [params[n] for n in _HEAD_PARAM_NAMES]

    in_specs = [pl.BlockSpec((tm, K), lambda i: (i, 0))]
    for wgt in weights:
        in_specs.append(pl.BlockSpec(wgt.shape, lambda i: (0, 0)))

    n_out = output_size + 2
    return pl.pallas_call(
        functools.partial(_head_kernel, output_size=output_size),
        out_shape=jax.ShapeDtypeStruct((B, n_out), jnp.float32),
        grid=(steps,),
        in_specs=in_specs,
        out_specs=pl.BlockSpec((tm, n_out), lambda i: (i, 0)),
        compiler_params=pltpu.CompilerParams(
            dimension_semantics=("parallel",),
            vmem_limit_bytes=_VMEM_LIMIT),
    )(flat, *weights)


# ---------------------------------------------------------------------------
# im2col glue: NHWC -> (B*OH*OW, C*KH*KW), columns in PyTorch (C, KH, KW) order
# (executed in XLA, bf16 -> half the patch-matrix HBM traffic)
# ---------------------------------------------------------------------------
def _im2col(x, kh, kw, stride):
    B, H, W, C = x.shape
    oh = (H - kh) // stride + 1
    ow = (W - kw) // stride + 1
    cols = []
    for i in range(kh):
        for j in range(kw):
            cols.append(
                x[:, i:i + stride * (oh - 1) + 1:stride,
                     j:j + stride * (ow - 1) + 1:stride, :])  # (B,oh,ow,C)
    p = jnp.stack(cols, axis=-1)                 # (B, oh, ow, C, kh*kw)
    p = p.reshape(B, oh, ow, C * kh * kw)        # flatten order = (C, kh, kw)
    return p.reshape(B * oh * ow, C * kh * kw), oh, ow


def _conv2d(x_nhwc, w2d_T, b2, kh, kw, stride):
    """Conv via im2col + Pallas matmul. w2d_T: (IC*KH*KW, OC) bf16, b2: (1, OC) f32."""
    B = x_nhwc.shape[0]
    patches, oh, ow = _im2col(x_nhwc, kh, kw, stride)
    y = pallas_linear(patches, w2d_T, b2, relu=True, out_dtype=_WDTYPE)
    return y.reshape(B, oh, ow, w2d_T.shape[1])


# ---------------------------------------------------------------------------
# Parameter init (orthogonal with the module's gains, zero bias).
# Weights stored pre-transposed (K, N) in bf16; biases (1, N) in f32; fc1 rows
# pre-permuted so a direct NHWC flatten matches PyTorch's NCHW Flatten.
# ---------------------------------------------------------------------------
def init_params(key, output_size):
    ks = jax.random.split(key, 10)
    ortho = lambda k, shape, gain: jax.nn.initializers.orthogonal(gain)(
        k, shape, jnp.float32)
    g2 = float(jnp.sqrt(2.0))
    p = {}

    # conv weights: (OC, IC*KH*KW) orthogonal -> stored transposed (IC*KH*KW, OC)
    p["conv1_w"] = ortho(ks[0], (32, 4 * 8 * 8), g2).T.astype(_WDTYPE)
    p["conv1_b"] = jnp.zeros((1, 32), jnp.float32)
    p["conv2_w"] = ortho(ks[1], (64, 32 * 4 * 4), g2).T.astype(_WDTYPE)
    p["conv2_b"] = jnp.zeros((1, 64), jnp.float32)
    p["conv3_w"] = ortho(ks[2], (64, 64 * 3 * 3), g2).T.astype(_WDTYPE)
    p["conv3_b"] = jnp.zeros((1, 64), jnp.float32)

    # fc1: generated in PyTorch (C,H,W)-flatten column order, then columns
    # permuted to (H,W,C) order so the forward can flatten NHWC directly.
    fc1_pt = ortho(ks[3], (256, 7 * 7 * 64), g2)          # cols: c*49 + h*7 + w
    idx = jnp.arange(7 * 7 * 64)
    hh = idx // (7 * 64)
    rem = idx % (7 * 64)
    ww = rem // 64
    cc = rem % 64
    perm = cc * 49 + hh * 7 + ww                          # NHWC idx -> PT col
    p["fc1_w"] = fc1_pt[:, perm].T.astype(_WDTYPE)        # (3136, 256)
    p["fc1_b"] = jnp.zeros((1, 256), jnp.float32)

    p["fc2_w"] = ortho(ks[4], (448, 256), g2).T.astype(_WDTYPE)
    p["fc2_b"] = jnp.zeros((1, 448), jnp.float32)
    p["actor1_w"] = ortho(ks[5], (448, 448), 0.01).T.astype(_WDTYPE)
    p["actor1_b"] = jnp.zeros((1, 448), jnp.float32)
    p["actor2_w"] = ortho(ks[6], (output_size, 448), 0.01).T.astype(_WDTYPE)
    p["actor2_b"] = jnp.zeros((1, output_size), jnp.float32)
    p["extra_w"] = ortho(ks[7], (448, 448), 0.1).T.astype(_WDTYPE)
    p["extra_b"] = jnp.zeros((1, 448), jnp.float32)
    p["cext_w"] = ortho(ks[8], (1, 448), 0.01).T.astype(_WDTYPE)
    p["cext_b"] = jnp.zeros((1, 1), jnp.float32)
    p["cint_w"] = ortho(ks[9], (1, 448), 0.01).T.astype(_WDTYPE)
    p["cint_b"] = jnp.zeros((1, 1), jnp.float32)
    return p


# ---------------------------------------------------------------------------
# Forward pass
# ---------------------------------------------------------------------------
def forward(params, state_nchw):
    # state: (B, 4, 84, 84) float32, NCHW like PyTorch
    B = state_nchw.shape[0]
    # One tiny layout op: cast to bf16 and go NHWC (fuses in XLA).
    x = jnp.transpose(state_nchw.astype(_WDTYPE), (0, 2, 3, 1))

    x = _conv2d(x, params["conv1_w"], params["conv1_b"], 8, 8, 4)  # (B,20,20,32)
    x = _conv2d(x, params["conv2_w"], params["conv2_b"], 4, 4, 2)  # (B, 9, 9,64)
    x = _conv2d(x, params["conv3_w"], params["conv3_b"], 3, 3, 1)  # (B, 7, 7,64)

    # Direct NHWC flatten; PyTorch's (C,H,W) order is baked into fc1_w rows.
    flat = x.reshape(B, 7 * 7 * 64)

    output_size = params["actor2_w"].shape[1]
    packed = pallas_head(flat, params, output_size)                # (B, out+2)
    policy = packed[:, :output_size]
    value_ext = packed[:, output_size:output_size + 1]
    value_int = packed[:, output_size + 1:output_size + 2]
    return policy, value_ext, value_int


if __name__ == "__main__":
    output_size = 6
    batch = 2

    key = jax.random.PRNGKey(0)
    pkey, xkey = jax.random.split(key)
    params = init_params(pkey, output_size)

    # 84x84x4 input is what the module's Linear(7*7*64) implies.
    state = jax.random.normal(xkey, (batch, 4, 84, 84), dtype=jnp.float32)

    policy, value_ext, value_int = jax.jit(forward)(params, state)
    jax.block_until_ready((policy, value_ext, value_int))

    assert policy.shape == (batch, output_size)
    assert value_ext.shape == (batch, 1)
    assert value_int.shape == (batch, 1)
    assert bool(jnp.all(jnp.isfinite(policy)))
    assert bool(jnp.all(jnp.isfinite(value_ext)))
    assert bool(jnp.all(jnp.isfinite(value_int)))
    print("KERNEL_OK")
</pallas_src>

<mosaic_0001>
module attributes {stable_mosaic.version = 11 : i64} {
  func.func @_matmul_bias_kernel(%arg0: i32, %arg1: memref<400x256xbf16, #tpu.memory_space<vmem>>, %arg2: memref<256x32xbf16, #tpu.memory_space<vmem>>, %arg3: memref<1x32xf32, #tpu.memory_space<vmem>>, %arg4: memref<400x32xbf16, #tpu.memory_space<vmem>>) attributes {dimension_semantics = [#tpu.dimension_semantics<parallel>], iteration_bounds = array<i64: 2>, scalar_prefetch = 0 : i64, scratch_operands = 0 : i64, tpu.core_type = #tpu.core_type<tc>, window_params = [{transform_indices = @transform_0, window_bounds = array<i64: 400, 256>}, {pipeline_mode = #tpu.pipeline_mode<synchronous>, transform_indices = @transform_1, window_bounds = array<i64: 256, 32>}, {pipeline_mode = #tpu.pipeline_mode<synchronous>, transform_indices = @transform_2, window_bounds = array<i64: 1, 32>}, {transform_indices = @transform_3, window_bounds = array<i64: 400, 32>}]} {
    %c0 = arith.constant 0 : index
    %c0_0 = arith.constant 0 : index
    %0 = vector.load %arg1[%c0, %c0_0] : memref<400x256xbf16, #tpu.memory_space<vmem>>, vector<400x256xbf16>
    %c0_1 = arith.constant 0 : index
    %c0_2 = arith.constant 0 : index
    %1 = vector.load %arg2[%c0_1, %c0_2] : memref<256x32xbf16, #tpu.memory_space<vmem>>, vector<256x32xbf16>
    %cst = arith.constant dense<0.000000e+00> : vector<400x32xf32>
    %2 = tpu.matmul %0, %1, %cst {dimension_numbers = #tpu.dot_dimension_numbers<[1], [0], [0], [1], [0, 0, 1, 1], [], []>} : vector<400x256xbf16>, vector<256x32xbf16>, vector<400x32xf32> -> vector<400x32xf32>
    %c0_3 = arith.constant 0 : index
    %c0_4 = arith.constant 0 : index
    %3 = vector.load %arg3[%c0_3, %c0_4] : memref<1x32xf32, #tpu.memory_space<vmem>>, vector<1x32xf32>
    %4 = vector.broadcast %3 : vector<1x32xf32> to vector<400x32xf32>
    %5 = arith.addf %2, %4 : vector<400x32xf32>
    %cst_5 = arith.constant 0.000000e+00 : f32
    %6 = vector.broadcast %cst_5 : f32 to vector<400x32xf32>
    %7 = arith.maximumf %5, %6 : vector<400x32xf32>
    %8 = arith.truncf %7 : vector<400x32xf32> to vector<400x32xbf16>
    %c0_6 = arith.constant 0 : index
    %c0_7 = arith.constant 0 : index
    %9 = vector.load %arg4[%c0_6, %c0_7] : memref<400x32xbf16, #tpu.memory_space<vmem>>, vector<400x32xbf16>
    tpu.vector_store %arg4[%c0_6, %c0_7], %8 {strides = array<i32>} : memref<400x32xbf16, #tpu.memory_space<vmem>>, vector<400x32xbf16>,
    return
  }
  func.func @transform_0(%arg0: i32) -> (i32, i32) {
    %c0_i32 = arith.constant 0 : i32
    %c0_i32_0 = arith.constant 0 : i32
    return %arg0, %c0_i32 : i32, i32
  }
  func.func @transform_1(%arg0: i32) -> (i32, i32) {
    %c0_i32 = arith.constant 0 : i32
    %c0_i32_0 = arith.constant 0 : i32
    %c0_i32_1 = arith.constant 0 : i32
    return %c0_i32, %c0_i32_0 : i32, i32
  }
  func.func @transform_2(%arg0: i32) -> (i32, i32) {
    %c0_i32 = arith.constant 0 : i32
    %c0_i32_0 = arith.constant 0 : i32
    %c0_i32_1 = arith.constant 0 : i32
    return %c0_i32, %c0_i32_0 : i32, i32
  }
  func.func @transform_3(%arg0: i32) -> (i32, i32) {
    %c0_i32 = arith.constant 0 : i32
    %c0_i32_0 = arith.constant 0 : i32
    return %arg0, %c0_i32 : i32, i32
  }
}

module attributes {stable_mosaic.version = 11 : i64} {
  func.func @_matmul_bias_kernel(%arg0: i32, %arg1: memref<88x512xbf16, #tpu.memory_space<vmem>>, %arg2: memref<512x64xbf16, #tpu.memory_space<vmem>>, %arg3: memref<1x64xf32, #tpu.memory_space<vmem>>, %arg4: memref<88x64xbf16, #tpu.memory_space<vmem>>) attributes {dimension_semantics = [#tpu.dimension_semantics<parallel>], iteration_bounds = array<i64: 2>, scalar_prefetch = 0 : i64, scratch_operands = 0 : i64, tpu.core_type = #tpu.core_type<tc>, window_params = [{transform_indices = @transform_0, window_bounds = array<i64: 88, 512>}, {pipeline_mode = #tpu.pipeline_mode<synchronous>, transform_indices = @transform_1, window_bounds = array<i64: 512, 64>}, {pipeline_mode = #tpu.pipeline_mode<synchronous>, transform_indices = @transform_2, window_bounds = array<i64: 1, 64>}, {transform_indices = @transform_3, window_bounds = array<i64: 88, 64>}]} {
    %c0 = arith.constant 0 : index
    %c0_0 = arith.constant 0 : index
    %0 = vector.load %arg1[%c0, %c0_0] : memref<88x512xbf16, #tpu.memory_space<vmem>>, vector<88x512xbf16>
    %c0_1 = arith.constant 0 : index
    %c0_2 = arith.constant 0 : index
    %1 = vector.load %arg2[%c0_1, %c0_2] : memref<512x64xbf16, #tpu.memory_space<vmem>>, vector<512x64xbf16>
    %cst = arith.constant dense<0.000000e+00> : vector<88x64xf32>
    %2 = tpu.matmul %0, %1, %cst {dimension_numbers = #tpu.dot_dimension_numbers<[1], [0], [0], [1], [0, 0, 1, 1], [], []>} : vector<88x512xbf16>, vector<512x64xbf16>, vector<88x64xf32> -> vector<88x64xf32>
    %c0_3 = arith.constant 0 : index
    %c0_4 = arith.constant 0 : index
    %3 = vector.load %arg3[%c0_3, %c0_4] : memref<1x64xf32, #tpu.memory_space<vmem>>, vector<1x64xf32>
    %4 = vector.broadcast %3 : vector<1x64xf32> to vector<88x64xf32>
    %5 = arith.addf %2, %4 : vector<88x64xf32>
    %cst_5 = arith.constant 0.000000e+00 : f32
    %6 = vector.broadcast %cst_5 : f32 to vector<88x64xf32>
    %7 = arith.maximumf %5, %6 : vector<88x64xf32>
    %8 = arith.truncf %7 : vector<88x64xf32> to vector<88x64xbf16>
    %c0_6 = arith.constant 0 : index
    %c0_7 = arith.constant 0 : index
    %9 = vector.load %arg4[%c0_6, %c0_7] : memref<88x64xbf16, #tpu.memory_space<vmem>>, vector<88x64xbf16>
    tpu.vector_store %arg4[%c0_6, %c0_7], %8 {strides = array<i32>} : memref<88x64xbf16, #tpu.memory_space<vmem>>, vector<88x64xbf16>,
    return
  }
  func.func @transform_0(%arg0: i32) -> (i32, i32) {
    %c0_i32 = arith.constant 0 : i32
    %c0_i32_0 = arith.constant 0 : i32
    return %arg0, %c0_i32 : i32, i32
  }
  func.func @transform_1(%arg0: i32) -> (i32, i32) {
    %c0_i32 = arith.constant 0 : i32
    %c0_i32_0 = arith.constant 0 : i32
    %c0_i32_1 = arith.constant 0 : i32
    return %c0_i32, %c0_i32_0 : i32, i32
  }
  func.func @transform_2(%arg0: i32) -> (i32, i32) {
    %c0_i32 = arith.constant 0 : i32
    %c0_i32_0 = arith.constant 0 : i32
    %c0_i32_1 = arith.constant 0 : i32
    return %c0_i32, %c0_i32_0 : i32, i32
  }
  func.func @transform_3(%arg0: i32) -> (i32, i32) {
    %c0_i32 = arith.constant 0 : i32
    %c0_i32_0 = arith.constant 0 : i32
    return %arg0, %c0_i32 : i32, i32
  }
}

module attributes {stable_mosaic.version = 11 : i64} {
  func.func @_matmul_bias_kernel(%arg0: i32, %arg1: memref<56x576xbf16, #tpu.memory_space<vmem>>, %arg2: memref<576x64xbf16, #tpu.memory_space<vmem>>, %arg3: memref<1x64xf32, #tpu.memory_space<vmem>>, %arg4: memref<56x64xbf16, #tpu.memory_space<vmem>>) attributes {dimension_semantics = [#tpu.dimension_semantics<parallel>], iteration_bounds = array<i64: 2>, scalar_prefetch = 0 : i64, scratch_operands = 0 : i64, tpu.core_type = #tpu.core_type<tc>, window_params = [{transform_indices = @transform_0, window_bounds = array<i64: 56, 576>}, {pipeline_mode = #tpu.pipeline_mode<synchronous>, transform_indices = @transform_1, window_bounds = array<i64: 576, 64>}, {pipeline_mode = #tpu.pipeline_mode<synchronous>, transform_indices = @transform_2, window_bounds = array<i64: 1, 64>}, {transform_indices = @transform_3, window_bounds = array<i64: 56, 64>}]} {
    %c0 = arith.constant 0 : index
    %c0_0 = arith.constant 0 : index
    %0 = vector.load %arg1[%c0, %c0_0] : memref<56x576xbf16, #tpu.memory_space<vmem>>, vector<56x576xbf16>
    %c0_1 = arith.constant 0 : index
    %c0_2 = arith.constant 0 : index
    %1 = vector.load %arg2[%c0_1, %c0_2] : memref<576x64xbf16, #tpu.memory_space<vmem>>, vector<576x64xbf16>
    %cst = arith.constant dense<0.000000e+00> : vector<56x64xf32>
    %2 = tpu.matmul %0, %1, %cst {dimension_numbers = #tpu.dot_dimension_numbers<[1], [0], [0], [1], [0, 0, 1, 1], [], []>} : vector<56x576xbf16>, vector<576x64xbf16>, vector<56x64xf32> -> vector<56x64xf32>
    %c0_3 = arith.constant 0 : index
    %c0_4 = arith.constant 0 : index
    %3 = vector.load %arg3[%c0_3, %c0_4] : memref<1x64xf32, #tpu.memory_space<vmem>>, vector<1x64xf32>
    %4 = vector.broadcast %3 : vector<1x64xf32> to vector<56x64xf32>
    %5 = arith.addf %2, %4 : vector<56x64xf32>
    %cst_5 = arith.constant 0.000000e+00 : f32
    %6 = vector.broadcast %cst_5 : f32 to vector<56x64xf32>
    %7 = arith.maximumf %5, %6 : vector<56x64xf32>
    %8 = arith.truncf %7 : vector<56x64xf32> to vector<56x64xbf16>
    %c0_6 = arith.constant 0 : index
    %c0_7 = arith.constant 0 : index
    %9 = vector.load %arg4[%c0_6, %c0_7] : memref<56x64xbf16, #tpu.memory_space<vmem>>, vector<56x64xbf16>
    tpu.vector_store %arg4[%c0_6, %c0_7], %8 {strides = array<i32>} : memref<56x64xbf16, #tpu.memory_space<vmem>>, vector<56x64xbf16>,
    return
  }
  func.func @transform_0(%arg0: i32) -> (i32, i32) {
    %c0_i32 = arith.constant 0 : i32
    %c0_i32_0 = arith.constant 0 : i32
    return %arg0, %c0_i32 : i32, i32
  }
  func.func @transform_1(%arg0: i32) -> (i32, i32) {
    %c0_i32 = arith.constant 0 : i32
    %c0_i32_0 = arith.constant 0 : i32
    %c0_i32_1 = arith.constant 0 : i32
    return %c0_i32, %c0_i32_0 : i32, i32
  }
  func.func @transform_2(%arg0: i32) -> (i32, i32) {
    %c0_i32 = arith.constant 0 : i32
    %c0_i32_0 = arith.constant 0 : i32
    %c0_i32_1 = arith.constant 0 : i32
    return %c0_i32, %c0_i32_0 : i32, i32
  }
  func.func @transform_3(%arg0: i32) -> (i32, i32) {
    %c0_i32 = arith.constant 0 : i32
    %c0_i32_0 = arith.constant 0 : i32
    return %arg0, %c0_i32 : i32, i32
  }
}

module attributes {stable_mosaic.version = 11 : i64} {
  func.func @_head_kernel(%arg0: i32, %arg1: memref<2x3136xbf16, #tpu.memory_space<vmem>>, %arg2: memref<3136x256xbf16, #tpu.memory_space<vmem>>, %arg3: memref<1x256xf32, #tpu.memory_space<vmem>>, %arg4: memref<256x448xbf16, #tpu.memory_space<vmem>>, %arg5: memref<1x448xf32, #tpu.memory_space<vmem>>, %arg6: memref<448x448xbf16, #tpu.memory_space<vmem>>, %arg7: memref<1x448xf32, #tpu.memory_space<vmem>>, %arg8: memref<448x6xbf16, #tpu.memory_space<vmem>>, %arg9: memref<1x6xf32, #tpu.memory_space<vmem>>, %arg10: memref<448x448xbf16, #tpu.memory_space<vmem>>, %arg11: memref<1x448xf32, #tpu.memory_space<vmem>>, %arg12: memref<448x1xbf16, #tpu.memory_space<vmem>>, %arg13: memref<1x1xf32, #tpu.memory_space<vmem>>, %arg14: memref<448x1xbf16, #tpu.memory_space<vmem>>, %arg15: memref<1x1xf32, #tpu.memory_space<vmem>>, %arg16: memref<2x8xf32, #tpu.memory_space<vmem>>) attributes {dimension_semantics = [#tpu.dimension_semantics<parallel>], iteration_bounds = array<i64: 1>, scalar_prefetch = 0 : i64, scratch_operands = 0 : i64, tpu.core_type = #tpu.core_type<tc>, window_params = [{transform_indices = @transform_0, window_bounds = array<i64: 2, 3136>}, {pipeline_mode = #tpu.pipeline_mode<synchronous>, transform_indices = @transform_1, window_bounds = array<i64: 3136, 256>}, {pipeline_mode = #tpu.pipeline_mode<synchronous>, transform_indices = @transform_2, window_bounds = array<i64: 1, 256>}, {pipeline_mode = #tpu.pipeline_mode<synchronous>, transform_indices = @transform_3, window_bounds = array<i64: 256, 448>}, {pipeline_mode = #tpu.pipeline_mode<synchronous>, transform_indices = @transform_4, window_bounds = array<i64: 1, 448>}, {pipeline_mode = #tpu.pipeline_mode<synchronous>, transform_indices = @transform_5, window_bounds = array<i64: 448, 448>}, {pipeline_mode = #tpu.pipeline_mode<synchronous>, transform_indices = @transform_6, window_bounds = array<i64: 1, 448>}, {pipeline_mode = #tpu.pipeline_mode<synchronous>, transform_indices = @transform_7, window_bounds = array<i64: 448, 6>}, {pipeline_mode = #tpu.pipeline_mode<synchronous>, transform_indices = @transform_8, window_bounds = array<i64: 1, 6>}, {pipeline_mode = #tpu.pipeline_mode<synchronous>, transform_indices = @transform_9, window_bounds = array<i64: 448, 448>}, {pipeline_mode = #tpu.pipeline_mode<synchronous>, transform_indices = @transform_10, window_bounds = array<i64: 1, 448>}, {pipeline_mode = #tpu.pipeline_mode<synchronous>, transform_indices = @transform_11, window_bounds = array<i64: 448, 1>}, {pipeline_mode = #tpu.pipeline_mode<synchronous>, transform_indices = @transform_12, window_bounds = array<i64: 1, 1>}, {pipeline_mode = #tpu.pipeline_mode<synchronous>, transform_indices = @transform_13, window_bounds = array<i64: 448, 1>}, {pipeline_mode = #tpu.pipeline_mode<synchronous>, transform_indices = @transform_14, window_bounds = array<i64: 1, 1>}, {transform_indices = @transform_15, window_bounds = array<i64: 2, 8>}]} {
    %c0 = arith.constant 0 : index
    %c0_0 = arith.constant 0 : index
    %0 = vector.load %arg1[%c0, %c0_0] : memref<2x3136xbf16, #tpu.memory_space<vmem>>, vector<2x3136xbf16>
    %c0_1 = arith.constant 0 : index
    %c0_2 = arith.constant 0 : index
    %1 = vector.load %arg2[%c0_1, %c0_2] : memref<3136x256xbf16, #tpu.memory_space<vmem>>, vector<3136x256xbf16>
    %cst = arith.constant dense<0.000000e+00> : vector<2x256xf32>
    %2 = tpu.matmul %0, %1, %cst {dimension_numbers = #tpu.dot_dimension_numbers<[1], [0], [0], [1], [0, 0, 1, 1], [], []>} : vector<2x3136xbf16>, vector<3136x256xbf16>, vector<2x256xf32> -> vector<2x256xf32>
    %c0_3 = arith.constant 0 : index
    %c0_4 = arith.constant 0 : index
    %3 = vector.load %arg3[%c0_3, %c0_4] : memref<1x256xf32, #tpu.memory_space<vmem>>, vector<1x256xf32>
    %4 = vector.broadcast %3 : vector<1x256xf32> to vector<2x256xf32>
    %5 = arith.addf %2, %4 : vector<2x256xf32>
    %cst_5 = arith.constant 0.000000e+00 : f32
    %6 = vector.broadcast %cst_5 : f32 to vector<2x256xf32>
    %7 = arith.maximumf %5, %6 : vector<2x256xf32>
    %8 = arith.truncf %7 : vector<2x256xf32> to vector<2x256xbf16>
    %c0_6 = arith.constant 0 : index
    %c0_7 = arith.constant 0 : index
    %9 = vector.load %arg4[%c0_6, %c0_7] : memref<256x448xbf16, #tpu.memory_space<vmem>>, vector<256x448xbf16>
    %cst_8 = arith.constant dense<0.000000e+00> : vector<2x448xf32>
    %10 = tpu.matmul %8, %9, %cst_8 {dimension_numbers = #tpu.dot_dimension_numbers<[1], [0], [0], [1], [0, 0, 1, 1], [], []>} : vector<2x256xbf16>, vector<256x448xbf16>, vector<2x448xf32> -> vector<2x448xf32>
    %c0_9 = arith.constant 0 : index
    %c0_10 = arith.constant 0 : index
    %11 = vector.load %arg5[%c0_9, %c0_10] : memref<1x448xf32, #tpu.memory_space<vmem>>, vector<1x448xf32>
    %12 = vector.broadcast %11 : vector<1x448xf32> to vector<2x448xf32>
    %13 = arith.addf %10, %12 : vector<2x448xf32>
    %cst_11 = arith.constant 0.000000e+00 : f32
    %14 = vector.broadcast %cst_11 : f32 to vector<2x448xf32>
    %15 = arith.maximumf %13, %14 : vector<2x448xf32>
    %16 = arith.truncf %15 : vector<2x448xf32> to vector<2x448xbf16>
    %c0_12 = arith.constant 0 : index
    %c0_13 = arith.constant 0 : index
    %17 = vector.load %arg6[%c0_12, %c0_13] : memref<448x448xbf16, #tpu.memory_space<vmem>>, vector<448x448xbf16>
    %cst_14 = arith.constant dense<0.000000e+00> : vector<2x448xf32>
    %18 = tpu.matmul %16, %17, %cst_14 {dimension_numbers = #tpu.dot_dimension_numbers<[1], [0], [0], [1], [0, 0, 1, 1], [], []>} : vector<2x448xbf16>, vector<448x448xbf16>, vector<2x448xf32> -> vector<2x448xf32>
    %c0_15 = arith.constant 0 : index
    %c0_16 = arith.constant 0 : index
    %19 = vector.load %arg7[%c0_15, %c0_16] : memref<1x448xf32, #tpu.memory_space<vmem>>, vector<1x448xf32>
    %20 = vector.broadcast %19 : vector<1x448xf32> to vector<2x448xf32>
    %21 = arith.addf %18, %20 : vector<2x448xf32>
    %cst_17 = arith.constant 0.000000e+00 : f32
    %22 = vector.broadcast %cst_17 : f32 to vector<2x448xf32>
    %23 = arith.maximumf %21, %22 : vector<2x448xf32>
    %24 = arith.truncf %23 : vector<2x448xf32> to vector<2x448xbf16>
    %c0_18 = arith.constant 0 : index
    %c0_19 = arith.constant 0 : index
    %25 = vector.load %arg8[%c0_18, %c0_19] : memref<448x6xbf16, #tpu.memory_space<vmem>>, vector<448x6xbf16>
    %cst_20 = arith.constant dense<0.000000e+00> : vector<2x6xf32>
    %26 = tpu.matmul %24, %25, %cst_20 {dimension_numbers = #tpu.dot_dimension_numbers<[1], [0], [0], [1], [0, 0, 1, 1], [], []>} : vector<2x448xbf16>, vector<448x6xbf16>, vector<2x6xf32> -> vector<2x6xf32>
    %c0_21 = arith.constant 0 : index
    %c0_22 = arith.constant 0 : index
    %27 = vector.load %arg9[%c0_21, %c0_22] : memref<1x6xf32, #tpu.memory_space<vmem>>, vector<1x6xf32>
    %28 = vector.broadcast %27 : vector<1x6xf32> to vector<2x6xf32>
    %29 = arith.addf %26, %28 : vector<2x6xf32>
    %30 = arith.truncf %15 : vector<2x448xf32> to vector<2x448xbf16>
    %c0_23 = arith.constant 0 : index
    %c0_24 = arith.constant 0 : index
    %31 = vector.load %arg10[%c0_23, %c0_24] : memref<448x448xbf16, #tpu.memory_space<vmem>>, vector<448x448xbf16>
    %cst_25 = arith.constant dense<0.000000e+00> : vector<2x448xf32>
    %32 = tpu.matmul %30, %31, %cst_25 {dimension_numbers = #tpu.dot_dimension_numbers<[1], [0], [0], [1], [0, 0, 1, 1], [], []>} : vector<2x448xbf16>, vector<448x448xbf16>, vector<2x448xf32> -> vector<2x448xf32>
    %c0_26 = arith.constant 0 : index
    %c0_27 = arith.constant 0 : index
    %33 = vector.load %arg11[%c0_26, %c0_27] : memref<1x448xf32, #tpu.memory_space<vmem>>, vector<1x448xf32>
    %34 = vector.broadcast %33 : vector<1x448xf32> to vector<2x448xf32>
    %35 = arith.addf %32, %34 : vector<2x448xf32>
    %cst_28 = arith.constant 0.000000e+00 : f32
    %36 = vector.broadcast %cst_28 : f32 to vector<2x448xf32>
    %37 = arith.maximumf %35, %36 : vector<2x448xf32>
    %38 = arith.addf %37, %15 : vector<2x448xf32>
    %39 = arith.truncf %38 : vector<2x448xf32> to vector<2x448xbf16>
    %c0_29 = arith.constant 0 : index
    %c0_30 = arith.constant 0 : index
    %40 = vector.load %arg12[%c0_29, %c0_30] : memref<448x1xbf16, #tpu.memory_space<vmem>>, vector<448x1xbf16>
    %cst_31 = arith.constant dense<0.000000e+00> : vector<2x1xf32>
    %41 = tpu.matmul %39, %40, %cst_31 {dimension_numbers = #tpu.dot_dimension_numbers<[1], [0], [0], [1], [0, 0, 1, 1], [], []>} : vector<2x448xbf16>, vector<448x1xbf16>, vector<2x1xf32> -> vector<2x1xf32>
    %c0_32 = arith.constant 0 : index
    %c0_33 = arith.constant 0 : index
    %42 = vector.load %arg13[%c0_32, %c0_33] : memref<1x1xf32, #tpu.memory_space<vmem>>, vector<1x1xf32>
    %43 = vector.broadcast %42 : vector<1x1xf32> to vector<2x1xf32>
    %44 = arith.addf %41, %43 : vector<2x1xf32>
    %45 = arith.truncf %38 : vector<2x448xf32> to vector<2x448xbf16>
    %c0_34 = arith.constant 0 : index
    %c0_35 = arith.constant 0 : index
    %46 = vector.load %arg14[%c0_34, %c0_35] : memref<448x1xbf16, #tpu.memory_space<vmem>>, vector<448x1xbf16>
    %cst_36 = arith.constant dense<0.000000e+00> : vector<2x1xf32>
    %47 = tpu.matmul %45, %46, %cst_36 {dimension_numbers = #tpu.dot_dimension_numbers<[1], [0], [0], [1], [0, 0, 1, 1], [], []>} : vector<2x448xbf16>, vector<448x1xbf16>, vector<2x1xf32> -> vector<2x1xf32>
    %c0_37 = arith.constant 0 : index
    %c0_38 = arith.constant 0 : index
    %48 = vector.load %arg15[%c0_37, %c0_38] : memref<1x1xf32, #tpu.memory_space<vmem>>, vector<1x1xf32>
    %49 = vector.broadcast %48 : vector<1x1xf32> to vector<2x1xf32>
    %50 = arith.addf %47, %49 : vector<2x1xf32>
    %c0_39 = arith.constant 0 : index
    %c0_40 = arith.constant 0 : index
    %51 = vector.load %arg16[%c0_39, %c0_40] : memref<2x8xf32, #tpu.memory_space<vmem>>, vector<2x6xf32>
    tpu.vector_store %arg16[%c0_39, %c0_40], %29 {strides = array<i32>} : memref<2x8xf32, #tpu.memory_space<vmem>>, vector<2x6xf32>,
    %c0_41 = arith.constant 0 : index
    %c6 = arith.constant 6 : index
    %52 = vector.load %arg16[%c0_41, %c6] : memref<2x8xf32, #tpu.memory_space<vmem>>, vector<2x1xf32>
    tpu.vector_store %arg16[%c0_41, %c6], %44 {strides = array<i32>} : memref<2x8xf32, #tpu.memory_space<vmem>>, vector<2x1xf32>,
    %c0_42 = arith.constant 0 : index
    %c7 = arith.constant 7 : index
    %53 = vector.load %arg16[%c0_42, %c7] : memref<2x8xf32, #tpu.memory_space<vmem>>, vector<2x1xf32>
    tpu.vector_store %arg16[%c0_42, %c7], %50 {strides = array<i32>} : memref<2x8xf32, #tpu.memory_space<vmem>>, vector<2x1xf32>,
    return
  }
  func.func @transform_0(%arg0: i32) -> (i32, i32) {
    %c0_i32 = arith.constant 0 : i32
    %c0_i32_0 = arith.constant 0 : i32
    return %arg0, %c0_i32 : i32, i32
  }
  func.func @transform_1(%arg0: i32) -> (i32, i32) {
    %c0_i32 = arith.constant 0 : i32
    %c0_i32_0 = arith.constant 0 : i32
    %c0_i32_1 = arith.constant 0 : i32
    return %c0_i32, %c0_i32_0 : i32, i32
  }
  func.func @transform_2(%arg0: i32) -> (i32, i32) {
    %c0_i32 = arith.constant 0 : i32
    %c0_i32_0 = arith.constant 0 : i32
    %c0_i32_1 = arith.constant 0 : i32
    return %c0_i32, %c0_i32_0 : i32, i32
  }
  func.func @transform_3(%arg0: i32) -> (i32, i32) {
    %c0_i32 = arith.constant 0 : i32
    %c0_i32_0 = arith.constant 0 : i32
    %c0_i32_1 = arith.constant 0 : i32
    return %c0_i32, %c0_i32_0 : i32, i32
  }
  func.func @transform_4(%arg0: i32) -> (i32, i32) {
    %c0_i32 = arith.constant 0 : i32
    %c0_i32_0 = arith.constant 0 : i32
    %c0_i32_1 = arith.constant 0 : i32
    return %c0_i32, %c0_i32_0 : i32, i32
  }
  func.func @transform_5(%arg0: i32) -> (i32, i32) {
    %c0_i32 = arith.constant 0 : i32
    %c0_i32_0 = arith.constant 0 : i32
    %c0_i32_1 = arith.constant 0 : i32
    return %c0_i32, %c0_i32_0 : i32, i32
  }
  func.func @transform_6(%arg0: i32) -> (i32, i32) {
    %c0_i32 = arith.constant 0 : i32
    %c0_i32_0 = arith.constant 0 : i32
    %c0_i32_1 = arith.constant 0 : i32
    return %c0_i32, %c0_i32_0 : i32, i32
  }
  func.func @transform_7(%arg0: i32) -> (i32, i32) {
    %c0_i32 = arith.constant 0 : i32
    %c0_i32_0 = arith.constant 0 : i32
    %c0_i32_1 = arith.constant 0 : i32
    return %c0_i32, %c0_i32_0 : i32, i32
  }
  func.func @transform_8(%arg0: i32) -> (i32, i32) {
    %c0_i32 = arith.constant 0 : i32
    %c0_i32_0 = arith.constant 0 : i32
    %c0_i32_1 = arith.constant 0 : i32
    return %c0_i32, %c0_i32_0 : i32, i32
  }
  func.func @transform_9(%arg0: i32) -> (i32, i32) {
    %c0_i32 = arith.constant 0 : i32
    %c0_i32_0 = arith.constant 0 : i32
    %c0_i32_1 = arith.constant 0 : i32
    return %c0_i32, %c0_i32_0 : i32, i32
  }
  func.func @transform_10(%arg0: i32) -> (i32, i32) {
    %c0_i32 = arith.constant 0 : i32
    %c0_i32_0 = arith.constant 0 : i32
    %c0_i32_1 = arith.constant 0 : i32
    return %c0_i32, %c0_i32_0 : i32, i32
  }
  func.func @transform_11(%arg0: i32) -> (i32, i32) {
    %c0_i32 = arith.constant 0 : i32
    %c0_i32_0 = arith.constant 0 : i32
    %c0_i32_1 = arith.constant 0 : i32
    return %c0_i32, %c0_i32_0 : i32, i32
  }
  func.func @transform_12(%arg0: i32) -> (i32, i32) {
    %c0_i32 = arith.constant 0 : i32
    %c0_i32_0 = arith.constant 0 : i32
    %c0_i32_1 = arith.constant 0 : i32
    return %c0_i32, %c0_i32_0 : i32, i32
  }
  func.func @transform_13(%arg0: i32) -> (i32, i32) {
    %c0_i32 = arith.constant 0 : i32
    %c0_i32_0 = arith.constant 0 : i32
    %c0_i32_1 = arith.constant 0 : i32
    return %c0_i32, %c0_i32_0 : i32, i32
  }
  func.func @transform_14(%arg0: i32) -> (i32, i32) {
    %c0_i32 = arith.constant 0 : i32
    %c0_i32_0 = arith.constant 0 : i32
    %c0_i32_1 = arith.constant 0 : i32
    return %c0_i32, %c0_i32_0 : i32, i32
  }
  func.func @transform_15(%arg0: i32) -> (i32, i32) {
    %c0_i32 = arith.constant 0 : i32
    %c0_i32_0 = arith.constant 0 : i32
    return %arg0, %c0_i32 : i32, i32
  }
}

</mosaic_0001>

<bundles_post_ra>
// kernel: forward.4
= control target key start
LH: loop header
LB: loop body
LE: loop exit
PB: predicated region body
PF: predicated region fallthrough
CT: control target
= control target key end

     0   :  { %s1542_s12 = smov 0   ;;  %s1852_s0 = inlined_call_operand.vmem [shape: bf16[800,256], index: 0, kind: input, shape index: {}]   ;;  %s1853_s1 = inlined_call_operand.vmem [shape: bf16[256,32], index: 1, kind: input, shape index: {}]   ;;  %s1854_s2 = inlined_call_operand.vmem [shape: f32[1,32], index: 2, kind: input, shape index: {}]   ;;  %s1855_s3 = inlined_call_operand.vmem [shape: bf16[800,32], index: 3, kind: output, shape index: {}]  }
   0x1 LB: > { %s1203_s13 = sadd.s32 4294967295, %s1519_s12   ;;  %p1207_p0 = scmp.ge.s32.totalorder %s1519_s12, 1  ;;  %s1519_s12 = sphi %s1542_s12, %s13_s12  }
   0x2   : > { %p139_p1 = scmp.lt.s32.totalorder %s1519_s12, 3 }
   0x4   : > { %p140_p2 = pnand %p1207_p0, %p139_p1 }
   0x5   : > { %v1422_v0 = vld [vmem:[%s1853_s1] sm:$0xff] (!%p140_p2)   ;;  %v1521_v1 = vmov (!%p140_p2), 0   ;;  %s164_s16 = smul.u32 (!%p140_p2), 50, %s1203_s13  ;;  %v1423_v2 = vld [vmem:[%s1853_s1 + $0x8] sm:$0xff] (!%p140_p2)   ;;  %v1424_v3 = vld [vmem:[%s1853_s1 + $0x10] sm:$0xff] (!%p140_p2)   ;;  %vm1096_vm0 = vcmask (!%p140_p2), 257024  }
   0x6   : > { %143 = sbr.rel (%p140_p2) target bundleno = 387 (0x183), region = 32  ;;  %613 = vmatprep.subr.bf16.mxu0 (!%p140_p2), %v1521_v1  ;;  %1381 = vmatprep.subr.bf16.mxu1 (!%p140_p2), %v1521_v1  ;;  %v1425_v4 = vld [vmem:[%s1853_s1 + $0x18] sm:$0xff] (!%p140_p2)   ;;  %v1426_v5 = vld [vmem:[%s1853_s1 + $0x20] sm:$0xff] (!%p140_p2)   ;;  %v1427_v7 = vld [vmem:[%s1853_s1 + $0x28] sm:$0xff] (!%p140_p2)  }
   0x7   : > { %614 = vmatpush1.bf16.msra.mxu0 (!%p140_p2), %v1422_v0  ;;  %1397 = vmatpush1.bf16.msra.mxu1 (!%p140_p2), %v1422_v0  ;;  %p165_p3 = scmp.lt.s32.totalorder (!%p140_p2), %s164_s16, 99  ;;  %v1428_v9 = vld [vmem:[%s1853_s1 + $0x30] sm:$0xff] (!%p140_p2)   ;;  %v1429_v10 = vld [vmem:[%s1853_s1 + $0x38] sm:$0xff] (!%p140_p2)   ;;  %v1430_v11 = vld [vmem:[%s1853_s1 + $0x40] sm:$0xff] (!%p140_p2)  }
   0x8   : > { %615 = vmatprep.subr.bf16.mxu0 (!%p140_p2), %v1521_v1  ;;  %1382 = vmatprep.subr.bf16.mxu1 (!%p140_p2), %v1521_v1  ;;  %v1431_v12 = vld [vmem:[%s1853_s1 + $0x48] sm:$0xff] (!%p140_p2)   ;;  %v1432_v13 = vld [vmem:[%s1853_s1 + $0x50] sm:$0xff] (!%p140_p2)   ;;  %v1433_v14 = vld [vmem:[%s1853_s1 + $0x58] sm:$0xff] (!%p140_p2)  }
   0x9   : > { %v1434_v15 = vld [vmem:[%s1853_s1 + $0x60] sm:$0xff] (!%p140_p2)   ;;  %v1435_v16 = vld [vmem:[%s1853_s1 + $0x68] sm:$0xff] (!%p140_p2)   ;;  %v1436_v17 = vld [vmem:[%s1853_s1 + $0x70] sm:$0xff] (!%p140_p2)  }
   0xa   : > { %v1437_v18 = vld [vmem:[%s1853_s1 + $0x78] sm:$0xff] (!%p140_p2)  }
   0xb   : > { %616 = vmatpush1.bf16.msra.mxu0 (!%p140_p2), %v1423_v2  ;;  %1398 = vmatpush1.bf16.msra.mxu1 (!%p140_p2), %v1423_v2 }
   0xc   : > { %617 = vmatprep.subr.bf16.mxu0 (!%p140_p2), %v1521_v1  ;;  %1383 = vmatprep.subr.bf16.mxu1 (!%p140_p2), %v1521_v1 }
   0xd   : > { %s1857_s16 = smov (!%p165_p3, %s164_s16), 99 }
   0xe   : > { %s1330_s23 = sshll.u32 %s1857_s16, 3  ;;  %s1210_s29 = sshll.u32 %s1857_s16, 2 }
   0xf   : > { %618 = vmatpush1.bf16.msra.mxu0 %v1424_v3  ;;  %1399 = vmatpush1.bf16.msra.mxu1 %v1424_v3  ;;  %s1579_s28 = scalar_lea.vmem %s1852_s0, %s1330_s23  ;;  %v1691_v3 = vld [vmem:[%s1854_s2] ss:$0 sm:$0xff]  ;;  %s1701_s16 = scalar_lea.vmem %s1855_s3, %s1210_s29 }
  0x10   : > { %619 = vmatprep.subr.bf16.mxu0 %v1521_v1  ;;  %1384 = vmatprep.subr.bf16.mxu1 %v1521_v1  ;;  %v1440_v6 = vld [vmem:[%s1579_s28 + $0x4] ss:$8 sps:$4 sm:$0xff]   ;;  %v1443_v8 = vld [vmem:[%s1579_s28 + $0xd4] ss:$8 sps:$4 sm:$0xff]   ;;  %v1438_v19 = vld [vmem:[%s1579_s28] ss:$8 sps:$4 sm:$0xff]  }
  0x11   : > { %645 = vmatprep.mubr.bf16.mxu0 %v1440_v6  ;;  %749 = vmatprep.mubr.bf16.mxu1 %v1443_v8  ;;  %v1441_v20 = vld [vmem:[%s1579_s28 + $0xd0] ss:$8 sps:$4 sm:$0xff]   ;;  %v1444_v21 = vld [vmem:[%s1579_s28 + $0x14] ss:$8 sps:$4 sm:$0xff]   ;;  %v1447_v22 = vld [vmem:[%s1579_s28 + $0xe4] ss:$8 sps:$4 sm:$0xff]  }
  0x12   : > { %v1446_v23 = vld [vmem:[%s1579_s28 + $0x10] ss:$8 sps:$4 sm:$0xff]   ;;  %v1449_v24 = vld [vmem:[%s1579_s28 + $0xe0] ss:$8 sps:$4 sm:$0xff]   ;;  %v1450_v25 = vld [vmem:[%s1579_s28 + $0x24] ss:$8 sps:$4 sm:$0xff]  }
  0x13   : > { %620 = vmatpush1.bf16.msra.mxu0 %v1425_v4  ;;  %1400 = vmatpush1.bf16.msra.mxu1 %v1425_v4  ;;  %v1453_v26 = vld [vmem:[%s1579_s28 + $0xf4] ss:$8 sps:$4 sm:$0xff]   ;;  %v1452_v27 = vld [vmem:[%s1579_s28 + $0x20] ss:$8 sps:$4 sm:$0xff]   ;;  %v1455_v28 = vld [vmem:[%s1579_s28 + $0xf0] ss:$8 sps:$4 sm:$0xff]  }
  0x14   : > { %621 = vmatprep.subr.bf16.mxu0 %v1521_v1  ;;  %1385 = vmatprep.subr.bf16.mxu1 %v1521_v1  ;;  %v1456_v29 = vld [vmem:[%s1579_s28 + $0x34] ss:$8 sps:$4 sm:$0xff]   ;;  %v1459_v30 = vld [vmem:[%s1579_s28 + $0x104] ss:$8 sps:$4 sm:$0xff]   ;;  %v1458_v31 = vld [vmem:[%s1579_s28 + $0x30] ss:$8 sps:$4 sm:$0xff]  }
  0x15   : > { %v1461_v32 = vld [vmem:[%s1579_s28 + $0x100] ss:$8 sps:$4 sm:$0xff]   ;;  %v1462_v33 = vld [vmem:[%s1579_s28 + $0x44] ss:$8 sps:$4 sm:$0xff]   ;;  %v1465_v34 = vld [vmem:[%s1579_s28 + $0x114] ss:$8 sps:$4 sm:$0xff]  }
  0x16   : > { %v1464_v35 = vld [vmem:[%s1579_s28 + $0x40] ss:$8 sps:$4 sm:$0xff]   ;;  %v1467_v36 = vld [vmem:[%s1579_s28 + $0x110] ss:$8 sps:$4 sm:$0xff]   ;;  %v1468_v37 = vld [vmem:[%s1579_s28 + $0x54] ss:$8 sps:$4 sm:$0xff]  }
  0x17   : > { %622 = vmatpush1.bf16.msra.mxu0 %v1426_v5  ;;  %1401 = vmatpush1.bf16.msra.mxu1 %v1426_v5  ;;  %v1471_v38 = vld [vmem:[%s1579_s28 + $0x124] ss:$8 sps:$4 sm:$0xff]   ;;  %v1470_v39 = vld [vmem:[%s1579_s28 + $0x50] ss:$8 sps:$4 sm:$0xff]   ;;  %v1473_v40 = vld [vmem:[%s1579_s28 + $0x120] ss:$8 sps:$4 sm:$0xff]  }
  0x18   : > { %623 = vmatprep.subr.bf16.mxu0 %v1521_v1  ;;  %1386 = vmatprep.subr.bf16.mxu1 %v1521_v1  ;;  %v1474_v41 = vld [vmem:[%s1579_s28 + $0x64] ss:$8 sps:$4 sm:$0xff]   ;;  %v1477_v42 = vld [vmem:[%s1579_s28 + $0x134] ss:$8 sps:$4 sm:$0xff]   ;;  %v1476_v43 = vld [vmem:[%s1579_s28 + $0x60] ss:$8 sps:$4 sm:$0xff]  }
  0x19   : > { %v1479_v44 = vld [vmem:[%s1579_s28 + $0x130] ss:$8 sps:$4 sm:$0xff]   ;;  %v1480_v45 = vld [vmem:[%s1579_s28 + $0x74] ss:$8 sps:$4 sm:$0xff]   ;;  %v1483_v46 = vld [vmem:[%s1579_s28 + $0x144] ss:$8 sps:$4 sm:$0xff]  }
  0x1a   : > { %v1482_v47 = vld [vmem:[%s1579_s28 + $0x70] ss:$8 sps:$4 sm:$0xff]   ;;  %v1485_v48 = vld [vmem:[%s1579_s28 + $0x140] ss:$8 sps:$4 sm:$0xff]   ;;  %v1486_v49 = vld [vmem:[%s1579_s28 + $0x84] ss:$8 sps:$4 sm:$0xff]  }
  0x1b   : > { %624 = vmatpush1.bf16.msra.mxu0 %v1427_v7  ;;  %1402 = vmatpush1.bf16.msra.mxu1 %v1427_v7  ;;  %v1489_v50 = vld [vmem:[%s1579_s28 + $0x154] ss:$8 sps:$4 sm:$0xff]   ;;  %v1488_v51 = vld [vmem:[%s1579_s28 + $0x80] ss:$8 sps:$4 sm:$0xff]   ;;  %v1491_v52 = vld [vmem:[%s1579_s28 + $0x150] ss:$8 sps:$4 sm:$0xff]  }
  0x1c   : > { %625 = vmatprep.subr.bf16.mxu0 %v1521_v1  ;;  %1387 = vmatprep.subr.bf16.mxu1 %v1521_v1  ;;  %v1492_v53 = vld [vmem:[%s1579_s28 + $0x94] ss:$8 sps:$4 sm:$0xff]   ;;  %v1495_v54 = vld [vmem:[%s1579_s28 + $0x164] ss:$8 sps:$4 sm:$0xff]   ;;  %v1494_v55 = vld [vmem:[%s1579_s28 + $0x90] ss:$8 sps:$4 sm:$0xff]  }
  0x1d   : > { %v1497_v56 = vld [vmem:[%s1579_s28 + $0x160] ss:$8 sps:$4 sm:$0xff]   ;;  %v1498_v57 = vld [vmem:[%s1579_s28 + $0xa4] ss:$8 sps:$4 sm:$0xff]   ;;  %v1501_v58 = vld [vmem:[%s1579_s28 + $0x174] ss:$8 sps:$4 sm:$0xff]  }
  0x1e   : > { %v1500_v59 = vld [vmem:[%s1579_s28 + $0xa0] ss:$8 sps:$4 sm:$0xff]   ;;  %v1503_v60 = vld [vmem:[%s1579_s28 + $0x170] ss:$8 sps:$4 sm:$0xff]   ;;  %v1504_v61 = vld [vmem:[%s1579_s28 + $0xb4] ss:$8 sps:$4 sm:$0xff]  }
  0x1f   : > { %626 = vmatpush1.bf16.msra.mxu0 %v1428_v9  ;;  %1403 = vmatpush1.bf16.msra.mxu1 %v1428_v9  ;;  %v1507_v62 = vld [vmem:[%s1579_s28 + $0x184] ss:$8 sps:$4 sm:$0xff]   ;;  %v1506_v63 = vld [vmem:[%s1579_s28 + $0xb0] ss:$8 sps:$4 sm:$0xff]   ;;  %v1509_v0 = vld [vmem:[%s1579_s28 + $0x180] ss:$8 sps:$4 sm:$0xff]  }
  0x20   : > { %627 = vmatprep.subr.bf16.mxu0 %v1521_v1  ;;  %1388 = vmatprep.subr.bf16.mxu1 %v1521_v1  ;;  %v1512_v2 = vld [vmem:[%s1579_s28 + $0xc0] ss:$8 sps:$4 sm:$0xff]  }
  0x23   : > { %628 = vmatpush1.bf16.msra.mxu0 %v1429_v10  ;;  %1404 = vmatpush1.bf16.msra.mxu1 %v1429_v10 }
  0x24   : > { %629 = vmatprep.subr.bf16.mxu0 %v1521_v1  ;;  %1389 = vmatprep.subr.bf16.mxu1 %v1521_v1 }
  0x27   : > { %630 = vmatpush1.bf16.msra.mxu0 %v1430_v11  ;;  %1405 = vmatpush1.bf16.msra.mxu1 %v1430_v11 }
  0x28   : > { %631 = vmatprep.subr.bf16.mxu0 %v1521_v1  ;;  %1390 = vmatprep.subr.bf16.mxu1 %v1521_v1 }
  0x2b   : > { %632 = vmatpush1.bf16.msra.mxu0 %v1431_v12  ;;  %1406 = vmatpush1.bf16.msra.mxu1 %v1431_v12 }
  0x2c   : > { %633 = vmatprep.subr.bf16.mxu0 %v1521_v1  ;;  %1391 = vmatprep.subr.bf16.mxu1 %v1521_v1 }
  0x2f   : > { %634 = vmatpush1.bf16.msra.mxu0 %v1432_v13  ;;  %1407 = vmatpush1.bf16.msra.mxu1 %v1432_v13 }
  0x30   : > { %635 = vmatprep.subr.bf16.mxu0 %v1521_v1  ;;  %1392 = vmatprep.subr.bf16.mxu1 %v1521_v1 }
  0x33   : > { %636 = vmatpush1.bf16.msra.mxu0 %v1433_v14  ;;  %1408 = vmatpush1.bf16.msra.mxu1 %v1433_v14 }
  0x34   : > { %637 = vmatprep.subr.bf16.mxu0 %v1521_v1  ;;  %1393 = vmatprep.subr.bf16.mxu1 %v1521_v1 }
  0x37   : > { %638 = vmatpush1.bf16.msra.mxu0 %v1434_v15  ;;  %1409 = vmatpush1.bf16.msra.mxu1 %v1434_v15 }
  0x38   : > { %639 = vmatprep.subr.bf16.mxu0 %v1521_v1  ;;  %1394 = vmatprep.subr.bf16.mxu1 %v1521_v1 }
  0x3b   : > { %640 = vmatpush1.bf16.msra.mxu0 %v1435_v16  ;;  %1410 = vmatpush1.bf16.msra.mxu1 %v1435_v16 }
  0x3c   : > { %641 = vmatprep.subr.bf16.mxu0 %v1521_v1  ;;  %1395 = vmatprep.subr.bf16.mxu1 %v1521_v1 }
  0x3f   : > { %642 = vmatpush1.bf16.msra.mxu0 %v1436_v17  ;;  %1411 = vmatpush1.bf16.msra.mxu1 %v1436_v17 }
  0x40   : > { %643 = vmatprep.subr.bf16.mxu0 %v1521_v1  ;;  %1396 = vmatprep.subr.bf16.mxu1 %v1521_v1  ;;  %v1510_v1 = vld [vmem:[%s1579_s28 + $0xc4] ss:$8 sps:$4 sm:$0xff]  }
  0x43   : > { %644 = vmatpush1.bf16.msra.mxu0 %v1437_v18  ;;  %1412 = vmatpush1.bf16.msra.mxu1 %v1437_v18 }
  0x46   : > { %646 = vmatmul.mubr.bf16.vlgmr.msra.gmra.mrb[0].mxu0 %v1438_v19  ;;  %750 = vmatmul.mubr.bf16.vlgmr.msra.gmra.mrb[0].mxu1 %v1441_v20 }
  0x47   : > { %653 = vmatprep.mubr.bf16.mxu0 %v1444_v21  ;;  %757 = vmatprep.mubr.bf16.mxu1 %v1447_v22 }
  0x4e   : > { %654 = vmatmul.mubr.bf16.gmra.mrb[4].mxu0 %v1446_v23  ;;  %758 = vmatmul.mubr.bf16.gmra.mrb[4].mxu1 %v1449_v24 }
  0x4f   : > { %661 = vmatprep.mubr.bf16.mxu0 %v1450_v25  ;;  %765 = vmatprep.mubr.bf16.mxu1 %v1453_v26 }
  0x56   : > { %662 = vmatmul.mubr.bf16.gmra.mrb[8].mxu0 %v1452_v27  ;;  %766 = vmatmul.mubr.bf16.gmra.mrb[8].mxu1 %v1455_v28 }
  0x57   : > { %669 = vmatprep.mubr.bf16.mxu0 %v1456_v29  ;;  %773 = vmatprep.mubr.bf16.mxu1 %v1459_v30 }
  0x5e   : > { %670 = vmatmul.mubr.bf16.gmra.mrb[12].mxu0 %v1458_v31  ;;  %774 = vmatmul.mubr.bf16.gmra.mrb[12].mxu1 %v1461_v32 }
  0x5f   : > { %677 = vmatprep.mubr.bf16.mxu0 %v1462_v33  ;;  %781 = vmatprep.mubr.bf16.mxu1 %v1465_v34 }
  0x66   : > { %678 = vmatmul.mubr.bf16.gmra.mrb[16].mxu0 %v1464_v35  ;;  %782 = vmatmul.mubr.bf16.gmra.mrb[16].mxu1 %v1467_v36 }
  0x67   : > { %685 = vmatprep.mubr.bf16.mxu0 %v1468_v37  ;;  %789 = vmatprep.mubr.bf16.mxu1 %v1471_v38 }
  0x6e   : > { %686 = vmatmul.mubr.bf16.gmra.mrb[20].mxu0 %v1470_v39  ;;  %790 = vmatmul.mubr.bf16.gmra.mrb[20].mxu1 %v1473_v40 }
  0x6f   : > { %693 = vmatprep.mubr.bf16.mxu0 %v1474_v41  ;;  %797 = vmatprep.mubr.bf16.mxu1 %v1477_v42 }
  0x76   : > { %694 = vmatmul.mubr.bf16.gmra.mrb[24].mxu0 %v1476_v43  ;;  %798 = vmatmul.mubr.bf16.gmra.mrb[24].mxu1 %v1479_v44 }
  0x77   : > { %701 = vmatprep.mubr.bf16.mxu0 %v1480_v45  ;;  %805 = vmatprep.mubr.bf16.mxu1 %v1483_v46 }
  0x7e   : > { %702 = vmatmul.mubr.bf16.gmra.mrb[28].mxu0 %v1482_v47  ;;  %806 = vmatmul.mubr.bf16.gmra.mrb[28].mxu1 %v1485_v48 }
  0x7f   : > { %709 = vmatprep.mubr.bf16.mxu0 %v1486_v49  ;;  %813 = vmatprep.mubr.bf16.mxu1 %v1489_v50 }
  0x86   : > { %710 = vmatmul.mubr.bf16.gmra.mrb[32].mxu0 %v1488_v51  ;;  %814 = vmatmul.mubr.bf16.gmra.mrb[32].mxu1 %v1491_v52 }
  0x87   : > { %717 = vmatprep.mubr.bf16.mxu0 %v1492_v53  ;;  %821 = vmatprep.mubr.bf16.mxu1 %v1495_v54 }
  0x8e   : > { %718 = vmatmul.mubr.bf16.gmra.mrb[36].mxu0 %v1494_v55  ;;  %822 = vmatmul.mubr.bf16.gmra.mrb[36].mxu1 %v1497_v56 }
  0x8f   : > { %725 = vmatprep.mubr.bf16.mxu0 %v1498_v57  ;;  %829 = vmatprep.mubr.bf16.mxu1 %v1501_v58 }
  0x96   : > { %726 = vmatmul.mubr.bf16.gmra.mrb[40].mxu0 %v1500_v59  ;;  %830 = vmatmul.mubr.bf16.gmra.mrb[40].mxu1 %v1503_v60 }
  0x97   : > { %733 = vmatprep.mubr.bf16.mxu0 %v1504_v61  ;;  %837 = vmatprep.mubr.bf16.mxu1 %v1507_v62 }
  0x9e   : > { %734 = vmatmul.mubr.bf16.gmra.mrb[44].mxu0 %v1506_v63  ;;  %838 = vmatmul.mubr.bf16.gmra.mrb[44].mxu1 %v1509_v0 }
  0x9f   : > { %741 = vmatprep.mubr.bf16.mxu0 %v1510_v1 }
  0xa6   : > { %742 = vmatmul.mubr.bf16.gmra.mrb[48].mxu0 %v1512_v2 }
 0x119   : > { %v647_v4 = vpop.f32.mrb[0].mxu0  ;;  %v751_v5 = vpop.f32.mrb[0].mxu1 }
 0x11a   : > { %v648_v6 = vadd.f32 %v1691_v3, %v647_v4  ;;  %v649_v7 = vpop.f32.mrb[1].mxu0  ;;  %v752_v8 = vadd.f32 %v1691_v3, %v751_v5  ;;  %v753_v9 = vpop.f32.mrb[1].mxu1 }
 0x11b   : > { %v650_v10 = vpop.f32.mrb[2].mxu0  ;;  %v754_v11 = vpop.f32.mrb[2].mxu1 }
 0x11c   : > { %v846_v12 = vmax.f32 %v648_v6, 0.0  ;;  %v651_v13 = vadd.f32 %v1691_v3, %v650_v10  ;;  %v652_v14 = vpop.f32.mrb[3].mxu0  ;;  %v872_v15 = vmax.f32 %v752_v8, 0.0  ;;  %v755_v16 = vadd.f32 %v1691_v3, %v754_v11  ;;  %v756_v17 = vpop.f32.mrb[3].mxu1 }
 0x11e   : > { %v1331_v18 = vpack.c.bf16 %v846_v12, %v846_v12  ;;  %v847_v19 = vmax.f32 %v651_v13, 0.0  ;;  %v1357_v20 = vpack.c.bf16 %v872_v15, %v872_v15  ;;  %v873_v21 = vmax.f32 %v755_v16, 0.0 }
 0x120   : > { %1097 = vst.msk [vmem:[%s1701_s16] sm:$0xf] %vm1096_vm0, %v1331_v18  ;;  %v1332_v22 = vpack.c.bf16 %v847_v19, %v847_v19  ;;  %1123 = vst.msk [vmem:[%s1701_s16 + $0x68] sm:$0xf] %vm1096_vm0, %v1357_v20  ;;  %v1358_v23 = vpack.c.bf16 %v873_v21, %v873_v21 }
 0x121   : > { %v655_v24 = vpop.f32.mrb[4].mxu0  ;;  %v759_v25 = vpop.f32.mrb[4].mxu1 }
 0x122   : > { %1098 = vst.msk [vmem:[%s1701_s16 + $0x4] sm:$0xf] %vm1096_vm0, %v1332_v22  ;;  %1124 = vst.msk [vmem:[%s1701_s16 + $0x6c] sm:$0xf] %vm1096_vm0, %v1358_v23  ;;  %v656_v26 = vadd.f32 %v1691_v3, %v655_v24  ;;  %v657_v27 = vpop.f32.mrb[5].mxu0  ;;  %v760_v28 = vadd.f32 %v1691_v3, %v759_v25  ;;  %v761_v29 = vpop.f32.mrb[5].mxu1 }
 0x123   : > { %v658_v30 = vpop.f32.mrb[6].mxu0  ;;  %v762_v31 = vpop.f32.mrb[6].mxu1 }
 0x124   : > { %v848_v32 = vmax.f32 %v656_v26, 0.0  ;;  %v659_v33 = vadd.f32 %v1691_v3, %v658_v30  ;;  %v660_v34 = vpop.f32.mrb[7].mxu0  ;;  %v874_v35 = vmax.f32 %v760_v28, 0.0  ;;  %v763_v36 = vadd.f32 %v1691_v3, %v762_v31  ;;  %v764_v37 = vpop.f32.mrb[7].mxu1 }
 0x126   : > { %v1333_v38 = vpack.c.bf16 %v848_v32, %v848_v32  ;;  %v849_v39 = vmax.f32 %v659_v33, 0.0  ;;  %v1359_v40 = vpack.c.bf16 %v874_v35, %v874_v35  ;;  %v875_v41 = vmax.f32 %v763_v36, 0.0 }
 0x128   : > { %1099 = vst.msk [vmem:[%s1701_s16 + $0x8] sm:$0xf] %vm1096_vm0, %v1333_v38  ;;  %v1334_v42 = vpack.c.bf16 %v849_v39, %v849_v39  ;;  %1125 = vst.msk [vmem:[%s1701_s16 + $0x70] sm:$0xf] %vm1096_vm0, %v1359_v40  ;;  %v1360_v43 = vpack.c.bf16 %v875_v41, %v875_v41 }
 0x129   : > { %v663_v44 = vpop.f32.mrb[8].mxu0  ;;  %v767_v45 = vpop.f32.mrb[8].mxu1 }
 0x12a   : > { %1100 = vst.msk [vmem:[%s1701_s16 + $0xc] sm:$0xf] %vm1096_vm0, %v1334_v42  ;;  %1126 = vst.msk [vmem:[%s1701_s16 + $0x74] sm:$0xf] %vm1096_vm0, %v1360_v43  ;;  %v664_v46 = vadd.f32 %v1691_v3, %v663_v44  ;;  %v665_v47 = vpop.f32.mrb[9].mxu0  ;;  %v768_v48 = vadd.f32 %v1691_v3, %v767_v45  ;;  %v769_v49 = vpop.f32.mrb[9].mxu1 }
 0x12b   : > { %v666_v50 = vpop.f32.mrb[10].mxu0  ;;  %v770_v51 = vpop.f32.mrb[10].mxu1 }
 0x12c   : > { %v850_v52 = vmax.f32 %v664_v46, 0.0  ;;  %v667_v53 = vadd.f32 %v1691_v3, %v666_v50  ;;  %v668_v54 = vpop.f32.mrb[11].mxu0  ;;  %v876_v55 = vmax.f32 %v768_v48, 0.0  ;;  %v771_v56 = vadd.f32 %v1691_v3, %v770_v51  ;;  %v772_v57 = vpop.f32.mrb[11].mxu1 }
 0x12e   : > { %v1335_v58 = vpack.c.bf16 %v850_v52, %v850_v52  ;;  %v851_v59 = vmax.f32 %v667_v53, 0.0  ;;  %v1361_v60 = vpack.c.bf16 %v876_v55, %v876_v55  ;;  %v877_v61 = vmax.f32 %v771_v56, 0.0 }
 0x130   : > { %1101 = vst.msk [vmem:[%s1701_s16 + $0x10] sm:$0xf] %vm1096_vm0, %v1335_v58  ;;  %v1336_v62 = vpack.c.bf16 %v851_v59, %v851_v59  ;;  %1127 = vst.msk [vmem:[%s1701_s16 + $0x78] sm:$0xf] %vm1096_vm0, %v1361_v60  ;;  %v1362_v63 = vpack.c.bf16 %v877_v61, %v877_v61 }
 0x131   : > { %v671_v0 = vpop.f32.mrb[12].mxu0  ;;  %v775_v1 = vpop.f32.mrb[12].mxu1 }
 0x132   : > { %1102 = vst.msk [vmem:[%s1701_s16 + $0x14] sm:$0xf] %vm1096_vm0, %v1336_v62  ;;  %1128 = vst.msk [vmem:[%s1701_s16 + $0x7c] sm:$0xf] %vm1096_vm0, %v1362_v63  ;;  %v672_v2 = vadd.f32 %v1691_v3, %v671_v0  ;;  %v673_v4 = vpop.f32.mrb[13].mxu0  ;;  %v776_v5 = vadd.f32 %v1691_v3, %v775_v1  ;;  %v777_v6 = vpop.f32.mrb[13].mxu1 }
 0x133   : > { %v674_v7 = vpop.f32.mrb[14].mxu0  ;;  %v778_v8 = vpop.f32.mrb[14].mxu1 }
 0x134   : > { %v852_v9 = vmax.f32 %v672_v2, 0.0  ;;  %v675_v10 = vadd.f32 %v1691_v3, %v674_v7  ;;  %v676_v11 = vpop.f32.mrb[15].mxu0  ;;  %v878_v12 = vmax.f32 %v776_v5, 0.0  ;;  %v779_v13 = vadd.f32 %v1691_v3, %v778_v8  ;;  %v780_v14 = vpop.f32.mrb[15].mxu1 }
 0x136   : > { %v1337_v15 = vpack.c.bf16 %v852_v9, %v852_v9  ;;  %v853_v16 = vmax.f32 %v675_v10, 0.0  ;;  %v1363_v17 = vpack.c.bf16 %v878_v12, %v878_v12  ;;  %v879_v18 = vmax.f32 %v779_v13, 0.0 }
 0x138   : > { %1103 = vst.msk [vmem:[%s1701_s16 + $0x18] sm:$0xf] %vm1096_vm0, %v1337_v15  ;;  %v1338_v19 = vpack.c.bf16 %v853_v16, %v853_v16  ;;  %1129 = vst.msk [vmem:[%s1701_s16 + $0x80] sm:$0xf] %vm1096_vm0, %v1363_v17  ;;  %v1364_v20 = vpack.c.bf16 %v879_v18, %v879_v18 }
 0x139   : > { %v679_v21 = vpop.f32.mrb[16].mxu0  ;;  %v783_v22 = vpop.f32.mrb[16].mxu1 }
 0x13a   : > { %1104 = vst.msk [vmem:[%s1701_s16 + $0x1c] sm:$0xf] %vm1096_vm0, %v1338_v19  ;;  %1130 = vst.msk [vmem:[%s1701_s16 + $0x84] sm:$0xf] %vm1096_vm0, %v1364_v20  ;;  %v680_v23 = vadd.f32 %v1691_v3, %v679_v21  ;;  %v681_v24 = vpop.f32.mrb[17].mxu0  ;;  %v784_v25 = vadd.f32 %v1691_v3, %v783_v22  ;;  %v785_v26 = vpop.f32.mrb[17].mxu1 }
 0x13b   : > { %v682_v27 = vpop.f32.mrb[18].mxu0  ;;  %v786_v28 = vpop.f32.mrb[18].mxu1 }
 0x13c   : > { %v854_v29 = vmax.f32 %v680_v23, 0.0  ;;  %v683_v30 = vadd.f32 %v1691_v3, %v682_v27  ;;  %v684_v31 = vpop.f32.mrb[19].mxu0  ;;  %v880_v32 = vmax.f32 %v784_v25, 0.0  ;;  %v787_v33 = vadd.f32 %v1691_v3, %v786_v28  ;;  %v788_v34 = vpop.f32.mrb[19].mxu1 }
 0x13e   : > { %v1339_v35 = vpack.c.bf16 %v854_v29, %v854_v29  ;;  %v855_v36 = vmax.f32 %v683_v30, 0.0  ;;  %v1365_v37 = vpack.c.bf16 %v880_v32, %v880_v32  ;;  %v881_v38 = vmax.f32 %v787_v33, 0.0 }
 0x140   : > { %1105 = vst.msk [vmem:[%s1701_s16 + $0x20] sm:$0xf] %vm1096_vm0, %v1339_v35  ;;  %v1340_v39 = vpack.c.bf16 %v855_v36, %v855_v36  ;;  %1131 = vst.msk [vmem:[%s1701_s16 + $0x88] sm:$0xf] %vm1096_vm0, %v1365_v37  ;;  %v1366_v40 = vpack.c.bf16 %v881_v38, %v881_v38 }
 0x141   : > { %v687_v41 = vpop.f32.mrb[20].mxu0  ;;  %v791_v42 = vpop.f32.mrb[20].mxu1 }
 0x142   : > { %1106 = vst.msk [vmem:[%s1701_s16 + $0x24] sm:$0xf] %vm1096_vm0, %v1340_v39  ;;  %1132 = vst.msk [vmem:[%s1701_s16 + $0x8c] sm:$0xf] %vm1096_vm0, %v1366_v40  ;;  %v688_v43 = vadd.f32 %v1691_v3, %v687_v41  ;;  %v689_v44 = vpop.f32.mrb[21].mxu0  ;;  %v792_v45 = vadd.f32 %v1691_v3, %v791_v42  ;;  %v793_v46 = vpop.f32.mrb[21].mxu1 }
 0x143   : > { %v690_v47 = vpop.f32.mrb[22].mxu0  ;;  %v794_v48 = vpop.f32.mrb[22].mxu1 }
 0x144   : > { %v856_v49 = vmax.f32 %v688_v43, 0.0  ;;  %v691_v50 = vadd.f32 %v1691_v3, %v690_v47  ;;  %v692_v51 = vpop.f32.mrb[23].mxu0  ;;  %v882_v52 = vmax.f32 %v792_v45, 0.0  ;;  %v795_v53 = vadd.f32 %v1691_v3, %v794_v48  ;;  %v796_v54 = vpop.f32.mrb[23].mxu1 }
 0x146   : > { %v1341_v55 = vpack.c.bf16 %v856_v49, %v856_v49  ;;  %v857_v56 = vmax.f32 %v691_v50, 0.0  ;;  %v1367_v57 = vpack.c.bf16 %v882_v52, %v882_v52  ;;  %v883_v58 = vmax.f32 %v795_v53, 0.0 }
 0x148   : > { %1107 = vst.msk [vmem:[%s1701_s16 + $0x28] sm:$0xf] %vm1096_vm0, %v1341_v55  ;;  %v1342_v59 = vpack.c.bf16 %v857_v56, %v857_v56  ;;  %1133 = vst.msk [vmem:[%s1701_s16 + $0x90] sm:$0xf] %vm1096_vm0, %v1367_v57  ;;  %v1368_v60 = vpack.c.bf16 %v883_v58, %v883_v58 }
 0x149   : > { %v695_v61 = vpop.f32.mrb[24].mxu0  ;;  %v799_v62 = vpop.f32.mrb[24].mxu1 }
 0x14a   : > { %1108 = vst.msk [vmem:[%s1701_s16 + $0x2c] sm:$0xf] %vm1096_vm0, %v1342_v59  ;;  %1134 = vst.msk [vmem:[%s1701_s16 + $0x94] sm:$0xf] %vm1096_vm0, %v1368_v60  ;;  %v696_v63 = vadd.f32 %v1691_v3, %v695_v61  ;;  %v697_v0 = vpop.f32.mrb[25].mxu0  ;;  %v800_v1 = vadd.f32 %v1691_v3, %v799_v62  ;;  %v801_v2 = vpop.f32.mrb[25].mxu1 }
 0x14b   : > { %v698_v4 = vpop.f32.mrb[26].mxu0  ;;  %v802_v5 = vpop.f32.mrb[26].mxu1 }
 0x14c   : > { %v858_v6 = vmax.f32 %v696_v63, 0.0  ;;  %v699_v7 = vadd.f32 %v1691_v3, %v698_v4  ;;  %v700_v8 = vpop.f32.mrb[27].mxu0  ;;  %v884_v9 = vmax.f32 %v800_v1, 0.0  ;;  %v803_v10 = vadd.f32 %v1691_v3, %v802_v5  ;;  %v804_v11 = vpop.f32.mrb[27].mxu1 }
 0x14e   : > { %v1343_v12 = vpack.c.bf16 %v858_v6, %v858_v6  ;;  %v859_v13 = vmax.f32 %v699_v7, 0.0  ;;  %v1369_v14 = vpack.c.bf16 %v884_v9, %v884_v9  ;;  %v885_v15 = vmax.f32 %v803_v10, 0.0 }
 0x150   : > { %1109 = vst.msk [vmem:[%s1701_s16 + $0x30] sm:$0xf] %vm1096_vm0, %v1343_v12  ;;  %v1344_v16 = vpack.c.bf16 %v859_v13, %v859_v13  ;;  %1135 = vst.msk [vmem:[%s1701_s16 + $0x98] sm:$0xf] %vm1096_vm0, %v1369_v14  ;;  %v1370_v17 = vpack.c.bf16 %v885_v15, %v885_v15 }
 0x151   : > { %v703_v18 = vpop.f32.mrb[28].mxu0  ;;  %v807_v19 = vpop.f32.mrb[28].mxu1 }
 0x152   : > { %1110 = vst.msk [vmem:[%s1701_s16 + $0x34] sm:$0xf] %vm1096_vm0, %v1344_v16  ;;  %1136 = vst.msk [vmem:[%s1701_s16 + $0x9c] sm:$0xf] %vm1096_vm0, %v1370_v17  ;;  %v704_v20 = vadd.f32 %v1691_v3, %v703_v18  ;;  %v705_v21 = vpop.f32.mrb[29].mxu0  ;;  %v808_v22 = vadd.f32 %v1691_v3, %v807_v19  ;;  %v809_v23 = vpop.f32.mrb[29].mxu1 }
 0x153   : > { %v706_v24 = vpop.f32.mrb[30].mxu0  ;;  %v810_v25 = vpop.f32.mrb[30].mxu1 }
 0x154   : > { %v860_v26 = vmax.f32 %v704_v20, 0.0  ;;  %v707_v27 = vadd.f32 %v1691_v3, %v706_v24  ;;  %v708_v28 = vpop.f32.mrb[31].mxu0  ;;  %v886_v29 = vmax.f32 %v808_v22, 0.0  ;;  %v811_v30 = vadd.f32 %v1691_v3, %v810_v25  ;;  %v812_v31 = vpop.f32.mrb[31].mxu1 }
 0x156   : > { %v1345_v32 = vpack.c.bf16 %v860_v26, %v860_v26  ;;  %v861_v33 = vmax.f32 %v707_v27, 0.0  ;;  %v1371_v34 = vpack.c.bf16 %v886_v29, %v886_v29  ;;  %v887_v35 = vmax.f32 %v811_v30, 0.0 }
 0x158   : > { %1111 = vst.msk [vmem:[%s1701_s16 + $0x38] sm:$0xf] %vm1096_vm0, %v1345_v32  ;;  %v1346_v36 = vpack.c.bf16 %v861_v33, %v861_v33  ;;  %1137 = vst.msk [vmem:[%s1701_s16 + $0xa0] sm:$0xf] %vm1096_vm0, %v1371_v34  ;;  %v1372_v37 = vpack.c.bf16 %v887_v35, %v887_v35 }
 0x159   : > { %v711_v38 = vpop.f32.mrb[32].mxu0  ;;  %v815_v39 = vpop.f32.mrb[32].mxu1 }
 0x15a   : > { %1112 = vst.msk [vmem:[%s1701_s16 + $0x3c] sm:$0xf] %vm1096_vm0, %v1346_v36  ;;  %1138 = vst.msk [vmem:[%s1701_s16 + $0xa4] sm:$0xf] %vm1096_vm0, %v1372_v37  ;;  %v712_v40 = vadd.f32 %v1691_v3, %v711_v38  ;;  %v713_v41 = vpop.f32.mrb[33].mxu0  ;;  %v816_v42 = vadd.f32 %v1691_v3, %v815_v39  ;;  %v817_v43 = vpop.f32.mrb[33].mxu1 }
 0x15b   : > { %v714_v44 = vpop.f32.mrb[34].mxu0  ;;  %v818_v45 = vpop.f32.mrb[34].mxu1 }
 0x15c   : > { %v862_v46 = vmax.f32 %v712_v40, 0.0  ;;  %v715_v47 = vadd.f32 %v1691_v3, %v714_v44  ;;  %v716_v48 = vpop.f32.mrb[35].mxu0  ;;  %v888_v49 = vmax.f32 %v816_v42, 0.0  ;;  %v819_v50 = vadd.f32 %v1691_v3, %v818_v45  ;;  %v820_v51 = vpop.f32.mrb[35].mxu1 }
 0x15e   : > { %v1347_v52 = vpack.c.bf16 %v862_v46, %v862_v46  ;;  %v863_v53 = vmax.f32 %v715_v47, 0.0  ;;  %v1373_v54 = vpack.c.bf16 %v888_v49, %v888_v49  ;;  %v889_v55 = vmax.f32 %v819_v50, 0.0 }
 0x160   : > { %1113 = vst.msk [vmem:[%s1701_s16 + $0x40] sm:$0xf] %vm1096_vm0, %v1347_v52  ;;  %v1348_v56 = vpack.c.bf16 %v863_v53, %v863_v53  ;;  %1139 = vst.msk [vmem:[%s1701_s16 + $0xa8] sm:$0xf] %vm1096_vm0, %v1373_v54  ;;  %v1374_v57 = vpack.c.bf16 %v889_v55, %v889_v55 }
 0x161   : > { %v719_v58 = vpop.f32.mrb[36].mxu0  ;;  %v823_v59 = vpop.f32.mrb[36].mxu1 }
 0x162   : > { %1114 = vst.msk [vmem:[%s1701_s16 + $0x44] sm:$0xf] %vm1096_vm0, %v1348_v56  ;;  %1140 = vst.msk [vmem:[%s1701_s16 + $0xac] sm:$0xf] %vm1096_vm0, %v1374_v57  ;;  %v720_v60 = vadd.f32 %v1691_v3, %v719_v58  ;;  %v721_v61 = vpop.f32.mrb[37].mxu0  ;;  %v824_v62 = vadd.f32 %v1691_v3, %v823_v59  ;;  %v825_v63 = vpop.f32.mrb[37].mxu1 }
 0x163   : > { %v722_v0 = vpop.f32.mrb[38].mxu0  ;;  %v826_v1 = vpop.f32.mrb[38].mxu1 }
 0x164   : > { %v864_v2 = vmax.f32 %v720_v60, 0.0  ;;  %v723_v4 = vadd.f32 %v1691_v3, %v722_v0  ;;  %v724_v5 = vpop.f32.mrb[39].mxu0  ;;  %v890_v6 = vmax.f32 %v824_v62, 0.0  ;;  %v827_v7 = vadd.f32 %v1691_v3, %v826_v1  ;;  %v828_v8 = vpop.f32.mrb[39].mxu1 }
 0x166   : > { %v1349_v9 = vpack.c.bf16 %v864_v2, %v864_v2  ;;  %v865_v10 = vmax.f32 %v723_v4, 0.0  ;;  %v1375_v11 = vpack.c.bf16 %v890_v6, %v890_v6  ;;  %v891_v12 = vmax.f32 %v827_v7, 0.0 }
 0x168   : > { %1115 = vst.msk [vmem:[%s1701_s16 + $0x48] sm:$0xf] %vm1096_vm0, %v1349_v9  ;;  %v1350_v13 = vpack.c.bf16 %v865_v10, %v865_v10  ;;  %1141 = vst.msk [vmem:[%s1701_s16 + $0xb0] sm:$0xf] %vm1096_vm0, %v1375_v11  ;;  %v1376_v14 = vpack.c.bf16 %v891_v12, %v891_v12 }
 0x169   : > { %v727_v15 = vpop.f32.mrb[40].mxu0  ;;  %v831_v16 = vpop.f32.mrb[40].mxu1 }
 0x16a   : > { %1116 = vst.msk [vmem:[%s1701_s16 + $0x4c] sm:$0xf] %vm1096_vm0, %v1350_v13  ;;  %1142 = vst.msk [vmem:[%s1701_s16 + $0xb4] sm:$0xf] %vm1096_vm0, %v1376_v14  ;;  %v728_v17 = vadd.f32 %v1691_v3, %v727_v15  ;;  %v729_v18 = vpop.f32.mrb[41].mxu0  ;;  %v832_v19 = vadd.f32 %v1691_v3, %v831_v16  ;;  %v833_v20 = vpop.f32.mrb[41].mxu1 }
 0x16b   : > { %v730_v21 = vpop.f32.mrb[42].mxu0  ;;  %v834_v22 = vpop.f32.mrb[42].mxu1 }
 0x16c   : > { %v866_v23 = vmax.f32 %v728_v17, 0.0  ;;  %v731_v24 = vadd.f32 %v1691_v3, %v730_v21  ;;  %v732_v25 = vpop.f32.mrb[43].mxu0  ;;  %v892_v26 = vmax.f32 %v832_v19, 0.0  ;;  %v835_v27 = vadd.f32 %v1691_v3, %v834_v22  ;;  %v836_v28 = vpop.f32.mrb[43].mxu1 }
 0x16e   : > { %v1351_v29 = vpack.c.bf16 %v866_v23, %v866_v23  ;;  %v867_v30 = vmax.f32 %v731_v24, 0.0  ;;  %v1377_v31 = vpack.c.bf16 %v892_v26, %v892_v26  ;;  %v893_v32 = vmax.f32 %v835_v27, 0.0 }
 0x170   : > { %1117 = vst.msk [vmem:[%s1701_s16 + $0x50] sm:$0xf] %vm1096_vm0, %v1351_v29  ;;  %v1352_v33 = vpack.c.bf16 %v867_v30, %v867_v30  ;;  %1143 = vst.msk [vmem:[%s1701_s16 + $0xb8] sm:$0xf] %vm1096_vm0, %v1377_v31  ;;  %v1378_v34 = vpack.c.bf16 %v893_v32, %v893_v32 }
 0x171   : > { %v735_v35 = vpop.f32.mrb[44].mxu0  ;;  %v839_v36 = vpop.f32.mrb[44].mxu1 }
 0x172   : > { %1118 = vst.msk [vmem:[%s1701_s16 + $0x54] sm:$0xf] %vm1096_vm0, %v1352_v33  ;;  %1144 = vst.msk [vmem:[%s1701_s16 + $0xbc] sm:$0xf] %vm1096_vm0, %v1378_v34  ;;  %v736_v37 = vadd.f32 %v1691_v3, %v735_v35  ;;  %v737_v38 = vpop.f32.mrb[45].mxu0  ;;  %v840_v39 = vadd.f32 %v1691_v3, %v839_v36  ;;  %v841_v40 = vpop.f32.mrb[45].mxu1 }
 0x173   : > { %v738_v41 = vpop.f32.mrb[46].mxu0  ;;  %v842_v42 = vpop.f32.mrb[46].mxu1 }
 0x174   : > { %v868_v43 = vmax.f32 %v736_v37, 0.0  ;;  %v739_v44 = vadd.f32 %v1691_v3, %v738_v41  ;;  %v740_v45 = vpop.f32.mrb[47].mxu0  ;;  %v894_v46 = vmax.f32 %v840_v39, 0.0  ;;  %v843_v47 = vadd.f32 %v1691_v3, %v842_v42  ;;  %v844_v48 = vpop.f32.mrb[47].mxu1 }
 0x176   : > { %v1353_v49 = vpack.c.bf16 %v868_v43, %v868_v43  ;;  %v869_v50 = vmax.f32 %v739_v44, 0.0  ;;  %v1379_v51 = vpack.c.bf16 %v894_v46, %v894_v46  ;;  %v895_v52 = vmax.f32 %v843_v47, 0.0 }
 0x178   : > { %1119 = vst.msk [vmem:[%s1701_s16 + $0x58] sm:$0xf] %vm1096_vm0, %v1353_v49  ;;  %v1354_v53 = vpack.c.bf16 %v869_v50, %v869_v50  ;;  %1145 = vst.msk [vmem:[%s1701_s16 + $0xc0] sm:$0xf] %vm1096_vm0, %v1379_v51  ;;  %v1380_v54 = vpack.c.bf16 %v895_v52, %v895_v52 }
 0x179   : > { %v743_v55 = vpop.f32.mrb[48].mxu0 }
 0x17a   : > { %1120 = vst.msk [vmem:[%s1701_s16 + $0x5c] sm:$0xf] %vm1096_vm0, %v1354_v53  ;;  %1146 = vst.msk [vmem:[%s1701_s16 + $0xc4] sm:$0xf] %vm1096_vm0, %v1380_v54  ;;  %v744_v56 = vadd.f32 %v1691_v3, %v743_v55  ;;  %v745_v57 = vpop.f32.mrb[49].mxu0 }
 0x17b   : > { %v746_v58 = vpop.f32.mrb[50].mxu0 }
 0x17c   : > { %v870_v59 = vmax.f32 %v744_v56, 0.0  ;;  %v747_v60 = vadd.f32 %v1691_v3, %v746_v58  ;;  %v748_v61 = vpop.f32.mrb[51].mxu0 }
 0x17e   : > { %v1355_v62 = vpack.c.bf16 %v870_v59, %v870_v59  ;;  %v871_v63 = vmax.f32 %v747_v60, 0.0 }
 0x180   : > { %1121 = vst.msk [vmem:[%s1701_s16 + $0x60] sm:$0xf] %vm1096_vm0, %v1355_v62  ;;  %v1356_v0 = vpack.c.bf16 %v871_v63, %v871_v63 }
 0x182   : > { %1122 = vst.msk [vmem:[%s1701_s16 + $0x64] sm:$0xf] %vm1096_vm0, %v1356_v0 }
 0x183 PF: > { %s13_s12 = sadd.s32 1, %s1519_s12  }
 0x184   : > { %p10_p4 = scmp.ge.s32.totalorder %s13_s12, 4  }
 0x186   :  { %12 = sbr.rel (!%p10_p4) target bundleno = 1 (0x1), region = 62 }

// kernel: forward.5
= control target key start
LH: loop header
LB: loop body
LE: loop exit
PB: predicated region body
PF: predicated region fallthrough
CT: control target
= control target key end

     0   :  { %s1555_s12 = smov 0   ;;  %s1557_s13 = smov 0   ;;  %s1812_s0 = inlined_call_operand.vmem [shape: bf16[162,512], index: 0, kind: input, shape index: {}]   ;;  %s1813_s1 = inlined_call_operand.vmem [shape: bf16[512,64], index: 1, kind: input, shape index: {}]   ;;  %s1814_s2 = inlined_call_operand.vmem [shape: f32[1,64], index: 2, kind: input, shape index: {}]   ;;  %s1815_s3 = inlined_call_operand.vmem [shape: bf16[162,64], index: 3, kind: output, shape index: {}]  }
   0x1   :  { %s1559_s14 = smov 0  }
   0x2 LB: > { %s1568_s15 = sadd.s32 4294967295, %s1501_s14   ;;  %s1570_s16 = sadd.s32 1, %s1501_s14   ;;  %s1501_s14 = sphi %s1559_s14, %s1822_s14   ;;  %s1497_s13 = sphi %s1557_s13, %s1821_s13   ;;  %s1493_s12 = sphi %s1555_s12, %s1820_s12  }
   0x3   : > { %s85_s17 = ssub.s32 %s1501_s14, %s1570_s16  ;;  %s88_s18 = sadd.s32 1, %s1497_s13 }
   0x4   : > { %p86_p0 = scmp.eq.s32.totalorder %s85_s17, 0  ;;  %p98_p1 = scmp.ne.s32.totalorder %s1497_s13, %s1493_s12 }
   0x5   : > { %p99_p2 = scmp.eq.s32.totalorder %s1568_s15, 1  ;;  %p1087_p3 = scmp.ge.s32.totalorder %s1501_s14, 1 }
   0x6   : > { %s1578_s19 = scalar_select %p86_p0, %s1497_s13, %s88_s18  }
   0x7   : > { %p1580_p4 = por %p99_p2, %p98_p1  ;;  %p149_p5 = scmp.lt.s32.totalorder %s1501_s14, 3 }
   0x9   : > { %p150_p6 = pnand %p1087_p3, %p149_p5 }
   0xa   : > { %v1377_v0 = vld [vmem:[%s1813_s1 + $0x40] sm:$0xff] (!%p150_p6)   ;;  %v1381_v4 = vld [vmem:[%s1813_s1 + $0x48] sm:$0xff] (!%p150_p6)   ;;  %v1385_v8 = vld [vmem:[%s1813_s1 + $0x50] sm:$0xff] (!%p150_p6)   ;;  %s1630_s30 = smul.u32 (!%p150_p6), 11, %s1568_s15  ;;  %s175_s5 = sand.u32 (!%p150_p6), 1, %s1493_s12   ;;  %vm816_vm0 = vcmask (!%p150_p6), 519168  }
   0xb   : > { %153 = sbr.rel (%p150_p6) target bundleno = 377 (0x179), region = 32  ;;  %v1378_v1 = vld [vmem:[%s1813_s1 + $0xc0] sm:$0xff] (!%p150_p6)   ;;  %1183 = vmatprep.subr.bf16.mxu0 (!%p150_p6), %v1377_v0  ;;  %v1382_v5 = vld [vmem:[%s1813_s1 + $0xc8] sm:$0xff] (!%p150_p6)   ;;  %v1386_v9 = vld [vmem:[%s1813_s1 + $0xd0] sm:$0xff] (!%p150_p6)  }
   0xc   : > { %v1379_v2 = vld [vmem:[%s1813_s1] sm:$0xff] (!%p150_p6)   ;;  %1235 = vmatprep.subr.bf16.mxu1 (!%p150_p6), %v1378_v1  ;;  %v1383_v6 = vld [vmem:[%s1813_s1 + $0x8] sm:$0xff] (!%p150_p6)   ;;  %v1387_v10 = vld [vmem:[%s1813_s1 + $0x10] sm:$0xff] (!%p150_p6)   ;;  %p184_p7 = scmp.lt.s32.totalorder (!%p150_p6), %s1630_s30, 20  ;;  %s1287_s6 = smul.u32 (!%p150_p6), 44, %s175_s5 }
   0xd   : > { %v1380_v3 = vld [vmem:[%s1813_s1 + $0x80] sm:$0xff] (!%p150_p6)   ;;  %1184 = vmatpush3.bf16.msra.mxu0 (!%p150_p6), %v1379_v2  ;;  %v1384_v7 = vld [vmem:[%s1813_s1 + $0x88] sm:$0xff] (!%p150_p6)   ;;  %v1388_v11 = vld [vmem:[%s1813_s1 + $0x90] sm:$0xff] (!%p150_p6)  }
   0xe   : > { %1236 = vmatpush3.bf16.msra.mxu1 (!%p150_p6), %v1380_v3  ;;  %1185 = vmatprep.subr.bf16.mxu0 (!%p150_p6), %v1381_v4  ;;  %v1389_v12 = vld [vmem:[%s1813_s1 + $0x58] sm:$0xff] (!%p150_p6)   ;;  %v1393_v16 = vld [vmem:[%s1813_s1 + $0x60] sm:$0xff] (!%p150_p6)   ;;  %v1397_v20 = vld [vmem:[%s1813_s1 + $0x68] sm:$0xff] (!%p150_p6)   ;;  %s1720_s12 = scalar_lea.vmem (!%p150_p6), [#allocation2], %s1287_s6  }
   0xf   : > { %1237 = vmatprep.subr.bf16.mxu1 (!%p150_p6), %v1382_v5  ;;  %v1390_v13 = vld [vmem:[%s1813_s1 + $0xd8] sm:$0xff] (!%p150_p6)   ;;  %v1394_v17 = vld [vmem:[%s1813_s1 + $0xe0] sm:$0xff] (!%p150_p6)   ;;  %v1398_v21 = vld [vmem:[%s1813_s1 + $0xe8] sm:$0xff] (!%p150_p6)  }
  0x10   : > { %v1391_v14 = vld [vmem:[%s1813_s1 + $0x18] sm:$0xff] (!%p150_p6)   ;;  %v1395_v18 = vld [vmem:[%s1813_s1 + $0x20] sm:$0xff] (!%p150_p6)   ;;  %v1399_v22 = vld [vmem:[%s1813_s1 + $0x28] sm:$0xff] (!%p150_p6)  }
  0x11   : > { %1186 = vmatpush3.bf16.msra.mxu0 (!%p150_p6), %v1383_v6  ;;  %v1392_v15 = vld [vmem:[%s1813_s1 + $0x98] sm:$0xff] (!%p150_p6)   ;;  %v1396_v19 = vld [vmem:[%s1813_s1 + $0xa0] sm:$0xff] (!%p150_p6)   ;;  %v1400_v23 = vld [vmem:[%s1813_s1 + $0xa8] sm:$0xff] (!%p150_p6)  }
  0x12   : > { %1238 = vmatpush3.bf16.msra.mxu1 %v1384_v7  ;;  %1187 = vmatprep.subr.bf16.mxu0 %v1385_v8  ;;  %s185_s26 = scalar_select %p184_p7, %s1630_s30, 20  ;;  %v1401_v24 = vld [vmem:[%s1813_s1 + $0x70] sm:$0xff]   ;;  %v1405_v28 = vld [vmem:[%s1813_s1 + $0x78] sm:$0xff]   ;;  %v1715_v60 = vld [vmem:[%s1814_s2] ss:$0 sm:$0xff] }
  0x13   : > { %1239 = vmatprep.subr.bf16.mxu1 %v1386_v9  ;;  %v1402_v25 = vld [vmem:[%s1813_s1 + $0xf0] sm:$0xff]   ;;  %v1406_v29 = vld [vmem:[%s1813_s1 + $0xf8] sm:$0xff]   ;;  %s836_s7 = ssub.s32 (%p1580_p4), 21, %s1630_s30  ;;  %s1182_s8 = smul.u32 (%p1580_p4), 44, %s1568_s15 }
  0x14   : > { %v1403_v26 = vld [vmem:[%s1813_s1 + $0x30] sm:$0xff]   ;;  %s1170_s9 = sshll.u32 %s185_s26, 4  ;;  %v1407_v30 = vld [vmem:[%s1813_s1 + $0x38] sm:$0xff]   ;;  %p837_p8 = scmp.lt.s32.totalorder (%p1580_p4), %s836_s7, 11 }
  0x15   : > { %1188 = vmatpush3.bf16.msra.mxu0 %v1387_v10  ;;  %v1404_v27 = vld [vmem:[%s1813_s1 + $0xb0] sm:$0xff]   ;;  %s1682_s24 = scalar_lea.vmem %s1812_s0, %s1170_s9  ;;  %v1408_v31 = vld [vmem:[%s1813_s1 + $0xb8] sm:$0xff]   ;;  %s1760_s11 = scalar_lea.vmem (%p1580_p4), %s1815_s3, %s1182_s8  }
  0x16   : > { %1240 = vmatpush3.bf16.msra.mxu1 %v1388_v11  ;;  %1189 = vmatprep.subr.bf16.mxu0 %v1389_v12  ;;  %v1409_v32 = vld [vmem:[%s1682_s24] ss:$16 sps:$4 sm:$0xff]   ;;  %v1411_v33 = vld [vmem:[%s1682_s24 + $0x4] ss:$16 sps:$4 sm:$0xff]   ;;  %v1412_v34 = vld [vmem:[%s1682_s24 + $0x8] ss:$16 sps:$4 sm:$0xff]  }
  0x17   : > { %1241 = vmatprep.subr.bf16.mxu1 %v1390_v13  ;;  %v1414_v35 = vld [vmem:[%s1682_s24 + $0xc] ss:$16 sps:$4 sm:$0xff]   ;;  %632 = vmatprep.mubr.bf16.mxu0 %v1411_v33  ;;  %v1415_v36 = vld [vmem:[%s1682_s24 + $0x24] ss:$16 sps:$4 sm:$0xff]   ;;  %v1419_v38 = vld [vmem:[%s1682_s24 + $0x20] ss:$16 sps:$4 sm:$0xff]  }
  0x18   : > { %712 = vmatprep.mubr.bf16.mxu1 %v1414_v35  ;;  %v1417_v37 = vld [vmem:[%s1682_s24 + $0x2c] ss:$16 sps:$4 sm:$0xff]   ;;  %v1420_v39 = vld [vmem:[%s1682_s24 + $0x28] ss:$16 sps:$4 sm:$0xff]   ;;  %v1421_v40 = vld [vmem:[%s1682_s24 + $0x44] ss:$16 sps:$4 sm:$0xff]  }
  0x19   : > { %1190 = vmatpush3.bf16.msra.mxu0 %v1391_v14  ;;  %v1423_v41 = vld [vmem:[%s1682_s24 + $0x4c] ss:$16 sps:$4 sm:$0xff]   ;;  %v1425_v42 = vld [vmem:[%s1682_s24 + $0x40] ss:$16 sps:$4 sm:$0xff]   ;;  %v1426_v43 = vld [vmem:[%s1682_s24 + $0x48] ss:$16 sps:$4 sm:$0xff]  }
  0x1a   : > { %1242 = vmatpush3.bf16.msra.mxu1 %v1392_v15  ;;  %1191 = vmatprep.subr.bf16.mxu0 %v1393_v16  ;;  %v1427_v44 = vld [vmem:[%s1682_s24 + $0x64] ss:$16 sps:$4 sm:$0xff]   ;;  %v1429_v45 = vld [vmem:[%s1682_s24 + $0x6c] ss:$16 sps:$4 sm:$0xff]   ;;  %v1431_v46 = vld [vmem:[%s1682_s24 + $0x60] ss:$16 sps:$4 sm:$0xff]  }
  0x1b   : > { %1243 = vmatprep.subr.bf16.mxu1 %v1394_v17  ;;  %v1432_v47 = vld [vmem:[%s1682_s24 + $0x68] ss:$16 sps:$4 sm:$0xff]   ;;  %v1433_v48 = vld [vmem:[%s1682_s24 + $0x84] ss:$16 sps:$4 sm:$0xff]   ;;  %v1435_v49 = vld [vmem:[%s1682_s24 + $0x8c] ss:$16 sps:$4 sm:$0xff]  }
  0x1c   : > { %v221_v50 = vld [vmem:[%s1682_s24 + $0xa0] sm:$0xff]  ;;  %v222_v51 = vld [vmem:[%s1682_s24 + $0xa8] sm:$0xff] }
  0x1d   : > { %1192 = vmatpush3.bf16.msra.mxu0 %v1395_v18  ;;  %v1437_v52 = vld [vmem:[%s1682_s24 + $0x80] ss:$16 sps:$4 sm:$0xff]   ;;  %v1438_v53 = vld [vmem:[%s1682_s24 + $0x88] ss:$16 sps:$4 sm:$0xff]   ;;  %v1112_v54 = vcombine.high %v221_v50, %v221_v50  ;;  %v1114_v55 = vcombine.high %v222_v51, %v222_v51  ;;  %v1111_v56 = vcombine.low %v221_v50, %v221_v50  ;;  %v1113_v57 = vcombine.low %v222_v51, %v222_v51 }
  0x1e   : > { %1244 = vmatpush3.bf16.msra.mxu1 %v1396_v19  ;;  %1193 = vmatprep.subr.bf16.mxu0 %v1397_v20 }
  0x1f   : > { %1245 = vmatprep.subr.bf16.mxu1 %v1398_v21 }
  0x21   : > { %1194 = vmatpush3.bf16.msra.mxu0 %v1399_v22 }
  0x22   : > { %1246 = vmatpush3.bf16.msra.mxu1 %v1400_v23  ;;  %1195 = vmatprep.subr.bf16.mxu0 %v1401_v24 }
  0x23   : > { %1247 = vmatprep.subr.bf16.mxu1 %v1402_v25 }
  0x25   : > { %1196 = vmatpush3.bf16.msra.mxu0 %v1403_v26 }
  0x26   : > { %1248 = vmatpush3.bf16.msra.mxu1 %v1404_v27  ;;  %1197 = vmatprep.subr.bf16.mxu0 %v1405_v28 }
  0x27   : > { %1249 = vmatprep.subr.bf16.mxu1 %v1406_v29 }
  0x29   : > { %1198 = vmatpush3.bf16.msra.mxu0 %v1407_v30 }
  0x2a   : > { %1250 = vmatpush3.bf16.msra.mxu1 %v1408_v31 }
  0x2c   : > { %633 = vmatmul.mubr.bf16.vlgmr.msra.gmra.mrb[0].mxu0 %v1409_v32 }
  0x2d   : > { %713 = vmatmul.mubr.bf16.vlgmr.msra.gmra.mrb[0].mxu1 %v1412_v34  ;;  %640 = vmatprep.mubr.bf16.mxu0 %v1415_v36 }
  0x2e   : > { %720 = vmatprep.mubr.bf16.mxu1 %v1417_v37 }
  0x34   : > { %641 = vmatmul.mubr.bf16.gmra.mrb[4].mxu0 %v1419_v38 }
  0x35   : > { %721 = vmatmul.mubr.bf16.gmra.mrb[4].mxu1 %v1420_v39  ;;  %648 = vmatprep.mubr.bf16.mxu0 %v1421_v40 }
  0x36   : > { %728 = vmatprep.mubr.bf16.mxu1 %v1423_v41 }
  0x3c   : > { %649 = vmatmul.mubr.bf16.gmra.mrb[8].mxu0 %v1425_v42 }
  0x3d   : > { %729 = vmatmul.mubr.bf16.gmra.mrb[8].mxu1 %v1426_v43  ;;  %656 = vmatprep.mubr.bf16.mxu0 %v1427_v44 }
  0x3e   : > { %736 = vmatprep.mubr.bf16.mxu1 %v1429_v45 }
  0x44   : > { %657 = vmatmul.mubr.bf16.gmra.mrb[12].mxu0 %v1431_v46 }
  0x45   : > { %737 = vmatmul.mubr.bf16.gmra.mrb[12].mxu1 %v1432_v47  ;;  %664 = vmatprep.mubr.bf16.mxu0 %v1433_v48 }
  0x46   : > { %744 = vmatprep.mubr.bf16.mxu1 %v1435_v49 }
  0x4c   : > { %665 = vmatmul.mubr.bf16.gmra.mrb[16].mxu0 %v1437_v52 }
  0x4d   : > { %745 = vmatmul.mubr.bf16.gmra.mrb[16].mxu1 %v1438_v53  ;;  %672 = vmatprep.mubr.bf16.mxu0 %v1112_v54 }
  0x4e   : > { %752 = vmatprep.mubr.bf16.mxu1 %v1114_v55 }
  0x54   : > { %673 = vmatmul.mubr.bf16.gmra.mrb[20].mxu0 %v1111_v56 }
  0x55   : > { %753 = vmatmul.mubr.bf16.gmra.mrb[20].mxu1 %v1113_v57 }
  0xff   : > { %v1199_v58 = vpop.f32.mrb[0].mxu0 }
 0x100   : > { %v1251_v59 = vpop.f32.mrb[0].mxu1  ;;  %v1200_v61 = vpop.f32.mrb[1].mxu0 }
 0x101   : > { %v1201_v62 = vadd.f32 %v1200_v61, %v1199_v58  ;;  %v1252_v63 = vpop.f32.mrb[1].mxu1  ;;  %v1202_v0 = vpop.f32.mrb[2].mxu0 }
 0x102   : > { %v1253_v1 = vadd.f32 %v1252_v63, %v1251_v59  ;;  %v1254_v2 = vpop.f32.mrb[2].mxu1  ;;  %v1203_v3 = vpop.f32.mrb[3].mxu0 }
 0x103   : > { %v635_v4 = vadd.f32 %v1201_v62, %v1715_v60  ;;  %v1204_v5 = vadd.f32 %v1203_v3, %v1202_v0  ;;  %v1255_v6 = vpop.f32.mrb[3].mxu1 }
 0x104   : > { %v1256_v7 = vadd.f32 %v1255_v6, %v1254_v2 }
 0x105   : > { %v715_v8 = vadd.f32 %v1253_v1, %v635_v4  ;;  %v638_v9 = vadd.f32 %v1204_v5, %v1715_v60 }
 0x107   : > { %v760_v10 = vmax.f32 %v715_v8, 0.0  ;;  %v718_v11 = vadd.f32 %v1256_v7, %v638_v9  ;;  %v1205_v12 = vpop.f32.mrb[4].mxu0 }
 0x108   : > { %v1257_v13 = vpop.f32.mrb[4].mxu1  ;;  %v1206_v14 = vpop.f32.mrb[5].mxu0 }
 0x109   : > { %v1171_v15 = vpack.c.bf16 %v760_v10, %v760_v10  ;;  %v761_v16 = vmax.f32 %v718_v11, 0.0  ;;  %v1207_v17 = vadd.f32 %v1206_v14, %v1205_v12  ;;  %v1258_v18 = vpop.f32.mrb[5].mxu1  ;;  %v1208_v19 = vpop.f32.mrb[6].mxu0 }
 0x10a   : > { %v1259_v20 = vadd.f32 %v1258_v18, %v1257_v13  ;;  %v1260_v21 = vpop.f32.mrb[6].mxu1  ;;  %v1209_v22 = vpop.f32.mrb[7].mxu0 }
 0x10b   : > { %817 = vst.msk [vmem:[%s1720_s12] sm:$0xf] %vm816_vm0, %v1171_v15  ;;  %v1172_v23 = vpack.c.bf16 %v761_v16, %v761_v16  ;;  %v643_v24 = vadd.f32 %v1207_v17, %v1715_v60  ;;  %v1210_v25 = vadd.f32 %v1209_v22, %v1208_v19  ;;  %v1261_v26 = vpop.f32.mrb[7].mxu1 }
 0x10c   : > { %v1262_v27 = vadd.f32 %v1261_v26, %v1260_v21 }
 0x10d   : > { %818 = vst.msk [vmem:[%s1720_s12 + $0x4] sm:$0xf] %vm816_vm0, %v1172_v23  ;;  %v723_v28 = vadd.f32 %v1259_v20, %v643_v24  ;;  %v646_v29 = vadd.f32 %v1210_v25, %v1715_v60 }
 0x10f   : > { %v762_v30 = vmax.f32 %v723_v28, 0.0  ;;  %v726_v31 = vadd.f32 %v1262_v27, %v646_v29  ;;  %v1211_v32 = vpop.f32.mrb[8].mxu0 }
 0x110   : > { %v1263_v33 = vpop.f32.mrb[8].mxu1  ;;  %v1212_v34 = vpop.f32.mrb[9].mxu0 }
 0x111   : > { %v1173_v35 = vpack.c.bf16 %v762_v30, %v762_v30  ;;  %v763_v36 = vmax.f32 %v726_v31, 0.0  ;;  %v1213_v37 = vadd.f32 %v1212_v34, %v1211_v32  ;;  %v1264_v38 = vpop.f32.mrb[9].mxu1  ;;  %v1214_v39 = vpop.f32.mrb[10].mxu0 }
 0x112   : > { %v1265_v40 = vadd.f32 %v1264_v38, %v1263_v33  ;;  %v1266_v41 = vpop.f32.mrb[10].mxu1  ;;  %v1215_v42 = vpop.f32.mrb[11].mxu0 }
 0x113   : > { %819 = vst.msk [vmem:[%s1720_s12 + $0x8] sm:$0xf] %vm816_vm0, %v1173_v35  ;;  %v1174_v43 = vpack.c.bf16 %v763_v36, %v763_v36  ;;  %v651_v44 = vadd.f32 %v1213_v37, %v1715_v60  ;;  %v1216_v45 = vadd.f32 %v1215_v42, %v1214_v39  ;;  %v1267_v46 = vpop.f32.mrb[11].mxu1 }
 0x114   : > { %v1268_v47 = vadd.f32 %v1267_v46, %v1266_v41 }
 0x115   : > { %820 = vst.msk [vmem:[%s1720_s12 + $0xc] sm:$0xf] %vm816_vm0, %v1174_v43  ;;  %v731_v48 = vadd.f32 %v1265_v40, %v651_v44  ;;  %v654_v49 = vadd.f32 %v1216_v45, %v1715_v60 }
 0x117   : > { %v764_v50 = vmax.f32 %v731_v48, 0.0  ;;  %v734_v51 = vadd.f32 %v1268_v47, %v654_v49  ;;  %v1217_v52 = vpop.f32.mrb[12].mxu0 }
 0x118   : > { %v1269_v53 = vpop.f32.mrb[12].mxu1  ;;  %v1218_v54 = vpop.f32.mrb[13].mxu0 }
 0x119   : > { %v1175_v55 = vpack.c.bf16 %v764_v50, %v764_v50  ;;  %v765_v56 = vmax.f32 %v734_v51, 0.0  ;;  %v1219_v57 = vadd.f32 %v1218_v54, %v1217_v52  ;;  %v1270_v58 = vpop.f32.mrb[13].mxu1  ;;  %v1220_v59 = vpop.f32.mrb[14].mxu0 }
 0x11a   : > { %v1271_v61 = vadd.f32 %v1270_v58, %v1269_v53  ;;  %v1272_v62 = vpop.f32.mrb[14].mxu1  ;;  %v1221_v63 = vpop.f32.mrb[15].mxu0 }
 0x11b   : > { %821 = vst.msk [vmem:[%s1720_s12 + $0x10] sm:$0xf] %vm816_vm0, %v1175_v55  ;;  %v1176_v0 = vpack.c.bf16 %v765_v56, %v765_v56  ;;  %v659_v1 = vadd.f32 %v1219_v57, %v1715_v60  ;;  %v1222_v2 = vadd.f32 %v1221_v63, %v1220_v59  ;;  %v1273_v3 = vpop.f32.mrb[15].mxu1 }
 0x11c   : > { %v1274_v4 = vadd.f32 %v1273_v3, %v1272_v62 }
 0x11d   : > { %822 = vst.msk [vmem:[%s1720_s12 + $0x14] sm:$0xf] %vm816_vm0, %v1176_v0  ;;  %v739_v5 = vadd.f32 %v1271_v61, %v659_v1  ;;  %v662_v6 = vadd.f32 %v1222_v2, %v1715_v60 }
 0x11f   : > { %v766_v7 = vmax.f32 %v739_v5, 0.0  ;;  %v742_v8 = vadd.f32 %v1274_v4, %v662_v6  ;;  %v1223_v9 = vpop.f32.mrb[16].mxu0 }
 0x120   : > { %v1275_v10 = vpop.f32.mrb[16].mxu1  ;;  %v1224_v11 = vpop.f32.mrb[17].mxu0 }
 0x121   : > { %v1177_v12 = vpack.c.bf16 %v766_v7, %v766_v7  ;;  %v767_v13 = vmax.f32 %v742_v8, 0.0  ;;  %v1225_v14 = vadd.f32 %v1224_v11, %v1223_v9  ;;  %v1276_v15 = vpop.f32.mrb[17].mxu1  ;;  %v1226_v16 = vpop.f32.mrb[18].mxu0 }
 0x122   : > { %v1277_v17 = vadd.f32 %v1276_v15, %v1275_v10  ;;  %v1278_v18 = vpop.f32.mrb[18].mxu1  ;;  %v1227_v19 = vpop.f32.mrb[19].mxu0 }
 0x123   : > { %823 = vst.msk [vmem:[%s1720_s12 + $0x18] sm:$0xf] %vm816_vm0, %v1177_v12  ;;  %v1178_v20 = vpack.c.bf16 %v767_v13, %v767_v13  ;;  %v667_v21 = vadd.f32 %v1225_v14, %v1715_v60  ;;  %v1228_v22 = vadd.f32 %v1227_v19, %v1226_v16  ;;  %v1279_v23 = vpop.f32.mrb[19].mxu1 }
 0x124   : > { %v1280_v24 = vadd.f32 %v1279_v23, %v1278_v18 }
 0x125   : > { %824 = vst.msk [vmem:[%s1720_s12 + $0x1c] sm:$0xf] %vm816_vm0, %v1178_v20  ;;  %v747_v25 = vadd.f32 %v1277_v17, %v667_v21  ;;  %v670_v26 = vadd.f32 %v1228_v22, %v1715_v60 }
 0x127   : > { %v768_v27 = vmax.f32 %v747_v25, 0.0  ;;  %v750_v28 = vadd.f32 %v1280_v24, %v670_v26  ;;  %v1229_v29 = vpop.f32.mrb[20].mxu0 }
 0x128   : > { %v1281_v30 = vpop.f32.mrb[20].mxu1  ;;  %v1230_v31 = vpop.f32.mrb[21].mxu0 }
 0x129   : > { %v1179_v32 = vpack.c.bf16 %v768_v27, %v768_v27  ;;  %v769_v33 = vmax.f32 %v750_v28, 0.0  ;;  %v1231_v34 = vadd.f32 %v1230_v31, %v1229_v29  ;;  %v1282_v35 = vpop.f32.mrb[21].mxu1  ;;  %v1232_v36 = vpop.f32.mrb[22].mxu0 }
 0x12a   : > { %v1283_v37 = vadd.f32 %v1282_v35, %v1281_v30  ;;  %v1284_v38 = vpop.f32.mrb[22].mxu1  ;;  %v1233_v39 = vpop.f32.mrb[23].mxu0 }
 0x12b   : > { %825 = vst.msk [vmem:[%s1720_s12 + $0x20] sm:$0xf] %vm816_vm0, %v1179_v32  ;;  %v1180_v40 = vpack.c.bf16 %v769_v33, %v769_v33  ;;  %v675_v41 = vadd.f32 %v1231_v34, %v1715_v60  ;;  %v1285_v42 = vpop.f32.mrb[23].mxu1 }
 0x12d   : > { %826 = vst.msk [vmem:[%s1720_s12 + $0x24] sm:$0xf] %vm816_vm0, %v1180_v40  ;;  %v755_v43 = vadd.f32 %v1283_v37, %v675_v41  ;;  %834 = sbr.rel (!%p1580_p4) target bundleno = 377 (0x179), region = 36 }
 0x12f   : > { %v770_v44 = vmax.f32 %v755_v43, 0.0 }
 0x131   : > { %v1181_v45 = vpack.c.bf16 %v770_v44, %v770_v44 }
 0x133   : > { %827 = vst.msk [vmem:[%s1720_s12 + $0x28] sm:$0xf] %vm816_vm0, %v1181_v45 }
 0x134   : > { %s1824_s7 = smov (!%p837_p8, %s836_s7), 11 }
 0x135   : > { %s1158_s14 = sshll.u32 %s1824_s7, 6 }
 0x136   : > { %p1161_p9 = scmp.eq.s32.totalorder %s1158_s14, 0 }
 0x137   : > { %1443 = sdivrem.u32 (!%p1161_p9), %s1824_s7, 11 }
 0x138   : > { %845 = sbr.rel (%p1161_p9) target bundleno = 377 (0x179), region = 40 }
 0x140   : > { %s1766_s20 = spop.drf %1443 }
 0x141   : > { %p1162_p10 = scmp.le.s32.totalorder %s1766_s20, 0 }
 0x142   : > { %s1817_s15 = smov (!%p1162_p10), %s1760_s11  ;;  %s1818_s30 = smov (!%p1162_p10), %s1720_s12 }
 0x143   : > { %1040 = sbr.rel (%p1162_p10) target bundleno = 348 (0x15c), region = 112  ;;  %s1775_s17 = smov (!%p1162_p10), 0  }
 0x144   : > { %s1777_s18 = smov (!%p1162_p10), 0  }
 0x14a LB: >> { %v862_v60 = vld [vmem:[%s1509_s30] sm:$0xf]  ;;  %v864_v46 = vld [vmem:[%s1509_s30 + $0x4] sm:$0xf]  ;;  %v866_v47 = vld [vmem:[%s1509_s30 + $0x8] sm:$0xf]  ;;  %s1517_s18 = sphi %s1777_s18, %s856_s18   ;;  %s1513_s17 = sphi %s1775_s17, %s1819_s17   ;;  %s1509_s30 = sphi %s1818_s30, %s889_s30   ;;  %s1505_s15 = sphi %s1817_s15, %s890_s15  }
 0x14b   : >> { %863 = vst [vmem:[%s1505_s15] sm:$0xf] %v862_v60  ;;  %865 = vst [vmem:[%s1505_s15 + $0x4] sm:$0xf] %v864_v46  ;;  %v868_v48 = vld [vmem:[%s1509_s30 + $0xc] sm:$0xf]  ;;  %s884_s21 = sadd.s32 1, %s1513_s17 }
 0x14c   : >> { %867 = vst [vmem:[%s1505_s15 + $0x8] sm:$0xf] %v866_v47  ;;  %v870_v49 = vld [vmem:[%s1509_s30 + $0x10] sm:$0xf]  ;;  %v872_v50 = vld [vmem:[%s1509_s30 + $0x14] sm:$0xf]  ;;  %p885_p11 = scmp.ge.s32.totalorder %s884_s21, %s1766_s20 }
 0x14d   : >> { %869 = vst [vmem:[%s1505_s15 + $0xc] sm:$0xf] %v868_v48  ;;  %871 = vst [vmem:[%s1505_s15 + $0x10] sm:$0xf] %v870_v49  ;;  %v874_v51 = vld [vmem:[%s1509_s30 + $0x18] sm:$0xf] }
 0x14e   : >> { %873 = vst [vmem:[%s1505_s15 + $0x14] sm:$0xf] %v872_v50  ;;  %v876_v52 = vld [vmem:[%s1509_s30 + $0x1c] sm:$0xf]  ;;  %v878_v53 = vld [vmem:[%s1509_s30 + $0x20] sm:$0xf] }
 0x14f   : >> { %875 = vst [vmem:[%s1505_s15 + $0x18] sm:$0xf] %v874_v51  ;;  %877 = vst [vmem:[%s1505_s15 + $0x1c] sm:$0xf] %v876_v52  ;;  %v880_v54 = vld [vmem:[%s1509_s30 + $0x24] sm:$0xf] }
 0x150   : >> { %879 = vst [vmem:[%s1505_s15 + $0x20] sm:$0xf] %v878_v53  ;;  %v882_v55 = vld [vmem:[%s1509_s30 + $0x28] sm:$0xf]  ;;  %881 = vst [vmem:[%s1505_s15 + $0x24] sm:$0xf] %v880_v54 }
 0x151   : >> { %883 = vst [vmem:[%s1505_s15 + $0x28] sm:$0xf] %v882_v55  ;;  %s1826_s21 = smov (%p885_p11, %s884_s21), 0  ;;  %s856_s18 = sadd.s32 1, %s1517_s18  }
 0x152   : >> { %s887_s22 = smul.u32 44, %s1826_s21  ;;  %p855_p12 = scmp.ge.s32.totalorder %s856_s18, %s1766_s20 }
 0x153   : >> { %s1819_s17 = smov %s1826_s21 }
 0x154   : >> { %s889_s30 = scalar_lea.vmem %s1720_s12, %s887_s22 [#allocation2]   ;;  %s890_s15 = scalar_lea.vmem %s1760_s11, %s887_s22  }
 0x155   : > { %858 = sbr.rel (!%p855_p12) target bundleno = 330 (0x14a), region = 118 }
 0x15c PF: > { %1445 = sdivrem.u32 %s1824_s7, 11 }
 0x15d   : > { %s1163_s23 = smul.u32 44, %s1766_s20 }
 0x15f   : > { %s895_s24 = scalar_lea.vmem %s1720_s12, %s1163_s23 [#allocation2]   ;;  %s897_s25 = scalar_lea.vmem %s1760_s11, %s1163_s23  }
 0x165   : > { %s1446_s26 = spop.drf %1445 }
 0x166   : > { %p1165_p13 = scmp.le.s32.totalorder %s1446_s26, 0 }
 0x167   : > { %s1519_s27 = smov (!%p1165_p13), %s897_s25   ;;  %s1523_s28 = smov (!%p1165_p13), %s895_s24  }
 0x168   : > { %1054 = sbr.rel (%p1165_p13) target bundleno = 377 (0x179), region = 123  ;;  %s1527_s29 = smov (!%p1165_p13), 0  }
 0x169   : > { %s1531_s4 = smov (!%p1165_p13), 0  }
 0x16f LB: >> { %v907_v56 = vld [vmem:[%s1525_s28] sm:$0xf]  ;;  %s909_s5 = sadd.s32 1, %s1529_s29  ;;  %s901_s4 = sadd.s32 1, %s1533_s4   ;;  %s1533_s4 = sphi %s1531_s4, %s901_s4   ;;  %s1529_s29 = sphi %s1527_s29, %s1528_s29   ;;  %s1525_s28 = sphi %s1523_s28, %s914_s28   ;;  %s1521_s27 = sphi %s1519_s27, %s915_s27  }
 0x170   : >> { %908 = vst [vmem:[%s1521_s27] sm:$0xf] %v907_v56  ;;  %p910_p0 = scmp.ge.s32.totalorder %s909_s5, %s1446_s26  ;;  %p900_p1 = scmp.ge.s32.totalorder %s901_s4, %s1446_s26 }
 0x172   : >> { %s1828_s5 = smov (%p910_p0, %s909_s5), 0  ;;  %903 = sbr.rel (!%p900_p1) target bundleno = 367 (0x16f), region = 129 }
 0x173   : >> { %s1166_s6 = sshll.u32 %s1828_s5, 2  ;;  %s1528_s29 = smov %s1828_s5  }
 0x174   : >> { %s914_s28 = scalar_lea.vmem %s895_s24, %s1166_s6 [#allocation2]   ;;  %s915_s27 = scalar_lea.vmem %s897_s25, %s1166_s6  }
 0x179 PF: > { %p10_p2 = scmp.ge.s32.totalorder %s1570_s16, 4   ;;  %s1820_s12 = smov %s1497_s13 }
 0x17a   : > { %s1821_s13 = smov %s1578_s19  ;;  %s1822_s14 = smov %s1570_s16 }
 0x17b   :  { %12 = sbr.rel (!%p10_p2) target bundleno = 2 (0x2), region = 140 }

// kernel: forward.6
= control target key start
LH: loop header
LB: loop body
LE: loop exit
PB: predicated region body
PF: predicated region fallthrough
CT: control target
= control target key end

     0   :  { %s1568_s12 = smov 0   ;;  %s1570_s13 = smov 0   ;;  %s1809_s0 = inlined_call_operand.vmem [shape: bf16[98,576], index: 0, kind: input, shape index: {}]   ;;  %s1810_s1 = inlined_call_operand.vmem [shape: bf16[576,64], index: 1, kind: input, shape index: {}]   ;;  %s1811_s2 = inlined_call_operand.vmem [shape: f32[1,64], index: 2, kind: input, shape index: {}]   ;;  %s1812_s3 = inlined_call_operand.vmem [shape: bf16[98,64], index: 3, kind: output, shape index: {}]  }
   0x1   :  { %s1572_s14 = smov 0  }
   0x2 LB: > { %s1581_s15 = sadd.s32 4294967295, %s1514_s14   ;;  %s1583_s16 = sadd.s32 1, %s1514_s14   ;;  %s1514_s14 = sphi %s1572_s14, %s1819_s14   ;;  %s1510_s13 = sphi %s1570_s13, %s1818_s13   ;;  %s1506_s12 = sphi %s1568_s12, %s1817_s12  }
   0x3   : > { %s85_s17 = ssub.s32 %s1514_s14, %s1583_s16  ;;  %s88_s18 = sadd.s32 1, %s1510_s13 }
   0x4   : > { %p86_p0 = scmp.eq.s32.totalorder %s85_s17, 0  ;;  %p98_p1 = scmp.ne.s32.totalorder %s1510_s13, %s1506_s12 }
   0x5   : > { %p99_p2 = scmp.eq.s32.totalorder %s1581_s15, 1  ;;  %p1101_p3 = scmp.ge.s32.totalorder %s1514_s14, 1 }
   0x6   : > { %s1591_s19 = scalar_select %p86_p0, %s1510_s13, %s88_s18  }
   0x7   : > { %p1593_p4 = por %p99_p2, %p98_p1  ;;  %p149_p5 = scmp.lt.s32.totalorder %s1514_s14, 3 }
   0x9   : > { %p150_p6 = pnand %p1101_p3, %p149_p5 }
   0xa   : > { %v1394_v0 = vld [vmem:[%s1810_s1 + $0x40] sm:$0xff] (!%p150_p6)   ;;  %v1398_v4 = vld [vmem:[%s1810_s1 + $0x48] sm:$0xff] (!%p150_p6)   ;;  %v1402_v8 = vld [vmem:[%s1810_s1 + $0x50] sm:$0xff] (!%p150_p6)   ;;  %s1640_s28 = smul.u32 (!%p150_p6), 7, %s1581_s15  ;;  %vm609_vm0 = vcmask (!%p150_p6), 523264   ;;  %s175_s17 = sand.u32 (!%p150_p6), 1, %s1506_s12  }
   0xb   : > { %153 = sbr.rel (%p150_p6) target bundleno = 365 (0x16d), region = 32  ;;  %v1395_v1 = vld [vmem:[%s1810_s1 + $0xc0] sm:$0xff] (!%p150_p6)   ;;  %1191 = vmatprep.subr.bf16.mxu0 (!%p150_p6), %v1394_v0  ;;  %v1399_v5 = vld [vmem:[%s1810_s1 + $0xc8] sm:$0xff] (!%p150_p6)   ;;  %v1403_v9 = vld [vmem:[%s1810_s1 + $0xd0] sm:$0xff] (!%p150_p6)   ;;  %vm850_vm1 = vcmask (!%p150_p6), 519168  }
   0xc   : > { %v1396_v2 = vld [vmem:[%s1810_s1] sm:$0xff] (!%p150_p6)   ;;  %1231 = vmatprep.subr.bf16.mxu1 (!%p150_p6), %v1395_v1  ;;  %v1400_v6 = vld [vmem:[%s1810_s1 + $0x8] sm:$0xff] (!%p150_p6)   ;;  %v1404_v10 = vld [vmem:[%s1810_s1 + $0x10] sm:$0xff] (!%p150_p6)   ;;  %p184_p7 = scmp.lt.s32.totalorder (!%p150_p6), %s1640_s28, 12  ;;  %s1303_s18 = smul.u32 (!%p150_p6), 28, %s175_s17 }
   0xd   : > { %v1397_v3 = vld [vmem:[%s1810_s1 + $0x80] sm:$0xff] (!%p150_p6)   ;;  %1192 = vmatpush3.bf16.msra.mxu0 (!%p150_p6), %v1396_v2  ;;  %v1401_v7 = vld [vmem:[%s1810_s1 + $0x88] sm:$0xff] (!%p150_p6)   ;;  %v1405_v11 = vld [vmem:[%s1810_s1 + $0x90] sm:$0xff] (!%p150_p6)  }
   0xe   : > { %1232 = vmatpush3.bf16.msra.mxu1 (!%p150_p6), %v1397_v3  ;;  %1193 = vmatprep.subr.bf16.mxu0 (!%p150_p6), %v1398_v4  ;;  %v1406_v12 = vld [vmem:[%s1810_s1 + $0x58] sm:$0xff] (!%p150_p6)   ;;  %v1410_v16 = vld [vmem:[%s1810_s1 + $0x60] sm:$0xff] (!%p150_p6)   ;;  %v1414_v20 = vld [vmem:[%s1810_s1 + $0x68] sm:$0xff] (!%p150_p6)   ;;  %s1737_s12 = scalar_lea.vmem (!%p150_p6), [#allocation2], %s1303_s18  }
   0xf   : > { %1233 = vmatprep.subr.bf16.mxu1 (!%p150_p6), %v1399_v5  ;;  %v1407_v13 = vld [vmem:[%s1810_s1 + $0xd8] sm:$0xff] (!%p150_p6)   ;;  %v1411_v17 = vld [vmem:[%s1810_s1 + $0xe0] sm:$0xff] (!%p150_p6)   ;;  %v1415_v21 = vld [vmem:[%s1810_s1 + $0xe8] sm:$0xff] (!%p150_p6)  }
  0x10   : > { %v1408_v14 = vld [vmem:[%s1810_s1 + $0x18] sm:$0xff] (!%p150_p6)   ;;  %v1412_v18 = vld [vmem:[%s1810_s1 + $0x20] sm:$0xff] (!%p150_p6)   ;;  %v1416_v22 = vld [vmem:[%s1810_s1 + $0x28] sm:$0xff] (!%p150_p6)  }
  0x11   : > { %1194 = vmatpush3.bf16.msra.mxu0 (!%p150_p6), %v1400_v6  ;;  %v1409_v15 = vld [vmem:[%s1810_s1 + $0x98] sm:$0xff] (!%p150_p6)   ;;  %v1413_v19 = vld [vmem:[%s1810_s1 + $0xa0] sm:$0xff] (!%p150_p6)   ;;  %v1417_v23 = vld [vmem:[%s1810_s1 + $0xa8] sm:$0xff] (!%p150_p6)  }
  0x12   : > { %1234 = vmatpush3.bf16.msra.mxu1 %v1401_v7  ;;  %1195 = vmatprep.subr.bf16.mxu0 %v1402_v8  ;;  %s185_s24 = scalar_select %p184_p7, %s1640_s28, 12  ;;  %v1418_v24 = vld [vmem:[%s1810_s1 + $0x70] sm:$0xff]   ;;  %v1422_v28 = vld [vmem:[%s1810_s1 + $0x78] sm:$0xff]   ;;  %v1432_v36 = vld [vmem:[%s1810_s1 + $0x100] sm:$0xff]  }
  0x13   : > { %1235 = vmatprep.subr.bf16.mxu1 %v1403_v9  ;;  %v1419_v25 = vld [vmem:[%s1810_s1 + $0xf0] sm:$0xff]   ;;  %v1423_v29 = vld [vmem:[%s1810_s1 + $0xf8] sm:$0xff]   ;;  %v1439_v39 = vld [vmem:[%s1810_s1 + $0x108] sm:$0xff]   ;;  %s866_s21 = ssub.s32 (%p1593_p4), 13, %s1640_s28  ;;  %s1190_s22 = smul.u32 (%p1593_p4), 28, %s1581_s15 }
  0x14   : > { %s1304_s7 = smul.u32 20, %s185_s24  ;;  %v1420_v26 = vld [vmem:[%s1810_s1 + $0x30] sm:$0xff]   ;;  %v1424_v30 = vld [vmem:[%s1810_s1 + $0x38] sm:$0xff]   ;;  %v1103_v60 = vld [vmem:[%s1811_s2] ss:$0 sm:$0xff]  ;;  %p867_p8 = scmp.lt.s32.totalorder (%p1593_p4), %s866_s21, 7 }
  0x15   : > { %1196 = vmatpush3.bf16.msra.mxu0 %v1404_v10  ;;  %v1421_v27 = vld [vmem:[%s1810_s1 + $0xb0] sm:$0xff]   ;;  %v1425_v31 = vld [vmem:[%s1810_s1 + $0xb8] sm:$0xff]   ;;  %s1760_s25 = scalar_lea.vmem (%p1593_p4), %s1812_s3, %s1190_s22  }
  0x16   : > { %1236 = vmatpush3.bf16.msra.mxu1 %v1405_v11  ;;  %1197 = vmatprep.subr.bf16.mxu0 %v1406_v12  ;;  %s1695_s24 = scalar_lea.vmem %s1809_s0, %s1304_s7  ;;  %v1446_v44 = vld [vmem:[%s1810_s1 + $0x110] sm:$0xff]   ;;  %v1451_v45 = vld [vmem:[%s1810_s1 + $0x118] sm:$0xff]  }
  0x17   : > { %1237 = vmatprep.subr.bf16.mxu1 %v1407_v13  ;;  %v1426_v32 = vld [vmem:[%s1695_s24] ss:$20 sps:$4 sm:$0xff]   ;;  %v1428_v33 = vld [vmem:[%s1695_s24 + $0x4] ss:$20 sps:$4 sm:$0xff]   ;;  %v1429_v34 = vld [vmem:[%s1695_s24 + $0x8] ss:$20 sps:$4 sm:$0xff]  }
  0x18   : > { %v1431_v35 = vld [vmem:[%s1695_s24 + $0xc] ss:$20 sps:$4 sm:$0xff]   ;;  %654 = vmatprep.mubr.bf16.mxu0 %v1428_v33  ;;  %v1435_v38 = vld [vmem:[%s1695_s24 + $0x34] ss:$20 sps:$4 sm:$0xff]   ;;  %v1438_v41 = vld [vmem:[%s1695_s24 + $0x30] ss:$20 sps:$4 sm:$0xff]  }
  0x19   : > { %1198 = vmatpush3.bf16.msra.mxu0 %v1408_v14  ;;  %718 = vmatprep.mubr.bf16.mxu1 %v1431_v35  ;;  %v1433_v37 = vld [vmem:[%s1695_s24 + $0x2c] ss:$20 sps:$4 sm:$0xff]   ;;  %v1437_v40 = vld [vmem:[%s1695_s24 + $0x28] ss:$20 sps:$4 sm:$0xff]   ;;  %v1444_v48 = vld [vmem:[%s1695_s24 + $0x50] ss:$20 sps:$4 sm:$0xff]  }
  0x1a   : > { %1238 = vmatpush3.bf16.msra.mxu1 %v1409_v15  ;;  %1199 = vmatprep.subr.bf16.mxu0 %v1410_v16  ;;  %v1440_v42 = vld [vmem:[%s1695_s24 + $0x54] ss:$20 sps:$4 sm:$0xff]   ;;  %v1442_v43 = vld [vmem:[%s1695_s24 + $0x5c] ss:$20 sps:$4 sm:$0xff]   ;;  %v220_v47 = vld [vmem:[%s1695_s24 + $0x80] sm:$0xff] }
  0x1b   : > { %1239 = vmatprep.subr.bf16.mxu1 %v1411_v17  ;;  %v219_v46 = vld [vmem:[%s1695_s24 + $0x78] sm:$0xff]  ;;  %v1122_v51 = vcombine.high %v220_v47, %v220_v47  ;;  %v1121_v53 = vcombine.low %v220_v47, %v220_v47  ;;  %v1452_v54 = vld [vmem:[%s1695_s24 + $0x10] ss:$20 sps:$4 sm:$0xff]   ;;  %v1453_v55 = vld [vmem:[%s1695_s24 + $0x60] ss:$20 sps:$4 sm:$0xff]  }
  0x1c   : > { %v1445_v49 = vld [vmem:[%s1695_s24 + $0x58] ss:$20 sps:$4 sm:$0xff]   ;;  %v1120_v50 = vcombine.high %v219_v46, %v219_v46  ;;  %v1119_v52 = vcombine.low %v219_v46, %v219_v46  ;;  %v1455_v57 = vld [vmem:[%s1695_s24 + $0x88] ss:$0 sps:$4 sm:$0xff]  }
  0x1d   : > { %1200 = vmatpush3.bf16.msra.mxu0 %v1412_v18  ;;  %v1454_v56 = vld [vmem:[%s1695_s24 + $0x38] ss:$20 sps:$4 sm:$0xff]  }
  0x1e   : > { %1240 = vmatpush3.bf16.msra.mxu1 %v1413_v19  ;;  %1201 = vmatprep.subr.bf16.mxu0 %v1414_v20 }
  0x1f   : > { %1241 = vmatprep.subr.bf16.mxu1 %v1415_v21 }
  0x21   : > { %1202 = vmatpush3.bf16.msra.mxu0 %v1416_v22 }
  0x22   : > { %1242 = vmatpush3.bf16.msra.mxu1 %v1417_v23  ;;  %1203 = vmatprep.subr.bf16.mxu0 %v1418_v24 }
  0x23   : > { %1243 = vmatprep.subr.bf16.mxu1 %v1419_v25 }
  0x25   : > { %1204 = vmatpush3.bf16.msra.mxu0 %v1420_v26 }
  0x26   : > { %1244 = vmatpush3.bf16.msra.mxu1 %v1421_v27  ;;  %1205 = vmatprep.subr.bf16.mxu0 %v1422_v28 }
  0x27   : > { %1245 = vmatprep.subr.bf16.mxu1 %v1423_v29 }
  0x29   : > { %1206 = vmatpush3.bf16.msra.mxu0 %v1424_v30 }
  0x2a   : > { %1246 = vmatpush3.bf16.msra.mxu1 %v1425_v31  ;;  %1279 = vmatprep.subr.bf16.mxu0 %v1432_v36 }
  0x2b   : > { %1295 = vmatprep.subr.bf16.mxu1 %v1432_v36 }
  0x2c   : > { %655 = vmatmul.mubr.bf16.vlgmr.msra.gmra.mrb[0].mxu0 %v1426_v32 }
  0x2d   : > { %719 = vmatmul.mubr.bf16.vlgmr.msra.gmra.mrb[0].mxu1 %v1429_v34  ;;  %1280 = vmatpush3.bf16.msra.mxu0 %v1432_v36 }
  0x2e   : > { %1299 = vmatpush3.bf16.msra.mxu1 %v1432_v36  ;;  %662 = vmatprep.mubr.bf16.mxu0 %v1433_v37 }
  0x2f   : > { %726 = vmatprep.mubr.bf16.mxu1 %v1435_v38  ;;  %1281 = vmatprep.subr.bf16.mxu0 %v1439_v39 }
  0x30   : > { %1296 = vmatprep.subr.bf16.mxu1 %v1439_v39 }
  0x31   : > { %1282 = vmatpush3.bf16.msra.mxu0 %v1439_v39 }
  0x32   : > { %1300 = vmatpush3.bf16.msra.mxu1 %v1439_v39  ;;  %1283 = vmatprep.subr.bf16.mxu0 %v1446_v44 }
  0x33   : > { %1297 = vmatprep.subr.bf16.mxu1 %v1446_v44 }
  0x34   : > { %663 = vmatmul.mubr.bf16.gmra.mrb[4].mxu0 %v1437_v40 }
  0x35   : > { %727 = vmatmul.mubr.bf16.gmra.mrb[4].mxu1 %v1438_v41  ;;  %670 = vmatprep.mubr.bf16.mxu0 %v1440_v42 }
  0x36   : > { %734 = vmatprep.mubr.bf16.mxu1 %v1442_v43  ;;  %1284 = vmatpush3.bf16.msra.mxu0 %v1446_v44 }
  0x37   : > { %1301 = vmatpush3.bf16.msra.mxu1 %v1446_v44  ;;  %1285 = vmatprep.subr.bf16.mxu0 %v1451_v45 }
  0x38   : > { %1298 = vmatprep.subr.bf16.mxu1 %v1451_v45 }
  0x3a   : > { %1286 = vmatpush3.bf16.msra.mxu0 %v1451_v45 }
  0x3b   : > { %1302 = vmatpush3.bf16.msra.mxu1 %v1451_v45 }
  0x3c   : > { %671 = vmatmul.mubr.bf16.gmra.mrb[8].mxu0 %v1444_v48 }
  0x3d   : > { %735 = vmatmul.mubr.bf16.gmra.mrb[8].mxu1 %v1445_v49  ;;  %678 = vmatprep.mubr.bf16.mxu0 %v1120_v50 }
  0x3e   : > { %742 = vmatprep.mubr.bf16.mxu1 %v1122_v51 }
  0x44   : > { %679 = vmatmul.mubr.bf16.gmra.mrb[12].mxu0 %v1119_v52 }
  0x45   : > { %743 = vmatmul.mubr.bf16.gmra.mrb[12].mxu1 %v1121_v53  ;;  %1287 = vmatprep.mubr.msk.bf16.mxu0 %vm609_vm0, %v1452_v54 }
  0x46   : > { %1291 = vmatprep.mubr.msk.bf16.mxu1 %vm609_vm0, %v1453_v55 }
  0x4c   : > { %1288 = vmatmul.mubr.msk.bf16.vlgmr.msra.gmra.mrb[16].mxu0 %vm609_vm0, %v1454_v56 }
  0x4d   : > { %1292 = vmatmul.mubr.msk.bf16.vlgmr.msra.gmra.mrb[16].mxu1 %vm609_vm0, %v1455_v57 }
  0xff   : > { %v1207_v58 = vpop.f32.mrb[0].mxu0 }
 0x100   : > { %v1247_v59 = vpop.f32.mrb[0].mxu1  ;;  %v1208_v61 = vpop.f32.mrb[1].mxu0 }
 0x101   : > { %v1209_v62 = vadd.f32 %v1208_v61, %v1207_v58  ;;  %v1248_v63 = vpop.f32.mrb[1].mxu1  ;;  %v1210_v0 = vpop.f32.mrb[2].mxu0 }
 0x102   : > { %v1249_v1 = vadd.f32 %v1248_v63, %v1247_v59  ;;  %v1250_v2 = vpop.f32.mrb[2].mxu1  ;;  %v1211_v3 = vpop.f32.mrb[3].mxu0 }
 0x103   : > { %v657_v4 = vadd.f32 %v1209_v62, %v1103_v60  ;;  %v1212_v5 = vadd.f32 %v1211_v3, %v1210_v0  ;;  %v1251_v6 = vpop.f32.mrb[3].mxu1 }
 0x104   : > { %v1252_v7 = vadd.f32 %v1251_v6, %v1250_v2 }
 0x105   : > { %v660_v8 = vadd.f32 %v1212_v5, %v1103_v60  ;;  %v721_v9 = vadd.f32 %v1249_v1, %v657_v4 }
 0x107   : > { %v1213_v10 = vpop.f32.mrb[4].mxu0  ;;  %v724_v11 = vadd.f32 %v1252_v7, %v660_v8 }
 0x108   : > { %v1253_v12 = vpop.f32.mrb[4].mxu1  ;;  %v1214_v13 = vpop.f32.mrb[5].mxu0 }
 0x109   : > { %v1215_v14 = vadd.f32 %v1214_v13, %v1213_v10  ;;  %v1254_v15 = vpop.f32.mrb[5].mxu1  ;;  %v1216_v16 = vpop.f32.mrb[6].mxu0 }
 0x10a   : > { %v1255_v17 = vadd.f32 %v1254_v15, %v1253_v12  ;;  %v1256_v18 = vpop.f32.mrb[6].mxu1  ;;  %v1217_v19 = vpop.f32.mrb[7].mxu0 }
 0x10b   : > { %v665_v20 = vadd.f32 %v1215_v14, %v1103_v60  ;;  %v1218_v21 = vadd.f32 %v1217_v19, %v1216_v16  ;;  %v1257_v22 = vpop.f32.mrb[7].mxu1 }
 0x10c   : > { %v1258_v23 = vadd.f32 %v1257_v22, %v1256_v18 }
 0x10d   : > { %v668_v24 = vadd.f32 %v1218_v21, %v1103_v60  ;;  %v729_v25 = vadd.f32 %v1255_v17, %v665_v20 }
 0x10f   : > { %v1219_v26 = vpop.f32.mrb[8].mxu0  ;;  %v732_v27 = vadd.f32 %v1258_v23, %v668_v24 }
 0x110   : > { %v1259_v28 = vpop.f32.mrb[8].mxu1  ;;  %v1220_v29 = vpop.f32.mrb[9].mxu0 }
 0x111   : > { %v1221_v30 = vadd.f32 %v1220_v29, %v1219_v26  ;;  %v1260_v31 = vpop.f32.mrb[9].mxu1  ;;  %v1222_v32 = vpop.f32.mrb[10].mxu0 }
 0x112   : > { %v1261_v33 = vadd.f32 %v1260_v31, %v1259_v28  ;;  %v1262_v34 = vpop.f32.mrb[10].mxu1  ;;  %v1223_v35 = vpop.f32.mrb[11].mxu0 }
 0x113   : > { %v673_v36 = vadd.f32 %v1221_v30, %v1103_v60  ;;  %v1224_v37 = vadd.f32 %v1223_v35, %v1222_v32  ;;  %v1263_v38 = vpop.f32.mrb[11].mxu1 }
 0x114   : > { %v1264_v39 = vadd.f32 %v1263_v38, %v1262_v34 }
 0x115   : > { %v676_v40 = vadd.f32 %v1224_v37, %v1103_v60  ;;  %v737_v41 = vadd.f32 %v1261_v33, %v673_v36 }
 0x117   : > { %v1225_v42 = vpop.f32.mrb[12].mxu0  ;;  %v740_v43 = vadd.f32 %v1264_v39, %v676_v40 }
 0x118   : > { %v1265_v44 = vpop.f32.mrb[12].mxu1  ;;  %v1226_v45 = vpop.f32.mrb[13].mxu0 }
 0x119   : > { %v1227_v46 = vadd.f32 %v1226_v45, %v1225_v42  ;;  %v1266_v47 = vpop.f32.mrb[13].mxu1  ;;  %v1228_v48 = vpop.f32.mrb[14].mxu0 }
 0x11a   : > { %v1267_v49 = vadd.f32 %v1266_v47, %v1265_v44  ;;  %v1268_v50 = vpop.f32.mrb[14].mxu1  ;;  %v1229_v51 = vpop.f32.mrb[15].mxu0 }
 0x11b   : > { %v681_v52 = vadd.f32 %v1227_v46, %v1103_v60  ;;  %v1269_v53 = vpop.f32.mrb[15].mxu1 }
 0x11d   : > { %v745_v54 = vadd.f32 %v1267_v49, %v681_v52 }
 0x11f   : > { %v1289_v55 = vpop.f32.mrb[16].mxu0 }
 0x120   : > { %v793_v56 = vadd.f32 %v1289_v55, %v729_v25  ;;  %v1293_v57 = vpop.f32.mrb[16].mxu1  ;;  %v784_v58 = vpop.f32.mrb[17].mxu0 }
 0x121   : > { %v809_v59 = vadd.f32 %v1293_v57, %v745_v54  ;;  %v785_v61 = vadd.f32 %v784_v58, %v721_v9  ;;  %v800_v62 = vpop.f32.mrb[17].mxu1  ;;  %v1290_v63 = vpop.f32.mrb[18].mxu0 }
 0x122   : > { %v816_v0 = vmax.f32 %v793_v56, 0.0  ;;  %v801_v1 = vadd.f32 %v800_v62, %v737_v41  ;;  %v796_v2 = vadd.f32 %v1290_v63, %v732_v27  ;;  %v1294_v3 = vpop.f32.mrb[18].mxu1  ;;  %v787_v4 = vpop.f32.mrb[19].mxu0 }
 0x123   : > { %v820_v5 = vmax.f32 %v809_v59, 0.0  ;;  %v814_v60 = vmax.f32 %v785_v61, 0.0  ;;  %v788_v6 = vadd.f32 %v787_v4, %v724_v11  ;;  %v803_v7 = vpop.f32.mrb[19].mxu1 }
 0x124   : > { %v1185_v8 = vpack.c.bf16 %v816_v0, %v816_v0  ;;  %v818_v10 = vmax.f32 %v801_v1, 0.0  ;;  %v817_v12 = vmax.f32 %v796_v2, 0.0  ;;  %v804_v13 = vadd.f32 %v803_v7, %v740_v43  ;;  %864 = sbr.rel (!%p1593_p4) target bundleno = 365 (0x16d), region = 36 }
 0x125   : > { %v1189_v14 = vpack.c.bf16 %v820_v5, %v820_v5  ;;  %v1183_v15 = vpack.c.bf16 %v814_v60, %v814_v60  ;;  %v815_v16 = vmax.f32 %v788_v6, 0.0 }
 0x126   : > { %853 = vst.msk [vmem:[%s1737_s12 + $0x8] sm:$0xf] %vm850_vm1, %v1185_v8  ;;  %v1187_v9 = vpack.c.bf16 %v818_v10, %v818_v10  ;;  %v1186_v11 = vpack.c.bf16 %v817_v12, %v817_v12  ;;  %v819_v17 = vmax.f32 %v804_v13, 0.0 }
 0x127   : > { %857 = vst.msk [vmem:[%s1737_s12 + $0x18] sm:$0xf] %vm850_vm1, %v1189_v14  ;;  %851 = vst.msk [vmem:[%s1737_s12] sm:$0xf] %vm850_vm1, %v1183_v15  ;;  %v1184_v18 = vpack.c.bf16 %v815_v16, %v815_v16 }
 0x128   : > { %855 = vst.msk [vmem:[%s1737_s12 + $0x10] sm:$0xf] %vm850_vm1, %v1187_v9  ;;  %854 = vst.msk [vmem:[%s1737_s12 + $0xc] sm:$0xf] %vm850_vm1, %v1186_v11  ;;  %v1188_v19 = vpack.c.bf16 %v819_v17, %v819_v17 }
 0x129   : > { %852 = vst.msk [vmem:[%s1737_s12 + $0x4] sm:$0xf] %vm850_vm1, %v1184_v18 }
 0x12a   : > { %856 = vst.msk [vmem:[%s1737_s12 + $0x14] sm:$0xf] %vm850_vm1, %v1188_v19 }
 0x12b   : > { %s1821_s21 = smov (!%p867_p8, %s866_s21), 7 }
 0x12c   : > { %s1171_s26 = sshll.u32 %s1821_s21, 6 }
 0x12d   : > { %p1174_p9 = scmp.eq.s32.totalorder %s1171_s26, 0 }
 0x12e   : > { %1456 = sdivrem.u32 (!%p1174_p9), %s1821_s21, 7 }
 0x12f   : > { %875 = sbr.rel (%p1174_p9) target bundleno = 365 (0x16d), region = 40 }
 0x137   : > { %s1766_s20 = spop.drf %1456 }
 0x138   : > { %p1175_p10 = scmp.le.s32.totalorder %s1766_s20, 0 }
 0x139   : > { %s1814_s15 = smov (!%p1175_p10), %s1760_s25  ;;  %s1815_s28 = smov (!%p1175_p10), %s1737_s12 }
 0x13a   : > { %1054 = sbr.rel (%p1175_p10) target bundleno = 336 (0x150), region = 112  ;;  %s1775_s27 = smov (!%p1175_p10), 0  }
 0x13b   : > { %s1777_s29 = smov (!%p1175_p10), 0  }
 0x141 LB: >> { %v892_v20 = vld [vmem:[%s1522_s28] sm:$0xf]  ;;  %v894_v21 = vld [vmem:[%s1522_s28 + $0x4] sm:$0xf]  ;;  %v896_v22 = vld [vmem:[%s1522_s28 + $0x8] sm:$0xf]  ;;  %s1530_s29 = sphi %s1777_s29, %s886_s29   ;;  %s1526_s27 = sphi %s1775_s27, %s1816_s27   ;;  %s1522_s28 = sphi %s1815_s28, %s911_s28   ;;  %s1518_s15 = sphi %s1814_s15, %s912_s15  }
 0x142   : >> { %893 = vst [vmem:[%s1518_s15] sm:$0xf] %v892_v20  ;;  %895 = vst [vmem:[%s1518_s15 + $0x4] sm:$0xf] %v894_v21  ;;  %v898_v23 = vld [vmem:[%s1522_s28 + $0xc] sm:$0xf]  ;;  %s906_s30 = sadd.s32 1, %s1526_s27 }
 0x143   : >> { %897 = vst [vmem:[%s1518_s15 + $0x8] sm:$0xf] %v896_v22  ;;  %v900_v24 = vld [vmem:[%s1522_s28 + $0x10] sm:$0xf]  ;;  %v902_v25 = vld [vmem:[%s1522_s28 + $0x14] sm:$0xf]  ;;  %p907_p11 = scmp.ge.s32.totalorder %s906_s30, %s1766_s20 }
 0x144   : >> { %899 = vst [vmem:[%s1518_s15 + $0xc] sm:$0xf] %v898_v23  ;;  %901 = vst [vmem:[%s1518_s15 + $0x10] sm:$0xf] %v900_v24  ;;  %v904_v26 = vld [vmem:[%s1522_s28 + $0x18] sm:$0xf] }
 0x145   : >> { %903 = vst [vmem:[%s1518_s15 + $0x14] sm:$0xf] %v902_v25  ;;  %905 = vst [vmem:[%s1518_s15 + $0x18] sm:$0xf] %v904_v26  ;;  %s1823_s30 = smov (%p907_p11, %s906_s30), 0  ;;  %s886_s29 = sadd.s32 1, %s1530_s29  }
 0x146   : >> { %s909_s4 = smul.u32 28, %s1823_s30  ;;  %p885_p12 = scmp.ge.s32.totalorder %s886_s29, %s1766_s20 }
 0x147   : >> { %s1816_s27 = smov %s1823_s30 }
 0x148   : >> { %s911_s28 = scalar_lea.vmem %s1737_s12, %s909_s4 [#allocation2]   ;;  %s912_s15 = scalar_lea.vmem %s1760_s25, %s909_s4  }
 0x149   : > { %888 = sbr.rel (!%p885_p12) target bundleno = 321 (0x141), region = 118 }
 0x150 PF: > { %1458 = sdivrem.u32 %s1821_s21, 7 }
 0x151   : > { %s1176_s5 = smul.u32 28, %s1766_s20 }
 0x153   : > { %s917_s6 = scalar_lea.vmem %s1737_s12, %s1176_s5 [#allocation2]   ;;  %s919_s7 = scalar_lea.vmem %s1760_s25, %s1176_s5  }
 0x159   : > { %s1459_s8 = spop.drf %1458 }
 0x15a   : > { %p1178_p13 = scmp.le.s32.totalorder %s1459_s8, 0 }
 0x15b   : > { %s1532_s9 = smov (!%p1178_p13), %s919_s7   ;;  %s1536_s10 = smov (!%p1178_p13), %s917_s6  }
 0x15c   : > { %1068 = sbr.rel (%p1178_p13) target bundleno = 365 (0x16d), region = 123  ;;  %s1540_s11 = smov (!%p1178_p13), 0  }
 0x15d   : > { %s1544_s14 = smov (!%p1178_p13), 0  }
 0x163 LB: >> { %v929_v27 = vld [vmem:[%s1538_s10] sm:$0xf]  ;;  %s931_s17 = sadd.s32 1, %s1542_s11  ;;  %s923_s14 = sadd.s32 1, %s1546_s14   ;;  %s1546_s14 = sphi %s1544_s14, %s923_s14   ;;  %s1542_s11 = sphi %s1540_s11, %s1541_s11   ;;  %s1538_s10 = sphi %s1536_s10, %s936_s10   ;;  %s1534_s9 = sphi %s1532_s9, %s937_s9  }
 0x164   : >> { %930 = vst [vmem:[%s1534_s9] sm:$0xf] %v929_v27  ;;  %p932_p0 = scmp.ge.s32.totalorder %s931_s17, %s1459_s8  ;;  %p922_p1 = scmp.ge.s32.totalorder %s923_s14, %s1459_s8 }
 0x166   : >> { %s1825_s17 = smov (%p932_p0, %s931_s17), 0  ;;  %925 = sbr.rel (!%p922_p1) target bundleno = 355 (0x163), region = 129 }
 0x167   : >> { %s1179_s18 = sshll.u32 %s1825_s17, 2  ;;  %s1541_s11 = smov %s1825_s17  }
 0x168   : >> { %s936_s10 = scalar_lea.vmem %s917_s6, %s1179_s18 [#allocation2]   ;;  %s937_s9 = scalar_lea.vmem %s919_s7, %s1179_s18  }
 0x16d PF: > { %p10_p2 = scmp.ge.s32.totalorder %s1583_s16, 4   ;;  %s1817_s12 = smov %s1510_s13 }
 0x16e   : > { %s1818_s13 = smov %s1591_s19  ;;  %s1819_s14 = smov %s1583_s16 }
 0x16f   :  { %12 = sbr.rel (!%p10_p2) target bundleno = 2 (0x2), region = 140 }

// kernel: forward.7
= control target key start
LH: loop header
LB: loop body
LE: loop exit
PB: predicated region body
PF: predicated region fallthrough
CT: control target
= control target key end

     0   :  { %v453_v7 = vlaneseq  ;;  %v8372_v8 = vmov 1966171168   ;;  %vm2612_vm0 = vcmask 523264   ;;  %vm6327_vm1 = vcmask 41984   ;;  %s11051_s1 = inlined_call_operand.vmem [shape: bf16[3136,256], index: 1, kind: input, shape index: {}]   ;;  %s11052_s0 = inlined_call_operand.vmem [shape: bf16[2,3136], index: 0, kind: input, shape index: {}]   ;;  %s11053_s3 = inlined_call_operand.vmem [shape: bf16[256,448], index: 3, kind: input, shape index: {}]   ;;  %s11054_s5 = inlined_call_operand.vmem [shape: bf16[448,448], index: 5, kind: input, shape index: {}]   ;;  %s11055_s2 = inlined_call_operand.vmem [shape: f32[1,256], index: 2, kind: input, shape index: {}]   ;;  %s11056_s4 = inlined_call_operand.vmem [shape: f32[1,448], index: 4, kind: input, shape index: {}]   ;;  %s11057_s7 = inlined_call_operand.vmem [shape: bf16[448,6], index: 7, kind: input, shape index: {}]   ;;  %s11058_s9 = inlined_call_operand.vmem [shape: bf16[448,448], index: 9, kind: input, shape index: {}]   ;;  %s11059_s6 = inlined_call_operand.vmem [shape: f32[1,448], index: 6, kind: input, shape index: {}]   ;;  %s11060_s11 = inlined_call_operand.vmem [shape: bf16[448,1], index: 11, kind: input, shape index: {}]   ;;  %s11061_s8 = inlined_call_operand.vmem [shape: f32[1,6], index: 8, kind: input, shape index: {}]   ;;  %s11062_s15 = inlined_call_operand.vmem [shape: f32[2,8], index: 15, kind: output, shape index: {}]   ;;  %s11063_s10 = inlined_call_operand.vmem [shape: f32[1,448], index: 10, kind: input, shape index: {}]   ;;  %s11064_s13 = inlined_call_operand.vmem [shape: bf16[448,1], index: 13, kind: input, shape index: {}]   ;;  %s11065_s12 = inlined_call_operand.<no memory space> [shape: f32[1,1], index: 12, kind: input, shape index: {}]   ;;  %s11066_s14 = inlined_call_operand.<no memory space> [shape: f32[1,1], index: 14, kind: input, shape index: {}]  }
   0x1   :  { %v7265_v0 = vld [vmem:[%s11051_s1 + $0x4] ss:$8 sps:$4 sm:$0xff]   ;;  %v7267_v1 = vld [vmem:[%s11051_s1] ss:$8 sps:$4 sm:$0xff]   ;;  %v7268_v2 = vld [vmem:[%s11051_s1 + $0x14] ss:$8 sps:$4 sm:$0xff]   ;;  %v469_v9 = vunpack.c.l.s4 %v8372_v8 }
   0x2   :  { %2616 = vmatprep.subr.bf16.mxu0 %v7265_v0  ;;  %v7270_v3 = vld [vmem:[%s11051_s1 + $0x10] ss:$8 sps:$4 sm:$0xff]   ;;  %v7271_v4 = vld [vmem:[%s11051_s1 + $0x24] ss:$8 sps:$4 sm:$0xff]   ;;  %v7273_v5 = vld [vmem:[%s11051_s1 + $0x20] ss:$8 sps:$4 sm:$0xff]  }
   0x3   :  { %2617 = vmatpush1.bf16.msra.mxu0 %v7267_v1  ;;  %v7274_v6 = vld [vmem:[%s11051_s1 + $0x34] ss:$8 sps:$4 sm:$0xff]   ;;  %v7276_v10 = vld [vmem:[%s11051_s1 + $0x30] ss:$8 sps:$4 sm:$0xff]   ;;  %v7277_v11 = vld [vmem:[%s11051_s1 + $0x44] ss:$8 sps:$4 sm:$0xff]   ;;  %v470_v13 = vunpack.c.0.s8 %v469_v9 }
   0x4   :  { %2618 = vmatprep.subr.bf16.mxu0 %v7268_v2  ;;  %v8483_v12 = vshrl.u32 %v453_v7, 7  ;;  %v7279_v14 = vld [vmem:[%s11051_s1 + $0x40] ss:$8 sps:$4 sm:$0xff]   ;;  %v7280_v15 = vld [vmem:[%s11051_s1 + $0x54] ss:$8 sps:$4 sm:$0xff]   ;;  %vm6333_vm2 = vcmask 50224  }
   0x5   :  { %v7282_v17 = vld [vmem:[%s11051_s1 + $0x50] ss:$8 sps:$4 sm:$0xff]   ;;  %v7283_v18 = vld [vmem:[%s11051_s1 + $0x64] ss:$8 sps:$4 sm:$0xff]   ;;  %v7285_v21 = vld [vmem:[%s11051_s1 + $0x60] ss:$8 sps:$4 sm:$0xff]  }
   0x6   :  { %v8492_v16 = vsub.s32 %v470_v13, %v8483_v12  ;;  %v8503_v19 = vld [vmem:[%s11052_s0] sm:$0xff]  ;;  %v7286_v22 = vld [vmem:[%s11051_s1 + $0x74] ss:$8 sps:$4 sm:$0xff]   ;;  %v7288_v25 = vld [vmem:[%s11051_s1 + $0x70] ss:$8 sps:$4 sm:$0xff]   ;;  %vm6339_vm3 = vcmask 58424  }
   0x7   :  { %2619 = vmatpush1.bf16.msra.mxu0 %v7270_v3  ;;  %v7289_v26 = vld [vmem:[%s11051_s1 + $0x84] ss:$8 sps:$4 sm:$0xff]   ;;  %v7291_v27 = vld [vmem:[%s11051_s1 + $0x80] ss:$8 sps:$4 sm:$0xff]   ;;  %v7292_v28 = vld [vmem:[%s11051_s1 + $0x94] ss:$8 sps:$4 sm:$0xff]   ;;  %v467_v7 = vcombine.high %v8503_v19, %v8503_v19 }
   0x8   :  { %2620 = vmatprep.subr.bf16.mxu0 %v7271_v4  ;;  %v474_v20 = vrot.slane %v8503_v19, %v8492_v16  ;;  %v7294_v29 = vld [vmem:[%s11051_s1 + $0x90] ss:$8 sps:$4 sm:$0xff]   ;;  %v7295_v30 = vld [vmem:[%s11051_s1 + $0xa4] ss:$8 sps:$4 sm:$0xff]   ;;  %v7297_v31 = vld [vmem:[%s11051_s1 + $0xa0] ss:$8 sps:$4 sm:$0xff]  }
   0x9   :  { %v7298_v32 = vld [vmem:[%s11051_s1 + $0xb4] ss:$8 sps:$4 sm:$0xff]   ;;  %v7300_v33 = vld [vmem:[%s11051_s1 + $0xb0] ss:$8 sps:$4 sm:$0xff]   ;;  %v7301_v34 = vld [vmem:[%s11051_s1 + $0xc4] ss:$8 sps:$4 sm:$0xff]   ;;  %v8665_v13 = vrot.slane %v467_v7, %v8492_v16 }
   0xa   :  { %v482_v23 = vcombine.high %v474_v20, %v474_v20  ;;  %v7303_v35 = vld [vmem:[%s11051_s1 + $0xc0] ss:$8 sps:$4 sm:$0xff]   ;;  %v7304_v36 = vld [vmem:[%s11051_s1 + $0xd4] ss:$8 sps:$4 sm:$0xff]   ;;  %v7306_v37 = vld [vmem:[%s11051_s1 + $0xd0] ss:$8 sps:$4 sm:$0xff]   ;;  %v8569_v43 = vrot.slane %v474_v20, %v8492_v16 }
   0xb   :  { %2621 = vmatpush1.bf16.msra.mxu0 %v7273_v5  ;;  %v7307_v38 = vld [vmem:[%s11051_s1 + $0xe4] ss:$8 sps:$4 sm:$0xff]   ;;  %v7309_v39 = vld [vmem:[%s11051_s1 + $0xe0] ss:$8 sps:$4 sm:$0xff]   ;;  %v7310_v40 = vld [vmem:[%s11051_s1 + $0xf4] ss:$8 sps:$4 sm:$0xff]  }
   0xc   :  { %2622 = vmatprep.subr.bf16.mxu0 %v7274_v6  ;;  %v504_v24 = vrot.slane %v482_v23, %v8492_v16  ;;  %v7312_v41 = vld [vmem:[%s11051_s1 + $0xf0] ss:$8 sps:$4 sm:$0xff]   ;;  %v7316_v42 = vld [vmem:[%s11051_s1 + $0x104] ss:$8 sps:$4 sm:$0xff]   ;;  %v7314_v45 = vld [vmem:[%s11051_s1 + $0x100] ss:$8 sps:$4 sm:$0xff]  }
   0xd   :  { %v7319_v46 = vld [vmem:[%s11051_s1 + $0x114] ss:$8 sps:$4 sm:$0xff]   ;;  %v7317_v47 = vld [vmem:[%s11051_s1 + $0x110] ss:$8 sps:$4 sm:$0xff]   ;;  %v7322_v48 = vld [vmem:[%s11051_s1 + $0x124] ss:$8 sps:$4 sm:$0xff]  }
   0xe   :  { %2648 = vmatprep.mubr.bf16.mxu0 %v504_v24  ;;  %v514_v44 = vcombine.high %v504_v24, %v504_v24  ;;  %v7320_v49 = vld [vmem:[%s11051_s1 + $0x120] ss:$8 sps:$4 sm:$0xff]   ;;  %v7325_v50 = vld [vmem:[%s11051_s1 + $0x134] ss:$8 sps:$4 sm:$0xff]   ;;  %v7323_v51 = vld [vmem:[%s11051_s1 + $0x130] ss:$8 sps:$4 sm:$0xff]  }
   0xf   :  { %2623 = vmatpush1.bf16.msra.mxu0 %v7276_v10  ;;  %v7328_v52 = vld [vmem:[%s11051_s1 + $0x144] ss:$8 sps:$4 sm:$0xff]   ;;  %v7326_v53 = vld [vmem:[%s11051_s1 + $0x140] ss:$8 sps:$4 sm:$0xff]   ;;  %v7331_v54 = vld [vmem:[%s11051_s1 + $0x154] ss:$8 sps:$4 sm:$0xff]  }
  0x10   :  { %2624 = vmatprep.subr.bf16.mxu0 %v7277_v11  ;;  %v7329_v55 = vld [vmem:[%s11051_s1 + $0x150] ss:$8 sps:$4 sm:$0xff]   ;;  %v7334_v56 = vld [vmem:[%s11051_s1 + $0x164] ss:$8 sps:$4 sm:$0xff]   ;;  %v7332_v57 = vld [vmem:[%s11051_s1 + $0x160] ss:$8 sps:$4 sm:$0xff]  }
  0x11   :  { %v7337_v58 = vld [vmem:[%s11051_s1 + $0x174] ss:$8 sps:$4 sm:$0xff]   ;;  %v7335_v59 = vld [vmem:[%s11051_s1 + $0x170] ss:$8 sps:$4 sm:$0xff]   ;;  %v7340_v60 = vld [vmem:[%s11051_s1 + $0x184] ss:$8 sps:$4 sm:$0xff]  }
  0x12   :  { %v7338_v61 = vld [vmem:[%s11051_s1 + $0x180] ss:$8 sps:$4 sm:$0xff]   ;;  %v7343_v62 = vld [vmem:[%s11051_s1 + $0x194] ss:$8 sps:$4 sm:$0xff]   ;;  %v7341_v63 = vld [vmem:[%s11051_s1 + $0x190] ss:$8 sps:$4 sm:$0xff]  }
  0x13   :  { %2625 = vmatpush1.bf16.msra.mxu0 %v7279_v14  ;;  %v7346_v0 = vld [vmem:[%s11051_s1 + $0x1a4] ss:$8 sps:$4 sm:$0xff]   ;;  %v7344_v1 = vld [vmem:[%s11051_s1 + $0x1a0] ss:$8 sps:$4 sm:$0xff]   ;;  %v7349_v2 = vld [vmem:[%s11051_s1 + $0x1b4] ss:$8 sps:$4 sm:$0xff]  }
  0x14   :  { %2626 = vmatprep.subr.bf16.mxu0 %v7280_v15  ;;  %v7347_v3 = vld [vmem:[%s11051_s1 + $0x1b0] ss:$8 sps:$4 sm:$0xff]   ;;  %v7352_v4 = vld [vmem:[%s11051_s1 + $0x1c4] ss:$8 sps:$4 sm:$0xff]   ;;  %v7350_v5 = vld [vmem:[%s11051_s1 + $0x1c0] ss:$8 sps:$4 sm:$0xff]  }
  0x15   :  { %v7355_v6 = vld [vmem:[%s11051_s1 + $0x1d4] ss:$8 sps:$4 sm:$0xff]   ;;  %v7353_v8 = vld [vmem:[%s11051_s1 + $0x1d0] ss:$8 sps:$4 sm:$0xff]   ;;  %v7358_v9 = vld [vmem:[%s11051_s1 + $0x1e4] ss:$8 sps:$4 sm:$0xff]  }
  0x16   :  { %v7356_v10 = vld [vmem:[%s11051_s1 + $0x1e0] ss:$8 sps:$4 sm:$0xff]   ;;  %v7361_v11 = vld [vmem:[%s11051_s1 + $0x1f4] ss:$8 sps:$4 sm:$0xff]   ;;  %v7359_v14 = vld [vmem:[%s11051_s1 + $0x1f0] ss:$8 sps:$4 sm:$0xff]  }
  0x17   :  { %2627 = vmatpush1.bf16.msra.mxu0 %v7282_v17  ;;  %v7364_v15 = vld [vmem:[%s11051_s1 + $0x204] ss:$8 sps:$4 sm:$0xff]   ;;  %v483_v17 = vcombine.high %v8665_v13, %v8665_v13  ;;  %v7362_v19 = vld [vmem:[%s11051_s1 + $0x200] ss:$8 sps:$4 sm:$0xff]   ;;  %v7367_v20 = vld [vmem:[%s11051_s1 + $0x214] ss:$8 sps:$4 sm:$0xff]  }
  0x18   :  { %2628 = vmatprep.subr.bf16.mxu0 %v7283_v18  ;;  %v512_v18 = vcombine.high %v8569_v43, %v8569_v43  ;;  %v7370_v23 = vld [vmem:[%s11051_s1 + $0x224] ss:$8 sps:$4 sm:$0xff]   ;;  %v7368_v24 = vld [vmem:[%s11051_s1 + $0x220] ss:$8 sps:$4 sm:$0xff]   ;;  %v7439_v7 = vld [vmem:[%s11051_s1 + $0x394] ss:$8 sps:$4 sm:$0xff]  }
  0x1b   :  { %2629 = vmatpush1.bf16.msra.mxu0 %v7285_v21  ;;  %v8684_v21 = vrot.slane %v483_v17, %v8492_v16  ;;  %v7451_v17 = vld [vmem:[%s11051_s1 + $0x3d4] ss:$8 sps:$4 sm:$0xff]  }
  0x1c   :  { %2630 = vmatprep.subr.bf16.mxu0 %v7286_v22  ;;  %v7365_v22 = vld [vmem:[%s11051_s1 + $0x210] ss:$8 sps:$4 sm:$0xff]  }
  0x1f   :  { %2631 = vmatpush1.bf16.msra.mxu0 %v7288_v25  ;;  %v7373_v25 = vld [vmem:[%s11051_s1 + $0x234] ss:$8 sps:$4 sm:$0xff]  }
  0x20   :  { %2632 = vmatprep.subr.bf16.mxu0 %v7289_v26  ;;  %v7371_v26 = vld [vmem:[%s11051_s1 + $0x230] ss:$8 sps:$4 sm:$0xff]  }
  0x23   :  { %2633 = vmatpush1.bf16.msra.mxu0 %v7291_v27  ;;  %v7376_v27 = vld [vmem:[%s11051_s1 + $0x244] ss:$8 sps:$4 sm:$0xff]  }
  0x24   :  { %2634 = vmatprep.subr.bf16.mxu0 %v7292_v28  ;;  %v7374_v28 = vld [vmem:[%s11051_s1 + $0x240] ss:$8 sps:$4 sm:$0xff]  }
  0x27   :  { %2635 = vmatpush1.bf16.msra.mxu0 %v7294_v29  ;;  %v7379_v29 = vld [vmem:[%s11051_s1 + $0x254] ss:$8 sps:$4 sm:$0xff]  }
  0x28   :  { %2636 = vmatprep.subr.bf16.mxu0 %v7295_v30  ;;  %v7377_v30 = vld [vmem:[%s11051_s1 + $0x250] ss:$8 sps:$4 sm:$0xff]  }
  0x2b   :  { %2637 = vmatpush1.bf16.msra.mxu0 %v7297_v31  ;;  %v7382_v31 = vld [vmem:[%s11051_s1 + $0x264] ss:$8 sps:$4 sm:$0xff]  }
  0x2c   :  { %2638 = vmatprep.subr.bf16.mxu0 %v7298_v32  ;;  %v7380_v32 = vld [vmem:[%s11051_s1 + $0x260] ss:$8 sps:$4 sm:$0xff]  }
  0x2f   :  { %2639 = vmatpush1.bf16.msra.mxu0 %v7300_v33  ;;  %v7385_v33 = vld [vmem:[%s11051_s1 + $0x274] ss:$8 sps:$4 sm:$0xff]  }
  0x30   :  { %2640 = vmatprep.subr.bf16.mxu0 %v7301_v34  ;;  %v7383_v34 = vld [vmem:[%s11051_s1 + $0x270] ss:$8 sps:$4 sm:$0xff]  }
  0x33   :  { %2641 = vmatpush1.bf16.msra.mxu0 %v7303_v35  ;;  %v7388_v35 = vld [vmem:[%s11051_s1 + $0x284] ss:$8 sps:$4 sm:$0xff]  }
  0x34   :  { %2642 = vmatprep.subr.bf16.mxu0 %v7304_v36  ;;  %v7386_v36 = vld [vmem:[%s11051_s1 + $0x280] ss:$8 sps:$4 sm:$0xff]  }
  0x37   :  { %2643 = vmatpush1.bf16.msra.mxu0 %v7306_v37  ;;  %v7391_v37 = vld [vmem:[%s11051_s1 + $0x294] ss:$8 sps:$4 sm:$0xff]  }
  0x38   :  { %2644 = vmatprep.subr.bf16.mxu0 %v7307_v38  ;;  %v7389_v38 = vld [vmem:[%s11051_s1 + $0x290] ss:$8 sps:$4 sm:$0xff]  }
  0x3b   :  { %2645 = vmatpush1.bf16.msra.mxu0 %v7309_v39  ;;  %v7394_v39 = vld [vmem:[%s11051_s1 + $0x2a4] ss:$8 sps:$4 sm:$0xff]  }
  0x3c   :  { %2646 = vmatprep.subr.bf16.mxu0 %v7310_v40  ;;  %v7392_v40 = vld [vmem:[%s11051_s1 + $0x2a0] ss:$8 sps:$4 sm:$0xff]  }
  0x3f   :  { %2647 = vmatpush1.bf16.msra.mxu0 %v7312_v41  ;;  %v7397_v41 = vld [vmem:[%s11051_s1 + $0x2b4] ss:$8 sps:$4 sm:$0xff]  }
  0x40   :  { %2657 = vmatprep.subr.bf16.mxu0 %v7316_v42  ;;  %v7395_v42 = vld [vmem:[%s11051_s1 + $0x2b0] ss:$8 sps:$4 sm:$0xff]  }
  0x42   :  { %2649 = vmatmul.mubr.bf16.vlgmr.msra.gmra.mrb[0].mxu0 %v8569_v43  ;;  %v7400_v43 = vld [vmem:[%s11051_s1 + $0x2c4] ss:$8 sps:$4 sm:$0xff]  }
  0x43   :  { %2658 = vmatpush1.bf16.msra.mxu0 %v7314_v45  ;;  %2689 = vmatprep.mubr.bf16.mxu0 %v514_v44  ;;  %v7398_v44 = vld [vmem:[%s11051_s1 + $0x2c0] ss:$8 sps:$4 sm:$0xff]   ;;  %v7403_v45 = vld [vmem:[%s11051_s1 + $0x2d4] ss:$8 sps:$4 sm:$0xff]  }
  0x44   :  { %2659 = vmatprep.subr.bf16.mxu0 %v7319_v46  ;;  %v7401_v46 = vld [vmem:[%s11051_s1 + $0x2d0] ss:$8 sps:$4 sm:$0xff]  }
  0x47   :  { %2660 = vmatpush1.bf16.msra.mxu0 %v7317_v47  ;;  %v7406_v47 = vld [vmem:[%s11051_s1 + $0x2e4] ss:$8 sps:$4 sm:$0xff]  }
  0x48   :  { %2661 = vmatprep.subr.bf16.mxu0 %v7322_v48  ;;  %v7404_v48 = vld [vmem:[%s11051_s1 + $0x2e0] ss:$8 sps:$4 sm:$0xff]  }
  0x4b   :  { %2662 = vmatpush1.bf16.msra.mxu0 %v7320_v49  ;;  %v7409_v49 = vld [vmem:[%s11051_s1 + $0x2f4] ss:$8 sps:$4 sm:$0xff]  }
  0x4c   :  { %2663 = vmatprep.subr.bf16.mxu0 %v7325_v50  ;;  %v7407_v50 = vld [vmem:[%s11051_s1 + $0x2f0] ss:$8 sps:$4 sm:$0xff]  }
  0x4f   :  { %2664 = vmatpush1.bf16.msra.mxu0 %v7323_v51  ;;  %v7412_v51 = vld [vmem:[%s11051_s1 + $0x304] ss:$8 sps:$4 sm:$0xff]  }
  0x50   :  { %2665 = vmatprep.subr.bf16.mxu0 %v7328_v52  ;;  %v8779_v52 = vrot.slane %v8665_v13, %v8492_v16  ;;  %v7443_v13 = vld [vmem:[%s11051_s1 + $0x3b0] ss:$8 sps:$4 sm:$0xff]  }
  0x53   :  { %2666 = vmatpush1.bf16.msra.mxu0 %v7326_v53  ;;  %v7410_v53 = vld [vmem:[%s11051_s1 + $0x300] ss:$8 sps:$4 sm:$0xff]  }
  0x54   :  { %2667 = vmatprep.subr.bf16.mxu0 %v7331_v54  ;;  %v515_v54 = vcombine.high %v8684_v21, %v8684_v21 }
  0x57   :  { %2668 = vmatpush1.bf16.msra.mxu0 %v7329_v55  ;;  %v7415_v55 = vld [vmem:[%s11051_s1 + $0x314] ss:$8 sps:$4 sm:$0xff]  }
  0x58   :  { %2669 = vmatprep.subr.bf16.mxu0 %v7334_v56  ;;  %v7413_v56 = vld [vmem:[%s11051_s1 + $0x310] ss:$8 sps:$4 sm:$0xff]  }
  0x5b   :  { %2670 = vmatpush1.bf16.msra.mxu0 %v7332_v57  ;;  %v7418_v57 = vld [vmem:[%s11051_s1 + $0x324] ss:$8 sps:$4 sm:$0xff]  }
  0x5c   :  { %2671 = vmatprep.subr.bf16.mxu0 %v7337_v58  ;;  %v7416_v58 = vld [vmem:[%s11051_s1 + $0x320] ss:$8 sps:$4 sm:$0xff]  }
  0x5f   :  { %2672 = vmatpush1.bf16.msra.mxu0 %v7335_v59  ;;  %v7421_v59 = vld [vmem:[%s11051_s1 + $0x334] ss:$8 sps:$4 sm:$0xff]  }
  0x60   :  { %2673 = vmatprep.subr.bf16.mxu0 %v7340_v60  ;;  %v7419_v60 = vld [vmem:[%s11051_s1 + $0x330] ss:$8 sps:$4 sm:$0xff]  }
  0x63   :  { %2674 = vmatpush1.bf16.msra.mxu0 %v7338_v61  ;;  %v7424_v61 = vld [vmem:[%s11051_s1 + $0x344] ss:$8 sps:$4 sm:$0xff]  }
  0x64   :  { %2675 = vmatprep.subr.bf16.mxu0 %v7343_v62  ;;  %v7422_v62 = vld [vmem:[%s11051_s1 + $0x340] ss:$8 sps:$4 sm:$0xff]  }
  0x67   :  { %2676 = vmatpush1.bf16.msra.mxu0 %v7341_v63  ;;  %v7427_v63 = vld [vmem:[%s11051_s1 + $0x354] ss:$8 sps:$4 sm:$0xff]  }
  0x68   :  { %2677 = vmatprep.subr.bf16.mxu0 %v7346_v0  ;;  %v7425_v0 = vld [vmem:[%s11051_s1 + $0x350] ss:$8 sps:$4 sm:$0xff]  }
  0x6b   :  { %2678 = vmatpush1.bf16.msra.mxu0 %v7344_v1  ;;  %v7430_v1 = vld [vmem:[%s11051_s1 + $0x364] ss:$8 sps:$4 sm:$0xff]  }
  0x6c   :  { %2679 = vmatprep.subr.bf16.mxu0 %v7349_v2  ;;  %v7428_v2 = vld [vmem:[%s11051_s1 + $0x360] ss:$8 sps:$4 sm:$0xff]  }
  0x6f   :  { %2680 = vmatpush1.bf16.msra.mxu0 %v7347_v3  ;;  %v7433_v3 = vld [vmem:[%s11051_s1 + $0x374] ss:$8 sps:$4 sm:$0xff]  }
  0x70   :  { %2681 = vmatprep.subr.bf16.mxu0 %v7352_v4  ;;  %v7431_v4 = vld [vmem:[%s11051_s1 + $0x370] ss:$8 sps:$4 sm:$0xff]  }
  0x73   :  { %2682 = vmatpush1.bf16.msra.mxu0 %v7350_v5  ;;  %v7436_v5 = vld [vmem:[%s11051_s1 + $0x384] ss:$8 sps:$4 sm:$0xff]  }
  0x74   :  { %2683 = vmatprep.subr.bf16.mxu0 %v7355_v6  ;;  %v7434_v6 = vld [vmem:[%s11051_s1 + $0x380] ss:$8 sps:$4 sm:$0xff]  }
  0x77   :  { %2684 = vmatpush1.bf16.msra.mxu0 %v7353_v8  ;;  %v7437_v8 = vld [vmem:[%s11051_s1 + $0x390] ss:$8 sps:$4 sm:$0xff]  }
  0x78   :  { %2685 = vmatprep.subr.bf16.mxu0 %v7358_v9  ;;  %v7442_v9 = vld [vmem:[%s11051_s1 + $0x3a4] ss:$8 sps:$4 sm:$0xff]  }
  0x7b   :  { %2686 = vmatpush1.bf16.msra.mxu0 %v7356_v10  ;;  %v7440_v10 = vld [vmem:[%s11051_s1 + $0x3a0] ss:$8 sps:$4 sm:$0xff]  }
  0x7c   :  { %2687 = vmatprep.subr.bf16.mxu0 %v7361_v11  ;;  %v7445_v11 = vld [vmem:[%s11051_s1 + $0x3b4] ss:$8 sps:$4 sm:$0xff]  }
  0x7f   :  { %2688 = vmatpush1.bf16.msra.mxu0 %v7359_v14  ;;  %v7448_v14 = vld [vmem:[%s11051_s1 + $0x3c4] ss:$8 sps:$4 sm:$0xff]  }
  0x80   :  { %2698 = vmatprep.subr.bf16.mxu0 %v7364_v15  ;;  %v7446_v15 = vld [vmem:[%s11051_s1 + $0x3c0] ss:$8 sps:$4 sm:$0xff]  }
  0x82   :  { %2690 = vmatmul.mubr.bf16.vlgmr.msra.gmra.mrb[0].mxu0 %v512_v18  ;;  %v7449_v18 = vld [vmem:[%s11051_s1 + $0x3d0] ss:$8 sps:$4 sm:$0xff]  }
  0x83   :  { %2699 = vmatpush1.bf16.msra.mxu0 %v7362_v19  ;;  %2730 = vmatprep.mubr.bf16.mxu0 %v8684_v21  ;;  %v7454_v19 = vld [vmem:[%s11051_s1 + $0x3e4] ss:$8 sps:$4 sm:$0xff]   ;;  %v7452_v21 = vld [vmem:[%s11051_s1 + $0x3e0] ss:$8 sps:$4 sm:$0xff]  }
  0x84   :  { %2700 = vmatprep.subr.bf16.mxu0 %v7367_v20  ;;  %v8871_v20 = vld [vmem:[%s11052_s0 + $0x8] sm:$0xff] }
  0x87   :  { %2701 = vmatpush1.bf16.msra.mxu0 %v7365_v22  ;;  %v8878_v22 = vrot.slane %v8871_v20, %v8492_v16 }
  0x88   :  { %2702 = vmatprep.subr.bf16.mxu0 %v7370_v23  ;;  %v7457_v23 = vld [vmem:[%s11051_s1 + $0x3f4] ss:$8 sps:$4 sm:$0xff]  }
  0x8b   :  { %2703 = vmatpush1.bf16.msra.mxu0 %v7368_v24  ;;  %v7455_v24 = vld [vmem:[%s11051_s1 + $0x3f0] ss:$8 sps:$4 sm:$0xff]  }
  0x8c   :  { %2704 = vmatprep.subr.bf16.mxu0 %v7373_v25  ;;  %v531_v25 = vcombine.high %v8878_v22, %v8878_v22 }
  0x8f   :  { %2705 = vmatpush1.bf16.msra.mxu0 %v7371_v26  ;;  %v7460_v26 = vld [vmem:[%s11051_s1 + $0x404] ss:$8 sps:$4 sm:$0xff]  }
  0x90   :  { %2706 = vmatprep.subr.bf16.mxu0 %v7376_v27  ;;  %v513_v27 = vcombine.high %v8779_v52, %v8779_v52 }
  0x93   :  { %2707 = vmatpush1.bf16.msra.mxu0 %v7374_v28  ;;  %v7458_v28 = vld [vmem:[%s11051_s1 + $0x400] ss:$8 sps:$4 sm:$0xff]  }
  0x94   :  { %2708 = vmatprep.subr.bf16.mxu0 %v7379_v29  ;;  %v8897_v29 = vrot.slane %v531_v25, %v8492_v16  ;;  %v7544_v25 = vld [vmem:[%s11051_s1 + $0x5c4] ss:$8 sps:$4 sm:$0xff]  }
  0x97   :  { %2709 = vmatpush1.bf16.msra.mxu0 %v7377_v30  ;;  %v7463_v30 = vld [vmem:[%s11051_s1 + $0x414] ss:$8 sps:$4 sm:$0xff]  }
  0x98   :  { %2710 = vmatprep.subr.bf16.mxu0 %v7382_v31  ;;  %v7461_v31 = vld [vmem:[%s11051_s1 + $0x410] ss:$8 sps:$4 sm:$0xff]  }
  0x9b   :  { %2711 = vmatpush1.bf16.msra.mxu0 %v7380_v32  ;;  %v7466_v32 = vld [vmem:[%s11051_s1 + $0x424] ss:$8 sps:$4 sm:$0xff]  }
  0x9c   :  { %2712 = vmatprep.subr.bf16.mxu0 %v7385_v33  ;;  %v7464_v33 = vld [vmem:[%s11051_s1 + $0x420] ss:$8 sps:$4 sm:$0xff]  }
  0x9f   :  { %2713 = vmatpush1.bf16.msra.mxu0 %v7383_v34  ;;  %v7469_v34 = vld [vmem:[%s11051_s1 + $0x434] ss:$8 sps:$4 sm:$0xff]  }
  0xa0   :  { %2714 = vmatprep.subr.bf16.mxu0 %v7388_v35  ;;  %v7467_v35 = vld [vmem:[%s11051_s1 + $0x430] ss:$8 sps:$4 sm:$0xff]  }
  0xa3   :  { %2715 = vmatpush1.bf16.msra.mxu0 %v7386_v36  ;;  %v7472_v36 = vld [vmem:[%s11051_s1 + $0x444] ss:$8 sps:$4 sm:$0xff]  }
  0xa4   :  { %2716 = vmatprep.subr.bf16.mxu0 %v7391_v37  ;;  %v7470_v37 = vld [vmem:[%s11051_s1 + $0x440] ss:$8 sps:$4 sm:$0xff]  }
  0xa7   :  { %2717 = vmatpush1.bf16.msra.mxu0 %v7389_v38  ;;  %v7475_v38 = vld [vmem:[%s11051_s1 + $0x454] ss:$8 sps:$4 sm:$0xff]  }
  0xa8   :  { %2718 = vmatprep.subr.bf16.mxu0 %v7394_v39  ;;  %v7473_v39 = vld [vmem:[%s11051_s1 + $0x450] ss:$8 sps:$4 sm:$0xff]  }
  0xab   :  { %2719 = vmatpush1.bf16.msra.mxu0 %v7392_v40  ;;  %v7478_v40 = vld [vmem:[%s11051_s1 + $0x464] ss:$8 sps:$4 sm:$0xff]  }
  0xac   :  { %2720 = vmatprep.subr.bf16.mxu0 %v7397_v41  ;;  %v7476_v41 = vld [vmem:[%s11051_s1 + $0x460] ss:$8 sps:$4 sm:$0xff]  }
  0xaf   :  { %2721 = vmatpush1.bf16.msra.mxu0 %v7395_v42  ;;  %v7481_v42 = vld [vmem:[%s11051_s1 + $0x474] ss:$8 sps:$4 sm:$0xff]  }
  0xb0   :  { %2722 = vmatprep.subr.bf16.mxu0 %v7400_v43  ;;  %v7479_v43 = vld [vmem:[%s11051_s1 + $0x470] ss:$8 sps:$4 sm:$0xff]  }
  0xb3   :  { %2723 = vmatpush1.bf16.msra.mxu0 %v7398_v44  ;;  %v7484_v44 = vld [vmem:[%s11051_s1 + $0x484] ss:$8 sps:$4 sm:$0xff]  }
  0xb4   :  { %2724 = vmatprep.subr.bf16.mxu0 %v7403_v45  ;;  %v7482_v45 = vld [vmem:[%s11051_s1 + $0x480] ss:$8 sps:$4 sm:$0xff]  }
  0xb7   :  { %2725 = vmatpush1.bf16.msra.mxu0 %v7401_v46  ;;  %v7487_v46 = vld [vmem:[%s11051_s1 + $0x494] ss:$8 sps:$4 sm:$0xff]  }
  0xb8   :  { %2726 = vmatprep.subr.bf16.mxu0 %v7406_v47  ;;  %v7485_v47 = vld [vmem:[%s11051_s1 + $0x490] ss:$8 sps:$4 sm:$0xff]  }
  0xbb   :  { %2727 = vmatpush1.bf16.msra.mxu0 %v7404_v48  ;;  %v7490_v48 = vld [vmem:[%s11051_s1 + $0x4a4] ss:$8 sps:$4 sm:$0xff]  }
  0xbc   :  { %2728 = vmatprep.subr.bf16.mxu0 %v7409_v49  ;;  %v7488_v49 = vld [vmem:[%s11051_s1 + $0x4a0] ss:$8 sps:$4 sm:$0xff]  }
  0xbf   :  { %2729 = vmatpush1.bf16.msra.mxu0 %v7407_v50  ;;  %v7493_v50 = vld [vmem:[%s11051_s1 + $0x4b4] ss:$8 sps:$4 sm:$0xff]  }
  0xc0   :  { %2739 = vmatprep.subr.bf16.mxu0 %v7412_v51  ;;  %v7491_v51 = vld [vmem:[%s11051_s1 + $0x4b0] ss:$8 sps:$4 sm:$0xff]  }
  0xc2   :  { %2731 = vmatmul.mubr.bf16.vlgmr.msra.gmra.mrb[0].mxu0 %v8779_v52  ;;  %v7496_v52 = vld [vmem:[%s11051_s1 + $0x4c4] ss:$8 sps:$4 sm:$0xff]  }
  0xc3   :  { %2740 = vmatpush1.bf16.msra.mxu0 %v7410_v53  ;;  %2771 = vmatprep.mubr.bf16.mxu0 %v515_v54  ;;  %v7494_v53 = vld [vmem:[%s11051_s1 + $0x4c0] ss:$8 sps:$4 sm:$0xff]   ;;  %v7499_v54 = vld [vmem:[%s11051_s1 + $0x4d4] ss:$8 sps:$4 sm:$0xff]  }
  0xc4   :  { %2741 = vmatprep.subr.bf16.mxu0 %v7415_v55  ;;  %v7497_v55 = vld [vmem:[%s11051_s1 + $0x4d0] ss:$8 sps:$4 sm:$0xff]  }
  0xc7   :  { %2742 = vmatpush1.bf16.msra.mxu0 %v7413_v56  ;;  %v7502_v56 = vld [vmem:[%s11051_s1 + $0x4e4] ss:$8 sps:$4 sm:$0xff]  }
  0xc8   :  { %2743 = vmatprep.subr.bf16.mxu0 %v7418_v57  ;;  %v7500_v57 = vld [vmem:[%s11051_s1 + $0x4e0] ss:$8 sps:$4 sm:$0xff]  }
  0xcb   :  { %2744 = vmatpush1.bf16.msra.mxu0 %v7416_v58  ;;  %v7505_v58 = vld [vmem:[%s11051_s1 + $0x4f4] ss:$8 sps:$4 sm:$0xff]  }
  0xcc   :  { %2745 = vmatprep.subr.bf16.mxu0 %v7421_v59  ;;  %v7503_v59 = vld [vmem:[%s11051_s1 + $0x4f0] ss:$8 sps:$4 sm:$0xff]  }
  0xcf   :  { %2746 = vmatpush1.bf16.msra.mxu0 %v7419_v60  ;;  %v7508_v60 = vld [vmem:[%s11051_s1 + $0x504] ss:$8 sps:$4 sm:$0xff]  }
  0xd0   :  { %2747 = vmatprep.subr.bf16.mxu0 %v7424_v61  ;;  %v8995_v61 = vrot.slane %v8878_v22, %v8492_v16  ;;  %v7536_v22 = vld [vmem:[%s11051_s1 + $0x5a0] ss:$8 sps:$4 sm:$0xff]  }
  0xd3   :  { %2748 = vmatpush1.bf16.msra.mxu0 %v7422_v62  ;;  %v7506_v62 = vld [vmem:[%s11051_s1 + $0x500] ss:$8 sps:$4 sm:$0xff]  }
  0xd4   :  { %2749 = vmatprep.subr.bf16.mxu0 %v7427_v63  ;;  %v563_v63 = vcombine.high %v8897_v29, %v8897_v29 }
  0xd7   :  { %2750 = vmatpush1.bf16.msra.mxu0 %v7425_v0  ;;  %v7511_v0 = vld [vmem:[%s11051_s1 + $0x514] ss:$8 sps:$4 sm:$0xff]  }
  0xd8   :  { %2751 = vmatprep.subr.bf16.mxu0 %v7430_v1  ;;  %v7509_v1 = vld [vmem:[%s11051_s1 + $0x510] ss:$8 sps:$4 sm:$0xff]  }
  0xdb   :  { %2752 = vmatpush1.bf16.msra.mxu0 %v7428_v2  ;;  %v7514_v2 = vld [vmem:[%s11051_s1 + $0x524] ss:$8 sps:$4 sm:$0xff]  }
  0xdc   :  { %2753 = vmatprep.subr.bf16.mxu0 %v7433_v3  ;;  %v7512_v3 = vld [vmem:[%s11051_s1 + $0x520] ss:$8 sps:$4 sm:$0xff]  }
  0xdf   :  { %2754 = vmatpush1.bf16.msra.mxu0 %v7431_v4  ;;  %v7517_v4 = vld [vmem:[%s11051_s1 + $0x534] ss:$8 sps:$4 sm:$0xff]  }
  0xe0   :  { %2755 = vmatprep.subr.bf16.mxu0 %v7436_v5  ;;  %v7515_v5 = vld [vmem:[%s11051_s1 + $0x530] ss:$8 sps:$4 sm:$0xff]  }
  0xe3   :  { %2756 = vmatpush1.bf16.msra.mxu0 %v7434_v6  ;;  %v7520_v6 = vld [vmem:[%s11051_s1 + $0x544] ss:$8 sps:$4 sm:$0xff]  }
  0xe4   :  { %2757 = vmatprep.subr.bf16.mxu0 %v7439_v7  ;;  %v7518_v7 = vld [vmem:[%s11051_s1 + $0x540] ss:$8 sps:$4 sm:$0xff]  }
  0xe7   :  { %2758 = vmatpush1.bf16.msra.mxu0 %v7437_v8  ;;  %v7523_v8 = vld [vmem:[%s11051_s1 + $0x554] ss:$8 sps:$4 sm:$0xff]  }
  0xe8   :  { %2759 = vmatprep.subr.bf16.mxu0 %v7442_v9  ;;  %v7521_v9 = vld [vmem:[%s11051_s1 + $0x550] ss:$8 sps:$4 sm:$0xff]  }
  0xeb   :  { %2760 = vmatpush1.bf16.msra.mxu0 %v7440_v10  ;;  %v7526_v10 = vld [vmem:[%s11051_s1 + $0x564] ss:$8 sps:$4 sm:$0xff]  }
  0xec   :  { %2761 = vmatprep.subr.bf16.mxu0 %v7445_v11  ;;  %v7524_v11 = vld [vmem:[%s11051_s1 + $0x560] ss:$8 sps:$4 sm:$0xff]  }
  0xef   :  { %2762 = vmatpush1.bf16.msra.mxu0 %v7443_v13  ;;  %v7529_v13 = vld [vmem:[%s11051_s1 + $0x574] ss:$8 sps:$4 sm:$0xff]  }
  0xf0   :  { %2763 = vmatprep.subr.bf16.mxu0 %v7448_v14  ;;  %v7527_v14 = vld [vmem:[%s11051_s1 + $0x570] ss:$8 sps:$4 sm:$0xff]  }
  0xf3   :  { %2764 = vmatpush1.bf16.msra.mxu0 %v7446_v15  ;;  %v7532_v15 = vld [vmem:[%s11051_s1 + $0x584] ss:$8 sps:$4 sm:$0xff]  }
  0xf4   :  { %2765 = vmatprep.subr.bf16.mxu0 %v7451_v17  ;;  %v7530_v17 = vld [vmem:[%s11051_s1 + $0x580] ss:$8 sps:$4 sm:$0xff]  }
  0xf7   :  { %2766 = vmatpush1.bf16.msra.mxu0 %v7449_v18  ;;  %v7535_v18 = vld [vmem:[%s11051_s1 + $0x594] ss:$8 sps:$4 sm:$0xff]  }
  0xf8   :  { %2767 = vmatprep.subr.bf16.mxu0 %v7454_v19  ;;  %v7533_v19 = vld [vmem:[%s11051_s1 + $0x590] ss:$8 sps:$4 sm:$0xff]  }
  0xfb   :  { %2768 = vmatpush1.bf16.msra.mxu0 %v7452_v21  ;;  %v7538_v21 = vld [vmem:[%s11051_s1 + $0x5a4] ss:$8 sps:$4 sm:$0xff]  }
  0xfc   :  { %2769 = vmatprep.subr.bf16.mxu0 %v7457_v23  ;;  %v7541_v23 = vld [vmem:[%s11051_s1 + $0x5b4] ss:$8 sps:$4 sm:$0xff]  }
  0xff   :  { %2770 = vmatpush1.bf16.msra.mxu0 %v7455_v24  ;;  %v7539_v24 = vld [vmem:[%s11051_s1 + $0x5b0] ss:$8 sps:$4 sm:$0xff]  }
 0x100   :  { %2780 = vmatprep.subr.bf16.mxu0 %v7460_v26  ;;  %v7542_v26 = vld [vmem:[%s11051_s1 + $0x5c0] ss:$8 sps:$4 sm:$0xff]  }
 0x102   :  { %2772 = vmatmul.mubr.bf16.vlgmr.msra.gmra.mrb[0].mxu0 %v513_v27  ;;  %v7547_v27 = vld [vmem:[%s11051_s1 + $0x5d4] ss:$8 sps:$4 sm:$0xff]  }
 0x103   :  { %2781 = vmatpush1.bf16.msra.mxu0 %v7458_v28  ;;  %2812 = vmatprep.mubr.bf16.mxu0 %v8897_v29  ;;  %v7545_v28 = vld [vmem:[%s11051_s1 + $0x5d0] ss:$8 sps:$4 sm:$0xff]   ;;  %v516_v29 = vcombine.high %v8871_v20, %v8871_v20 }
 0x104   :  { %2782 = vmatprep.subr.bf16.mxu0 %v7463_v30  ;;  %v7550_v30 = vld [vmem:[%s11051_s1 + $0x5e4] ss:$8 sps:$4 sm:$0xff]   ;;  %v7551_v20 = vld [vmem:[%s11051_s1 + $0x5f0] ss:$8 sps:$4 sm:$0xff]  }
 0x107   :  { %2783 = vmatpush1.bf16.msra.mxu0 %v7461_v31  ;;  %v7548_v31 = vld [vmem:[%s11051_s1 + $0x5e0] ss:$8 sps:$4 sm:$0xff]  }
 0x108   :  { %2784 = vmatprep.subr.bf16.mxu0 %v7466_v32  ;;  %v9090_v32 = vrot.slane %v516_v29, %v8492_v16  ;;  %v7630_v29 = vld [vmem:[%s11051_s1 + $0x790] ss:$8 sps:$4 sm:$0xff]  }
 0x10b   :  { %2785 = vmatpush1.bf16.msra.mxu0 %v7464_v33  ;;  %v7553_v33 = vld [vmem:[%s11051_s1 + $0x5f4] ss:$8 sps:$4 sm:$0xff]  }
 0x10c   :  { %2786 = vmatprep.subr.bf16.mxu0 %v7469_v34  ;;  %v532_v34 = vcombine.high %v9090_v32, %v9090_v32 }
 0x10f   :  { %2787 = vmatpush1.bf16.msra.mxu0 %v7467_v35  ;;  %v7556_v35 = vld [vmem:[%s11051_s1 + $0x604] ss:$8 sps:$4 sm:$0xff]  }
 0x110   :  { %2788 = vmatprep.subr.bf16.mxu0 %v7472_v36  ;;  %v561_v36 = vcombine.high %v8995_v61, %v8995_v61 }
 0x113   :  { %2789 = vmatpush1.bf16.msra.mxu0 %v7470_v37  ;;  %v7554_v37 = vld [vmem:[%s11051_s1 + $0x600] ss:$8 sps:$4 sm:$0xff]  }
 0x114   :  { %2790 = vmatprep.subr.bf16.mxu0 %v7475_v38  ;;  %v9109_v38 = vrot.slane %v532_v34, %v8492_v16  ;;  %v7639_v34 = vld [vmem:[%s11051_s1 + $0x7c0] ss:$8 sps:$4 sm:$0xff]  }
 0x117   :  { %2791 = vmatpush1.bf16.msra.mxu0 %v7473_v39  ;;  %v7559_v39 = vld [vmem:[%s11051_s1 + $0x614] ss:$8 sps:$4 sm:$0xff]  }
 0x118   :  { %2792 = vmatprep.subr.bf16.mxu0 %v7478_v40  ;;  %v7557_v40 = vld [vmem:[%s11051_s1 + $0x610] ss:$8 sps:$4 sm:$0xff]  }
 0x11b   :  { %2793 = vmatpush1.bf16.msra.mxu0 %v7476_v41  ;;  %v7562_v41 = vld [vmem:[%s11051_s1 + $0x624] ss:$8 sps:$4 sm:$0xff]  }
 0x11c   :  { %2794 = vmatprep.subr.bf16.mxu0 %v7481_v42  ;;  %v7560_v42 = vld [vmem:[%s11051_s1 + $0x620] ss:$8 sps:$4 sm:$0xff]  }
 0x11f   :  { %2795 = vmatpush1.bf16.msra.mxu0 %v7479_v43  ;;  %v7565_v43 = vld [vmem:[%s11051_s1 + $0x634] ss:$8 sps:$4 sm:$0xff]  }
 0x120   :  { %2796 = vmatprep.subr.bf16.mxu0 %v7484_v44  ;;  %v7563_v44 = vld [vmem:[%s11051_s1 + $0x630] ss:$8 sps:$4 sm:$0xff]  }
 0x123   :  { %2797 = vmatpush1.bf16.msra.mxu0 %v7482_v45  ;;  %v7568_v45 = vld [vmem:[%s11051_s1 + $0x644] ss:$8 sps:$4 sm:$0xff]  }
 0x124   :  { %2798 = vmatprep.subr.bf16.mxu0 %v7487_v46  ;;  %v7566_v46 = vld [vmem:[%s11051_s1 + $0x640] ss:$8 sps:$4 sm:$0xff]  }
 0x127   :  { %2799 = vmatpush1.bf16.msra.mxu0 %v7485_v47  ;;  %v7571_v47 = vld [vmem:[%s11051_s1 + $0x654] ss:$8 sps:$4 sm:$0xff]  }
 0x128   :  { %2800 = vmatprep.subr.bf16.mxu0 %v7490_v48  ;;  %v7569_v48 = vld [vmem:[%s11051_s1 + $0x650] ss:$8 sps:$4 sm:$0xff]  }
 0x12b   :  { %2801 = vmatpush1.bf16.msra.mxu0 %v7488_v49  ;;  %v7574_v49 = vld [vmem:[%s11051_s1 + $0x664] ss:$8 sps:$4 sm:$0xff]  }
 0x12c   :  { %2802 = vmatprep.subr.bf16.mxu0 %v7493_v50  ;;  %v7572_v50 = vld [vmem:[%s11051_s1 + $0x660] ss:$8 sps:$4 sm:$0xff]  }
 0x12f   :  { %2803 = vmatpush1.bf16.msra.mxu0 %v7491_v51  ;;  %v7577_v51 = vld [vmem:[%s11051_s1 + $0x674] ss:$8 sps:$4 sm:$0xff]  }
 0x130   :  { %2804 = vmatprep.subr.bf16.mxu0 %v7496_v52  ;;  %v7575_v52 = vld [vmem:[%s11051_s1 + $0x670] ss:$8 sps:$4 sm:$0xff]  }
 0x133   :  { %2805 = vmatpush1.bf16.msra.mxu0 %v7494_v53  ;;  %v7580_v53 = vld [vmem:[%s11051_s1 + $0x684] ss:$8 sps:$4 sm:$0xff]  }
 0x134   :  { %2806 = vmatprep.subr.bf16.mxu0 %v7499_v54  ;;  %v7578_v54 = vld [vmem:[%s11051_s1 + $0x680] ss:$8 sps:$4 sm:$0xff]  }
 0x137   :  { %2807 = vmatpush1.bf16.msra.mxu0 %v7497_v55  ;;  %v7583_v55 = vld [vmem:[%s11051_s1 + $0x694] ss:$8 sps:$4 sm:$0xff]  }
 0x138   :  { %2808 = vmatprep.subr.bf16.mxu0 %v7502_v56  ;;  %v7581_v56 = vld [vmem:[%s11051_s1 + $0x690] ss:$8 sps:$4 sm:$0xff]  }
 0x13b   :  { %2809 = vmatpush1.bf16.msra.mxu0 %v7500_v57  ;;  %v7586_v57 = vld [vmem:[%s11051_s1 + $0x6a4] ss:$8 sps:$4 sm:$0xff]  }
 0x13c   :  { %2810 = vmatprep.subr.bf16.mxu0 %v7505_v58  ;;  %v7584_v58 = vld [vmem:[%s11051_s1 + $0x6a0] ss:$8 sps:$4 sm:$0xff]  }
 0x13f   :  { %2811 = vmatpush1.bf16.msra.mxu0 %v7503_v59  ;;  %v7589_v59 = vld [vmem:[%s11051_s1 + $0x6b4] ss:$8 sps:$4 sm:$0xff]  }
 0x140   :  { %2821 = vmatprep.subr.bf16.mxu0 %v7508_v60  ;;  %v7587_v60 = vld [vmem:[%s11051_s1 + $0x6b0] ss:$8 sps:$4 sm:$0xff]  }
 0x142   :  { %2813 = vmatmul.mubr.bf16.vlgmr.msra.gmra.mrb[0].mxu0 %v8995_v61  ;;  %v7592_v61 = vld [vmem:[%s11051_s1 + $0x6c4] ss:$8 sps:$4 sm:$0xff]  }
 0x143   :  { %2822 = vmatpush1.bf16.msra.mxu0 %v7506_v62  ;;  %2853 = vmatprep.mubr.bf16.mxu0 %v563_v63  ;;  %v7590_v62 = vld [vmem:[%s11051_s1 + $0x6c0] ss:$8 sps:$4 sm:$0xff]   ;;  %v7595_v63 = vld [vmem:[%s11051_s1 + $0x6d4] ss:$8 sps:$4 sm:$0xff]  }
 0x144   :  { %2823 = vmatprep.subr.bf16.mxu0 %v7511_v0  ;;  %v7593_v0 = vld [vmem:[%s11051_s1 + $0x6d0] ss:$8 sps:$4 sm:$0xff]  }
 0x147   :  { %2824 = vmatpush1.bf16.msra.mxu0 %v7509_v1  ;;  %v7598_v1 = vld [vmem:[%s11051_s1 + $0x6e4] ss:$8 sps:$4 sm:$0xff]  }
 0x148   :  { %2825 = vmatprep.subr.bf16.mxu0 %v7514_v2  ;;  %v7596_v2 = vld [vmem:[%s11051_s1 + $0x6e0] ss:$8 sps:$4 sm:$0xff]  }
 0x14b   :  { %2826 = vmatpush1.bf16.msra.mxu0 %v7512_v3  ;;  %v7601_v3 = vld [vmem:[%s11051_s1 + $0x6f4] ss:$8 sps:$4 sm:$0xff]  }
 0x14c   :  { %2827 = vmatprep.subr.bf16.mxu0 %v7517_v4  ;;  %v7599_v4 = vld [vmem:[%s11051_s1 + $0x6f0] ss:$8 sps:$4 sm:$0xff]  }
 0x14f   :  { %2828 = vmatpush1.bf16.msra.mxu0 %v7515_v5  ;;  %v7605_v5 = vld [vmem:[%s11051_s1 + $0x704] ss:$8 sps:$4 sm:$0xff]  }
 0x150   :  { %2829 = vmatprep.subr.bf16.mxu0 %v7520_v6  ;;  %v9207_v6 = vrot.slane %v9090_v32, %v8492_v16  ;;  %v7638_v32 = vld [vmem:[%s11051_s1 + $0x7b4] ss:$8 sps:$4 sm:$0xff]  }
 0x153   :  { %2830 = vmatpush1.bf16.msra.mxu0 %v7518_v7  ;;  %v7603_v7 = vld [vmem:[%s11051_s1 + $0x700] ss:$8 sps:$4 sm:$0xff]  }
 0x154   :  { %2831 = vmatprep.subr.bf16.mxu0 %v7523_v8  ;;  %v564_v8 = vcombine.high %v9109_v38, %v9109_v38 }
 0x157   :  { %2832 = vmatpush1.bf16.msra.mxu0 %v7521_v9  ;;  %v7608_v9 = vld [vmem:[%s11051_s1 + $0x714] ss:$8 sps:$4 sm:$0xff]  }
 0x158   :  { %2833 = vmatprep.subr.bf16.mxu0 %v7526_v10  ;;  %v7606_v10 = vld [vmem:[%s11051_s1 + $0x710] ss:$8 sps:$4 sm:$0xff]  }
 0x15b   :  { %2834 = vmatpush1.bf16.msra.mxu0 %v7524_v11  ;;  %v7611_v11 = vld [vmem:[%s11051_s1 + $0x724] ss:$8 sps:$4 sm:$0xff]  }
 0x15c   :  { %2835 = vmatprep.subr.bf16.mxu0 %v7529_v13  ;;  %v7609_v13 = vld [vmem:[%s11051_s1 + $0x720] ss:$8 sps:$4 sm:$0xff]  }
 0x15f   :  { %2836 = vmatpush1.bf16.msra.mxu0 %v7527_v14  ;;  %v7614_v14 = vld [vmem:[%s11051_s1 + $0x734] ss:$8 sps:$4 sm:$0xff]  }
 0x160   :  { %2837 = vmatprep.subr.bf16.mxu0 %v7532_v15  ;;  %v7612_v15 = vld [vmem:[%s11051_s1 + $0x730] ss:$8 sps:$4 sm:$0xff]  }
 0x163   :  { %2838 = vmatpush1.bf16.msra.mxu0 %v7530_v17  ;;  %v7617_v17 = vld [vmem:[%s11051_s1 + $0x744] ss:$8 sps:$4 sm:$0xff]  }
 0x164   :  { %2839 = vmatprep.subr.bf16.mxu0 %v7535_v18  ;;  %v7615_v18 = vld [vmem:[%s11051_s1 + $0x740] ss:$8 sps:$4 sm:$0xff]  }
 0x167   :  { %2840 = vmatpush1.bf16.msra.mxu0 %v7533_v19  ;;  %v7620_v19 = vld [vmem:[%s11051_s1 + $0x754] ss:$8 sps:$4 sm:$0xff]  }
 0x168   :  { %2841 = vmatprep.subr.bf16.mxu0 %v7538_v21  ;;  %v7618_v21 = vld [vmem:[%s11051_s1 + $0x750] ss:$8 sps:$4 sm:$0xff]  }
 0x16b   :  { %2842 = vmatpush1.bf16.msra.mxu0 %v7536_v22  ;;  %v7623_v22 = vld [vmem:[%s11051_s1 + $0x764] ss:$8 sps:$4 sm:$0xff]  }
 0x16c   :  { %2843 = vmatprep.subr.bf16.mxu0 %v7541_v23  ;;  %v7621_v23 = vld [vmem:[%s11051_s1 + $0x760] ss:$8 sps:$4 sm:$0xff]  }
 0x16f   :  { %2844 = vmatpush1.bf16.msra.mxu0 %v7539_v24  ;;  %v7626_v24 = vld [vmem:[%s11051_s1 + $0x774] ss:$8 sps:$4 sm:$0xff]  }
 0x170   :  { %2845 = vmatprep.subr.bf16.mxu0 %v7544_v25  ;;  %v7624_v25 = vld [vmem:[%s11051_s1 + $0x770] ss:$8 sps:$4 sm:$0xff]  }
 0x173   :  { %2846 = vmatpush1.bf16.msra.mxu0 %v7542_v26  ;;  %v7629_v26 = vld [vmem:[%s11051_s1 + $0x784] ss:$8 sps:$4 sm:$0xff]  }
 0x174   :  { %2847 = vmatprep.subr.bf16.mxu0 %v7547_v27  ;;  %v7627_v27 = vld [vmem:[%s11051_s1 + $0x780] ss:$8 sps:$4 sm:$0xff]  }
 0x177   :  { %2848 = vmatpush1.bf16.msra.mxu0 %v7545_v28  ;;  %v7632_v28 = vld [vmem:[%s11051_s1 + $0x794] ss:$8 sps:$4 sm:$0xff]  }
 0x178   :  { %2849 = vmatprep.subr.bf16.mxu0 %v7550_v30  ;;  %v7635_v30 = vld [vmem:[%s11051_s1 + $0x7a4] ss:$8 sps:$4 sm:$0xff]  }
 0x17b   :  { %2850 = vmatpush1.bf16.msra.mxu0 %v7548_v31  ;;  %v7633_v31 = vld [vmem:[%s11051_s1 + $0x7a0] ss:$8 sps:$4 sm:$0xff]  }
 0x17c   :  { %2851 = vmatprep.subr.bf16.mxu0 %v7553_v33  ;;  %v7636_v33 = vld [vmem:[%s11051_s1 + $0x7b0] ss:$8 sps:$4 sm:$0xff]  }
 0x17f   :  { %2852 = vmatpush1.bf16.msra.mxu0 %v7551_v20  ;;  %v7641_v20 = vld [vmem:[%s11051_s1 + $0x7c4] ss:$8 sps:$4 sm:$0xff]  }
 0x180   :  { %2862 = vmatprep.subr.bf16.mxu0 %v7556_v35  ;;  %v7644_v35 = vld [vmem:[%s11051_s1 + $0x7d4] ss:$8 sps:$4 sm:$0xff]  }
 0x182   :  { %2854 = vmatmul.mubr.bf16.vlgmr.msra.gmra.mrb[0].mxu0 %v561_v36  ;;  %v7642_v36 = vld [vmem:[%s11051_s1 + $0x7d0] ss:$8 sps:$4 sm:$0xff]  }
 0x183   :  { %2863 = vmatpush1.bf16.msra.mxu0 %v7554_v37  ;;  %2894 = vmatprep.mubr.bf16.mxu0 %v9109_v38  ;;  %v7647_v37 = vld [vmem:[%s11051_s1 + $0x7e4] ss:$8 sps:$4 sm:$0xff]   ;;  %v9299_v38 = vld [vmem:[%s11052_s0 + $0x10] sm:$0xff] }
 0x184   :  { %2864 = vmatprep.subr.bf16.mxu0 %v7559_v39  ;;  %v7645_v39 = vld [vmem:[%s11051_s1 + $0x7e0] ss:$8 sps:$4 sm:$0xff]  }
 0x187   :  { %2865 = vmatpush1.bf16.msra.mxu0 %v7557_v40  ;;  %v9306_v40 = vrot.slane %v9299_v38, %v8492_v16 }
 0x188   :  { %2866 = vmatprep.subr.bf16.mxu0 %v7562_v41  ;;  %v7650_v41 = vld [vmem:[%s11051_s1 + $0x7f4] ss:$8 sps:$4 sm:$0xff]  }
 0x18b   :  { %2867 = vmatpush1.bf16.msra.mxu0 %v7560_v42  ;;  %v7648_v42 = vld [vmem:[%s11051_s1 + $0x7f0] ss:$8 sps:$4 sm:$0xff]  }
 0x18c   :  { %2868 = vmatprep.subr.bf16.mxu0 %v7565_v43  ;;  %v580_v43 = vcombine.high %v9306_v40, %v9306_v40 }
 0x18f   :  { %2869 = vmatpush1.bf16.msra.mxu0 %v7563_v44  ;;  %v7653_v44 = vld [vmem:[%s11051_s1 + $0x804] ss:$8 sps:$4 sm:$0xff]  }
 0x190   :  { %2870 = vmatprep.subr.bf16.mxu0 %v7568_v45  ;;  %v562_v45 = vcombine.high %v9207_v6, %v9207_v6 }
 0x193   :  { %2871 = vmatpush1.bf16.msra.mxu0 %v7566_v46  ;;  %v7651_v46 = vld [vmem:[%s11051_s1 + $0x800] ss:$8 sps:$4 sm:$0xff]  }
 0x194   :  { %2872 = vmatprep.subr.bf16.mxu0 %v7571_v47  ;;  %v9325_v47 = vrot.slane %v580_v43, %v8492_v16  ;;  %v7737_v43 = vld [vmem:[%s11051_s1 + $0x9c4] ss:$8 sps:$4 sm:$0xff]  }
 0x197   :  { %2873 = vmatpush1.bf16.msra.mxu0 %v7569_v48  ;;  %v7656_v48 = vld [vmem:[%s11051_s1 + $0x814] ss:$8 sps:$4 sm:$0xff]  }
 0x198   :  { %2874 = vmatprep.subr.bf16.mxu0 %v7574_v49  ;;  %v7654_v49 = vld [vmem:[%s11051_s1 + $0x810] ss:$8 sps:$4 sm:$0xff]  }
 0x19b   :  { %2875 = vmatpush1.bf16.msra.mxu0 %v7572_v50  ;;  %v7659_v50 = vld [vmem:[%s11051_s1 + $0x824] ss:$8 sps:$4 sm:$0xff]  }
 0x19c   :  { %2876 = vmatprep.subr.bf16.mxu0 %v7577_v51  ;;  %v7657_v51 = vld [vmem:[%s11051_s1 + $0x820] ss:$8 sps:$4 sm:$0xff]  }
 0x19f   :  { %2877 = vmatpush1.bf16.msra.mxu0 %v7575_v52  ;;  %v7662_v52 = vld [vmem:[%s11051_s1 + $0x834] ss:$8 sps:$4 sm:$0xff]  }
 0x1a0   :  { %2878 = vmatprep.subr.bf16.mxu0 %v7580_v53  ;;  %v7660_v53 = vld [vmem:[%s11051_s1 + $0x830] ss:$8 sps:$4 sm:$0xff]  }
 0x1a3   :  { %2879 = vmatpush1.bf16.msra.mxu0 %v7578_v54  ;;  %v7665_v54 = vld [vmem:[%s11051_s1 + $0x844] ss:$8 sps:$4 sm:$0xff]  }
 0x1a4   :  { %2880 = vmatprep.subr.bf16.mxu0 %v7583_v55  ;;  %v7663_v55 = vld [vmem:[%s11051_s1 + $0x840] ss:$8 sps:$4 sm:$0xff]  }
 0x1a7   :  { %2881 = vmatpush1.bf16.msra.mxu0 %v7581_v56  ;;  %v7668_v56 = vld [vmem:[%s11051_s1 + $0x854] ss:$8 sps:$4 sm:$0xff]  }
 0x1a8   :  { %2882 = vmatprep.subr.bf16.mxu0 %v7586_v57  ;;  %v7666_v57 = vld [vmem:[%s11051_s1 + $0x850] ss:$8 sps:$4 sm:$0xff]  }
 0x1ab   :  { %2883 = vmatpush1.bf16.msra.mxu0 %v7584_v58  ;;  %v7671_v58 = vld [vmem:[%s11051_s1 + $0x864] ss:$8 sps:$4 sm:$0xff]  }
 0x1ac   :  { %2884 = vmatprep.subr.bf16.mxu0 %v7589_v59  ;;  %v7669_v59 = vld [vmem:[%s11051_s1 + $0x860] ss:$8 sps:$4 sm:$0xff]  }
 0x1af   :  { %2885 = vmatpush1.bf16.msra.mxu0 %v7587_v60  ;;  %v7674_v60 = vld [vmem:[%s11051_s1 + $0x874] ss:$8 sps:$4 sm:$0xff]  }
 0x1b0   :  { %2886 = vmatprep.subr.bf16.mxu0 %v7592_v61  ;;  %v7672_v61 = vld [vmem:[%s11051_s1 + $0x870] ss:$8 sps:$4 sm:$0xff]  }
 0x1b3   :  { %2887 = vmatpush1.bf16.msra.mxu0 %v7590_v62  ;;  %v7677_v62 = vld [vmem:[%s11051_s1 + $0x884] ss:$8 sps:$4 sm:$0xff]  }
 0x1b4   :  { %2888 = vmatprep.subr.bf16.mxu0 %v7595_v63  ;;  %v7675_v63 = vld [vmem:[%s11051_s1 + $0x880] ss:$8 sps:$4 sm:$0xff]  }
 0x1b7   :  { %2889 = vmatpush1.bf16.msra.mxu0 %v7593_v0  ;;  %v7680_v0 = vld [vmem:[%s11051_s1 + $0x894] ss:$8 sps:$4 sm:$0xff]  }
 0x1b8   :  { %2890 = vmatprep.subr.bf16.mxu0 %v7598_v1  ;;  %v7678_v1 = vld [vmem:[%s11051_s1 + $0x890] ss:$8 sps:$4 sm:$0xff]  }
 0x1bb   :  { %2891 = vmatpush1.bf16.msra.mxu0 %v7596_v2  ;;  %v7683_v2 = vld [vmem:[%s11051_s1 + $0x8a4] ss:$8 sps:$4 sm:$0xff]  }
 0x1bc   :  { %2892 = vmatprep.subr.bf16.mxu0 %v7601_v3  ;;  %v7681_v3 = vld [vmem:[%s11051_s1 + $0x8a0] ss:$8 sps:$4 sm:$0xff]  }
 0x1bf   :  { %2893 = vmatpush1.bf16.msra.mxu0 %v7599_v4  ;;  %v7686_v4 = vld [vmem:[%s11051_s1 + $0x8b4] ss:$8 sps:$4 sm:$0xff]  }
 0x1c0   :  { %2903 = vmatprep.subr.bf16.mxu0 %v7605_v5  ;;  %v7684_v5 = vld [vmem:[%s11051_s1 + $0x8b0] ss:$8 sps:$4 sm:$0xff]  }
 0x1c2   :  { %2895 = vmatmul.mubr.bf16.vlgmr.msra.gmra.mrb[0].mxu0 %v9207_v6  ;;  %v7689_v6 = vld [vmem:[%s11051_s1 + $0x8c4] ss:$8 sps:$4 sm:$0xff]  }
 0x1c3   :  { %2904 = vmatpush1.bf16.msra.mxu0 %v7603_v7  ;;  %2935 = vmatprep.mubr.bf16.mxu0 %v564_v8  ;;  %v7687_v7 = vld [vmem:[%s11051_s1 + $0x8c0] ss:$8 sps:$4 sm:$0xff]   ;;  %v7692_v8 = vld [vmem:[%s11051_s1 + $0x8d4] ss:$8 sps:$4 sm:$0xff]  }
 0x1c4   :  { %2905 = vmatprep.subr.bf16.mxu0 %v7608_v9  ;;  %v7690_v9 = vld [vmem:[%s11051_s1 + $0x8d0] ss:$8 sps:$4 sm:$0xff]  }
 0x1c7   :  { %2906 = vmatpush1.bf16.msra.mxu0 %v7606_v10  ;;  %v7695_v10 = vld [vmem:[%s11051_s1 + $0x8e4] ss:$8 sps:$4 sm:$0xff]  }
 0x1c8   :  { %2907 = vmatprep.subr.bf16.mxu0 %v7611_v11  ;;  %v7693_v11 = vld [vmem:[%s11051_s1 + $0x8e0] ss:$8 sps:$4 sm:$0xff]  }
 0x1cb   :  { %2908 = vmatpush1.bf16.msra.mxu0 %v7609_v13  ;;  %v7698_v13 = vld [vmem:[%s11051_s1 + $0x8f4] ss:$8 sps:$4 sm:$0xff]  }
 0x1cc   :  { %2909 = vmatprep.subr.bf16.mxu0 %v7614_v14  ;;  %v7696_v14 = vld [vmem:[%s11051_s1 + $0x8f0] ss:$8 sps:$4 sm:$0xff]  }
 0x1cf   :  { %2910 = vmatpush1.bf16.msra.mxu0 %v7612_v15  ;;  %v7701_v15 = vld [vmem:[%s11051_s1 + $0x904] ss:$8 sps:$4 sm:$0xff]  }
 0x1d0   :  { %2911 = vmatprep.subr.bf16.mxu0 %v7617_v17  ;;  %v9423_v17 = vrot.slane %v9306_v40, %v8492_v16  ;;  %v7729_v40 = vld [vmem:[%s11051_s1 + $0x9a0] ss:$8 sps:$4 sm:$0xff]  }
 0x1d3   :  { %2912 = vmatpush1.bf16.msra.mxu0 %v7615_v18  ;;  %v7699_v18 = vld [vmem:[%s11051_s1 + $0x900] ss:$8 sps:$4 sm:$0xff]  }
 0x1d4   :  { %2913 = vmatprep.subr.bf16.mxu0 %v7620_v19  ;;  %v612_v19 = vcombine.high %v9325_v47, %v9325_v47 }
 0x1d7   :  { %2914 = vmatpush1.bf16.msra.mxu0 %v7618_v21  ;;  %v7704_v21 = vld [vmem:[%s11051_s1 + $0x914] ss:$8 sps:$4 sm:$0xff]  }
 0x1d8   :  { %2915 = vmatprep.subr.bf16.mxu0 %v7623_v22  ;;  %v7702_v22 = vld [vmem:[%s11051_s1 + $0x910] ss:$8 sps:$4 sm:$0xff]  }
 0x1db   :  { %2916 = vmatpush1.bf16.msra.mxu0 %v7621_v23  ;;  %v7707_v23 = vld [vmem:[%s11051_s1 + $0x924] ss:$8 sps:$4 sm:$0xff]  }
 0x1dc   :  { %2917 = vmatprep.subr.bf16.mxu0 %v7626_v24  ;;  %v7705_v24 = vld [vmem:[%s11051_s1 + $0x920] ss:$8 sps:$4 sm:$0xff]  }
 0x1df   :  { %2918 = vmatpush1.bf16.msra.mxu0 %v7624_v25  ;;  %v7710_v25 = vld [vmem:[%s11051_s1 + $0x934] ss:$8 sps:$4 sm:$0xff]  }
 0x1e0   :  { %2919 = vmatprep.subr.bf16.mxu0 %v7629_v26  ;;  %v7708_v26 = vld [vmem:[%s11051_s1 + $0x930] ss:$8 sps:$4 sm:$0xff]  }
 0x1e3   :  { %2920 = vmatpush1.bf16.msra.mxu0 %v7627_v27  ;;  %v7713_v27 = vld [vmem:[%s11051_s1 + $0x944] ss:$8 sps:$4 sm:$0xff]  }
 0x1e4   :  { %2921 = vmatprep.subr.bf16.mxu0 %v7632_v28  ;;  %v7711_v28 = vld [vmem:[%s11051_s1 + $0x940] ss:$8 sps:$4 sm:$0xff]  }
 0x1e7   :  { %2922 = vmatpush1.bf16.msra.mxu0 %v7630_v29  ;;  %v7716_v29 = vld [vmem:[%s11051_s1 + $0x954] ss:$8 sps:$4 sm:$0xff]  }
 0x1e8   :  { %2923 = vmatprep.subr.bf16.mxu0 %v7635_v30  ;;  %v7714_v30 = vld [vmem:[%s11051_s1 + $0x950] ss:$8 sps:$4 sm:$0xff]  }
 0x1eb   :  { %2924 = vmatpush1.bf16.msra.mxu0 %v7633_v31  ;;  %v7719_v31 = vld [vmem:[%s11051_s1 + $0x964] ss:$8 sps:$4 sm:$0xff]  }
 0x1ec   :  { %2925 = vmatprep.subr.bf16.mxu0 %v7638_v32  ;;  %v7717_v32 = vld [vmem:[%s11051_s1 + $0x960] ss:$8 sps:$4 sm:$0xff]  }
 0x1ef   :  { %2926 = vmatpush1.bf16.msra.mxu0 %v7636_v33  ;;  %v7722_v33 = vld [vmem:[%s11051_s1 + $0x974] ss:$8 sps:$4 sm:$0xff]  }
 0x1f0   :  { %2927 = vmatprep.subr.bf16.mxu0 %v7641_v20  ;;  %v7720_v20 = vld [vmem:[%s11051_s1 + $0x970] ss:$8 sps:$4 sm:$0xff]  }
 0x1f3   :  { %2928 = vmatpush1.bf16.msra.mxu0 %v7639_v34  ;;  %v7725_v34 = vld [vmem:[%s11051_s1 + $0x984] ss:$8 sps:$4 sm:$0xff]  }
 0x1f4   :  { %2929 = vmatprep.subr.bf16.mxu0 %v7644_v35  ;;  %v7723_v35 = vld [vmem:[%s11051_s1 + $0x980] ss:$8 sps:$4 sm:$0xff]  }
 0x1f7   :  { %2930 = vmatpush1.bf16.msra.mxu0 %v7642_v36  ;;  %v7728_v36 = vld [vmem:[%s11051_s1 + $0x994] ss:$8 sps:$4 sm:$0xff]  }
 0x1f8   :  { %2931 = vmatprep.subr.bf16.mxu0 %v7647_v37  ;;  %v7726_v37 = vld [vmem:[%s11051_s1 + $0x990] ss:$8 sps:$4 sm:$0xff]  }
 0x1fb   :  { %2932 = vmatpush1.bf16.msra.mxu0 %v7645_v39  ;;  %v7731_v39 = vld [vmem:[%s11051_s1 + $0x9a4] ss:$8 sps:$4 sm:$0xff]  }
 0x1fc   :  { %2933 = vmatprep.subr.bf16.mxu0 %v7650_v41  ;;  %v7734_v41 = vld [vmem:[%s11051_s1 + $0x9b4] ss:$8 sps:$4 sm:$0xff]  }
 0x1ff   :  { %2934 = vmatpush1.bf16.msra.mxu0 %v7648_v42  ;;  %v7732_v42 = vld [vmem:[%s11051_s1 + $0x9b0] ss:$8 sps:$4 sm:$0xff]  }
 0x200   :  { %2944 = vmatprep.subr.bf16.mxu0 %v7653_v44  ;;  %v7735_v44 = vld [vmem:[%s11051_s1 + $0x9c0] ss:$8 sps:$4 sm:$0xff]  }
 0x202   :  { %2936 = vmatmul.mubr.bf16.vlgmr.msra.gmra.mrb[0].mxu0 %v562_v45  ;;  %v7740_v45 = vld [vmem:[%s11051_s1 + $0x9d4] ss:$8 sps:$4 sm:$0xff]  }
 0x203   :  { %2945 = vmatpush1.bf16.msra.mxu0 %v7651_v46  ;;  %2976 = vmatprep.mubr.bf16.mxu0 %v9325_v47  ;;  %v7738_v46 = vld [vmem:[%s11051_s1 + $0x9d0] ss:$8 sps:$4 sm:$0xff]   ;;  %v565_v47 = vcombine.high %v9299_v38, %v9299_v38 }
 0x204   :  { %2946 = vmatprep.subr.bf16.mxu0 %v7656_v48  ;;  %v7743_v48 = vld [vmem:[%s11051_s1 + $0x9e4] ss:$8 sps:$4 sm:$0xff]   ;;  %v7744_v38 = vld [vmem:[%s11051_s1 + $0x9f0] ss:$8 sps:$4 sm:$0xff]  }
 0x207   :  { %2947 = vmatpush1.bf16.msra.mxu0 %v7654_v49  ;;  %v7741_v49 = vld [vmem:[%s11051_s1 + $0x9e0] ss:$8 sps:$4 sm:$0xff]  }
 0x208   :  { %2948 = vmatprep.subr.bf16.mxu0 %v7659_v50  ;;  %v9518_v50 = vrot.slane %v565_v47, %v8492_v16  ;;  %v7792_v47 = vld [vmem:[%s11051_s1 + $0xaf0] ss:$8 sps:$4 sm:$0xff]  }
 0x20b   :  { %2949 = vmatpush1.bf16.msra.mxu0 %v7657_v51  ;;  %v7746_v51 = vld [vmem:[%s11051_s1 + $0x9f4] ss:$8 sps:$4 sm:$0xff]  }
 0x20c   :  { %2950 = vmatprep.subr.bf16.mxu0 %v7662_v52  ;;  %v581_v52 = vcombine.high %v9518_v50, %v9518_v50 }
 0x20f   :  { %2951 = vmatpush1.bf16.msra.mxu0 %v7660_v53  ;;  %v7749_v53 = vld [vmem:[%s11051_s1 + $0xa04] ss:$8 sps:$4 sm:$0xff]  }
 0x210   :  { %2952 = vmatprep.subr.bf16.mxu0 %v7665_v54  ;;  %v610_v54 = vcombine.high %v9423_v17, %v9423_v17 }
 0x213   :  { %2953 = vmatpush1.bf16.msra.mxu0 %v7663_v55  ;;  %v7747_v55 = vld [vmem:[%s11051_s1 + $0xa00] ss:$8 sps:$4 sm:$0xff]  }
 0x214   :  { %2954 = vmatprep.subr.bf16.mxu0 %v7668_v56  ;;  %v9537_v56 = vrot.slane %v581_v52, %v8492_v16  ;;  %v7796_v52 = vld [vmem:[%s11051_s1 + $0xb00] ss:$8 sps:$4 sm:$0xff]  }
 0x217   :  { %2955 = vmatpush1.bf16.msra.mxu0 %v7666_v57  ;;  %v7752_v57 = vld [vmem:[%s11051_s1 + $0xa14] ss:$8 sps:$4 sm:$0xff]  }
 0x218   :  { %2956 = vmatprep.subr.bf16.mxu0 %v7671_v58  ;;  %v7750_v58 = vld [vmem:[%s11051_s1 + $0xa10] ss:$8 sps:$4 sm:$0xff]  }
 0x21b   :  { %2957 = vmatpush1.bf16.msra.mxu0 %v7669_v59  ;;  %v7755_v59 = vld [vmem:[%s11051_s1 + $0xa24] ss:$8 sps:$4 sm:$0xff]  }
 0x21c   :  { %2958 = vmatprep.subr.bf16.mxu0 %v7674_v60  ;;  %v7753_v60 = vld [vmem:[%s11051_s1 + $0xa20] ss:$8 sps:$4 sm:$0xff]  }
 0x21f   :  { %2959 = vmatpush1.bf16.msra.mxu0 %v7672_v61  ;;  %v7758_v61 = vld [vmem:[%s11051_s1 + $0xa34] ss:$8 sps:$4 sm:$0xff]  }
 0x220   :  { %2960 = vmatprep.subr.bf16.mxu0 %v7677_v62  ;;  %v7756_v62 = vld [vmem:[%s11051_s1 + $0xa30] ss:$8 sps:$4 sm:$0xff]  }
 0x223   :  { %2961 = vmatpush1.bf16.msra.mxu0 %v7675_v63  ;;  %v7761_v63 = vld [vmem:[%s11051_s1 + $0xa44] ss:$8 sps:$4 sm:$0xff]  }
 0x224   :  { %2962 = vmatprep.subr.bf16.mxu0 %v7680_v0  ;;  %v7759_v0 = vld [vmem:[%s11051_s1 + $0xa40] ss:$8 sps:$4 sm:$0xff]  }
 0x227   :  { %2963 = vmatpush1.bf16.msra.mxu0 %v7678_v1  ;;  %v7764_v1 = vld [vmem:[%s11051_s1 + $0xa54] ss:$8 sps:$4 sm:$0xff]  }
 0x228   :  { %2964 = vmatprep.subr.bf16.mxu0 %v7683_v2  ;;  %v7762_v2 = vld [vmem:[%s11051_s1 + $0xa50] ss:$8 sps:$4 sm:$0xff]  }
 0x22b   :  { %2965 = vmatpush1.bf16.msra.mxu0 %v7681_v3  ;;  %v7767_v3 = vld [vmem:[%s11051_s1 + $0xa64] ss:$8 sps:$4 sm:$0xff]  }
 0x22c   :  { %2966 = vmatprep.subr.bf16.mxu0 %v7686_v4  ;;  %v7856_v4 = vld [vmem:[%s11053_s3 + $0x4] ss:$16 sps:$4 sm:$0xff]  }
 0x22d   :  { %3559 = vmatprep.subr.bf16.mxu1 %v7856_v4  ;;  %v7814_v4 = vld [vmem:[%s11051_s1 + $0xb60] ss:$8 sps:$4 sm:$0xff]  }
 0x22f   :  { %2967 = vmatpush1.bf16.msra.mxu0 %v7684_v5  ;;  %v7858_v5 = vld [vmem:[%s11053_s3] ss:$16 sps:$4 sm:$0xff]  }
 0x230   :  { %2968 = vmatprep.subr.bf16.mxu0 %v7689_v6  ;;  %v7859_v6 = vld [vmem:[%s11053_s3 + $0x24] ss:$16 sps:$4 sm:$0xff]   ;;  %3560 = vmatpush1.bf16.msra.mxu1 %v7858_v5 }
 0x231   :  { %3561 = vmatprep.subr.bf16.mxu1 %v7859_v6  ;;  %v7819_v5 = vld [vmem:[%s11051_s1 + $0xb74] ss:$8 sps:$4 sm:$0xff]   ;;  %v7817_v6 = vld [vmem:[%s11051_s1 + $0xb70] ss:$8 sps:$4 sm:$0xff]  }
 0x233   :  { %2969 = vmatpush1.bf16.msra.mxu0 %v7687_v7  ;;  %v7765_v7 = vld [vmem:[%s11051_s1 + $0xa60] ss:$8 sps:$4 sm:$0xff]  }
 0x234   :  { %2970 = vmatprep.subr.bf16.mxu0 %v7692_v8  ;;  %v7861_v8 = vld [vmem:[%s11053_s3 + $0x20] ss:$16 sps:$4 sm:$0xff]  }
 0x235   :  { %3562 = vmatpush1.bf16.msra.mxu1 %v7861_v8  ;;  %v7820_v8 = vld [vmem:[%s11051_s1 + $0xb80] ss:$8 sps:$4 sm:$0xff]  }
 0x237   :  { %2971 = vmatpush1.bf16.msra.mxu0 %v7690_v9  ;;  %v7862_v9 = vld [vmem:[%s11053_s3 + $0x44] ss:$16 sps:$4 sm:$0xff]  }
 0x238   :  { %2972 = vmatprep.subr.bf16.mxu0 %v7695_v10  ;;  %v7770_v10 = vld [vmem:[%s11051_s1 + $0xa74] ss:$8 sps:$4 sm:$0xff]   ;;  %3563 = vmatprep.subr.bf16.mxu1 %v7862_v9 }
 0x239   :  { %v7825_v9 = vld [vmem:[%s11051_s1 + $0xb94] ss:$8 sps:$4 sm:$0xff]  }
 0x23b   :  { %2973 = vmatpush1.bf16.msra.mxu0 %v7693_v11  ;;  %v7768_v11 = vld [vmem:[%s11051_s1 + $0xa70] ss:$8 sps:$4 sm:$0xff]  }
 0x23c   :  { %2974 = vmatprep.subr.bf16.mxu0 %v7698_v13  ;;  %v7864_v13 = vld [vmem:[%s11053_s3 + $0x40] ss:$16 sps:$4 sm:$0xff]  }
 0x23d   :  { %3564 = vmatpush1.bf16.msra.mxu1 %v7864_v13  ;;  %v7826_v13 = vld [vmem:[%s11051_s1 + $0xba0] ss:$8 sps:$4 sm:$0xff]  }
 0x23f   :  { %2975 = vmatpush1.bf16.msra.mxu0 %v7696_v14  ;;  %v7865_v14 = vld [vmem:[%s11053_s3 + $0x64] ss:$16 sps:$4 sm:$0xff]  }
 0x240   :  { %2985 = vmatprep.subr.bf16.mxu0 %v7701_v15  ;;  %v7773_v15 = vld [vmem:[%s11051_s1 + $0xa84] ss:$8 sps:$4 sm:$0xff]   ;;  %3565 = vmatprep.subr.bf16.mxu1 %v7865_v14  ;;  %v7831_v14 = vld [vmem:[%s11051_s1 + $0xbb4] ss:$8 sps:$4 sm:$0xff]  }
 0x242   :  { %2977 = vmatmul.mubr.bf16.vlgmr.msra.gmra.mrb[0].mxu0 %v9423_v17  ;;  %v7771_v17 = vld [vmem:[%s11051_s1 + $0xa80] ss:$8 sps:$4 sm:$0xff]  }
 0x243   :  { %2986 = vmatpush1.bf16.msra.mxu0 %v7699_v18  ;;  %3017 = vmatprep.mubr.bf16.mxu0 %v612_v19  ;;  %v7867_v18 = vld [vmem:[%s11053_s3 + $0x60] ss:$16 sps:$4 sm:$0xff]   ;;  %v7868_v19 = vld [vmem:[%s11053_s3 + $0x84] ss:$16 sps:$4 sm:$0xff]  }
 0x244   :  { %2987 = vmatprep.subr.bf16.mxu0 %v7704_v21  ;;  %v7776_v21 = vld [vmem:[%s11051_s1 + $0xa94] ss:$8 sps:$4 sm:$0xff]   ;;  %3566 = vmatpush1.bf16.msra.mxu1 %v7867_v18  ;;  %v7832_v18 = vld [vmem:[%s11051_s1 + $0xbc0] ss:$8 sps:$4 sm:$0xff]  }
 0x245   :  { %3567 = vmatprep.subr.bf16.mxu1 %v7868_v19  ;;  %v7837_v19 = vld [vmem:[%s11051_s1 + $0xbd4] ss:$8 sps:$4 sm:$0xff]  }
 0x247   :  { %2988 = vmatpush1.bf16.msra.mxu0 %v7702_v22  ;;  %v7774_v22 = vld [vmem:[%s11051_s1 + $0xa90] ss:$8 sps:$4 sm:$0xff]  }
 0x248   :  { %2989 = vmatprep.subr.bf16.mxu0 %v7707_v23  ;;  %v7870_v23 = vld [vmem:[%s11053_s3 + $0x80] ss:$16 sps:$4 sm:$0xff]  }
 0x249   :  { %3568 = vmatpush1.bf16.msra.mxu1 %v7870_v23  ;;  %v7838_v23 = vld [vmem:[%s11051_s1 + $0xbe0] ss:$8 sps:$4 sm:$0xff]  }
 0x24b   :  { %2990 = vmatpush1.bf16.msra.mxu0 %v7705_v24  ;;  %v7871_v24 = vld [vmem:[%s11053_s3 + $0xa4] ss:$16 sps:$4 sm:$0xff]  }
 0x24c   :  { %2991 = vmatprep.subr.bf16.mxu0 %v7710_v25  ;;  %v7779_v25 = vld [vmem:[%s11051_s1 + $0xaa4] ss:$8 sps:$4 sm:$0xff]   ;;  %3569 = vmatprep.subr.bf16.mxu1 %v7871_v24  ;;  %v7843_v24 = vld [vmem:[%s11051_s1 + $0xbf4] ss:$8 sps:$4 sm:$0xff]  }
 0x24f   :  { %2992 = vmatpush1.bf16.msra.mxu0 %v7708_v26  ;;  %v7777_v26 = vld [vmem:[%s11051_s1 + $0xaa0] ss:$8 sps:$4 sm:$0xff]  }
 0x250   :  { %2993 = vmatprep.subr.bf16.mxu0 %v7713_v27  ;;  %v7873_v27 = vld [vmem:[%s11053_s3 + $0xa0] ss:$16 sps:$4 sm:$0xff]  }
 0x251   :  { %3570 = vmatpush1.bf16.msra.mxu1 %v7873_v27 }
 0x253   :  { %2994 = vmatpush1.bf16.msra.mxu0 %v7711_v28  ;;  %v7874_v28 = vld [vmem:[%s11053_s3 + $0xc4] ss:$16 sps:$4 sm:$0xff]  }
 0x254   :  { %2995 = vmatprep.subr.bf16.mxu0 %v7716_v29  ;;  %v7782_v29 = vld [vmem:[%s11051_s1 + $0xab4] ss:$8 sps:$4 sm:$0xff]   ;;  %3571 = vmatprep.subr.bf16.mxu1 %v7874_v28  ;;  %v7844_v28 = vld [vmem:[%s11051_s1 + $0xc00] ss:$8 sps:$4 sm:$0xff]  }
 0x257   :  { %2996 = vmatpush1.bf16.msra.mxu0 %v7714_v30  ;;  %v7876_v30 = vld [vmem:[%s11053_s3 + $0xc0] ss:$16 sps:$4 sm:$0xff]  }
 0x258   :  { %2997 = vmatprep.subr.bf16.mxu0 %v7719_v31  ;;  %v7780_v31 = vld [vmem:[%s11051_s1 + $0xab0] ss:$8 sps:$4 sm:$0xff]   ;;  %3572 = vmatpush1.bf16.msra.mxu1 %v7876_v30 }
 0x259   :  { %v7847_v30 = vld [vmem:[%s11051_s1 + $0xc10] ss:$8 sps:$4 sm:$0xff]  }
 0x25b   :  { %2998 = vmatpush1.bf16.msra.mxu0 %v7717_v32  ;;  %v7877_v32 = vld [vmem:[%s11053_s3 + $0xe4] ss:$16 sps:$4 sm:$0xff]  }
 0x25c   :  { %2999 = vmatprep.subr.bf16.mxu0 %v7722_v33  ;;  %v7785_v33 = vld [vmem:[%s11051_s1 + $0xac4] ss:$8 sps:$4 sm:$0xff]   ;;  %3573 = vmatprep.subr.bf16.mxu1 %v7877_v32 }
 0x25d   :  { %v7852_v32 = vld [vmem:[%s11051_s1 + $0xc24] ss:$8 sps:$4 sm:$0xff]  }
 0x25f   :  { %3000 = vmatpush1.bf16.msra.mxu0 %v7720_v20  ;;  %v7879_v20 = vld [vmem:[%s11053_s3 + $0xe0] ss:$16 sps:$4 sm:$0xff]  }
 0x260   :  { %3001 = vmatprep.subr.bf16.mxu0 %v7725_v34  ;;  %v7783_v34 = vld [vmem:[%s11051_s1 + $0xac0] ss:$8 sps:$4 sm:$0xff]   ;;  %3574 = vmatpush1.bf16.msra.mxu1 %v7879_v20  ;;  %v7855_v20 = vld [vmem:[%s11051_s1 + $0xc34] ss:$8 sps:$4 sm:$0xff]  }
 0x263   :  { %3002 = vmatpush1.bf16.msra.mxu0 %v7723_v35  ;;  %v7880_v35 = vld [vmem:[%s11053_s3 + $0x104] ss:$16 sps:$4 sm:$0xff]  }
 0x264   :  { %3003 = vmatprep.subr.bf16.mxu0 %v7728_v36  ;;  %v7788_v36 = vld [vmem:[%s11051_s1 + $0xad4] ss:$8 sps:$4 sm:$0xff]   ;;  %3575 = vmatprep.subr.bf16.mxu1 %v7880_v35  ;;  %v6345_v35 = vld.sshfl [vmem:[%s11052_s0 + $0x18] sm:$0x1 pattern:$0x75316420] }
 0x267   :  { %3004 = vmatpush1.bf16.msra.mxu0 %v7726_v37  ;;  %v7882_v37 = vld [vmem:[%s11053_s3 + $0x100] ss:$16 sps:$4 sm:$0xff]  }
 0x268   :  { %3005 = vmatprep.subr.bf16.mxu0 %v7731_v39  ;;  %v7786_v39 = vld [vmem:[%s11051_s1 + $0xad0] ss:$8 sps:$4 sm:$0xff]   ;;  %3576 = vmatpush1.bf16.msra.mxu1 %v7882_v37  ;;  %v7898_v37 = vld [vmem:[%s11053_s3 + $0x1c4] ss:$16 sps:$4 sm:$0xff]  }
 0x26b   :  { %3006 = vmatpush1.bf16.msra.mxu0 %v7729_v40  ;;  %v7883_v40 = vld [vmem:[%s11053_s3 + $0x124] ss:$16 sps:$4 sm:$0xff]  }
 0x26c   :  { %3007 = vmatprep.subr.bf16.mxu0 %v7734_v41  ;;  %v7791_v41 = vld [vmem:[%s11051_s1 + $0xae4] ss:$8 sps:$4 sm:$0xff]   ;;  %3577 = vmatprep.subr.bf16.mxu1 %v7883_v40 }
 0x26d   :  { %v7901_v40 = vld [vmem:[%s11053_s3 + $0x1e4] ss:$16 sps:$4 sm:$0xff]  }
 0x26f   :  { %3008 = vmatpush1.bf16.msra.mxu0 %v7732_v42  ;;  %v7885_v42 = vld [vmem:[%s11053_s3 + $0x120] ss:$16 sps:$4 sm:$0xff]  }
 0x270   :  { %3009 = vmatprep.subr.bf16.mxu0 %v7737_v43  ;;  %v7789_v43 = vld [vmem:[%s11051_s1 + $0xae0] ss:$8 sps:$4 sm:$0xff]   ;;  %3578 = vmatpush1.bf16.msra.mxu1 %v7885_v42  ;;  %v9865_v42 = vsub.s32 0, %v8483_v12 }
 0x273   :  { %3010 = vmatpush1.bf16.msra.mxu0 %v7735_v44  ;;  %v7886_v44 = vld [vmem:[%s11053_s3 + $0x144] ss:$16 sps:$4 sm:$0xff]  }
 0x274   :  { %3011 = vmatprep.subr.bf16.mxu0 %v7740_v45  ;;  %v7794_v45 = vld [vmem:[%s11051_s1 + $0xaf4] ss:$8 sps:$4 sm:$0xff]   ;;  %3579 = vmatprep.subr.bf16.mxu1 %v7886_v44  ;;  %v9871_v44 = vsub.s32 1, %v8483_v12 }
 0x277   :  { %3012 = vmatpush1.bf16.msra.mxu0 %v7738_v46  ;;  %v7888_v46 = vld [vmem:[%s11053_s3 + $0x140] ss:$16 sps:$4 sm:$0xff]  }
 0x278   :  { %3013 = vmatprep.subr.bf16.mxu0 %v7743_v48  ;;  %v7889_v48 = vld [vmem:[%s11053_s3 + $0x164] ss:$16 sps:$4 sm:$0xff]   ;;  %3580 = vmatpush1.bf16.msra.mxu1 %v7888_v46 }
 0x279   :  { %3581 = vmatprep.subr.bf16.mxu1 %v7889_v48 }
 0x27b   :  { %3014 = vmatpush1.bf16.msra.mxu0 %v7741_v49  ;;  %v7798_v49 = vld [vmem:[%s11051_s1 + $0xb04] ss:$8 sps:$4 sm:$0xff]  }
 0x27c   :  { %3015 = vmatprep.subr.bf16.mxu0 %v7746_v51  ;;  %v9704_v51 = vrot.slane %v9518_v50, %v8492_v16  ;;  %v7801_v50 = vld [vmem:[%s11051_s1 + $0xb14] ss:$8 sps:$4 sm:$0xff]  }
 0x27e   :  { %v611_v27 = vcombine.high %v9704_v51, %v9704_v51 }
 0x27f   :  { %3016 = vmatpush1.bf16.msra.mxu0 %v7744_v38  ;;  %v7891_v38 = vld [vmem:[%s11053_s3 + $0x160] ss:$16 sps:$4 sm:$0xff]  }
 0x280   :  { %3026 = vmatprep.subr.bf16.mxu0 %v7749_v53  ;;  %v613_v53 = vcombine.high %v9537_v56, %v9537_v56  ;;  %3582 = vmatpush1.bf16.msra.mxu1 %v7891_v38 }
 0x282   :  { %3018 = vmatmul.mubr.bf16.vlgmr.msra.gmra.mrb[0].mxu0 %v610_v54  ;;  %v7892_v54 = vld [vmem:[%s11053_s3 + $0x184] ss:$16 sps:$4 sm:$0xff]  }
 0x283   :  { %3027 = vmatpush1.bf16.msra.mxu0 %v7747_v55  ;;  %3058 = vmatprep.mubr.bf16.mxu0 %v9537_v56  ;;  %v7894_v55 = vld [vmem:[%s11053_s3 + $0x180] ss:$16 sps:$4 sm:$0xff]  }
 0x284   :  { %3028 = vmatprep.subr.bf16.mxu0 %v7752_v57  ;;  %v7799_v56 = vld [vmem:[%s11051_s1 + $0xb10] ss:$8 sps:$4 sm:$0xff]   ;;  %v7895_v57 = vld [vmem:[%s11053_s3 + $0x1a4] ss:$16 sps:$4 sm:$0xff]   ;;  %3583 = vmatprep.subr.bf16.mxu1 %v7892_v54 }
 0x285   :  { %3584 = vmatpush1.bf16.msra.mxu1 %v7894_v55  ;;  %v7904_v55 = vld [vmem:[%s11053_s3 + $0x8] ss:$16 sps:$4 sm:$0xff]  }
 0x286   :  { %3585 = vmatprep.subr.bf16.mxu1 %v7895_v57  ;;  %v7909_v57 = vld [vmem:[%s11053_s3 + $0x2c] ss:$16 sps:$4 sm:$0xff]  }
 0x287   :  { %3029 = vmatpush1.bf16.msra.mxu0 %v7750_v58  ;;  %v7804_v58 = vld [vmem:[%s11051_s1 + $0xb24] ss:$8 sps:$4 sm:$0xff]  }
 0x288   :  { %3030 = vmatprep.subr.bf16.mxu0 %v7755_v59  ;;  %v7897_v59 = vld [vmem:[%s11053_s3 + $0x1a0] ss:$16 sps:$4 sm:$0xff]  }
 0x289   :  { %3586 = vmatpush1.bf16.msra.mxu1 %v7897_v59  ;;  %v7912_v59 = vld [vmem:[%s11053_s3 + $0x4c] ss:$16 sps:$4 sm:$0xff]  }
 0x28a   :  { %3587 = vmatprep.subr.bf16.mxu1 %v7898_v37  ;;  %v7967_v37 = vld [vmem:[%s11054_s5 + $0xa0] ss:$16 sps:$4 sm:$0xff]  }
 0x28b   :  { %3031 = vmatpush1.bf16.msra.mxu0 %v7753_v60  ;;  %v7802_v60 = vld [vmem:[%s11051_s1 + $0xb20] ss:$8 sps:$4 sm:$0xff]  }
 0x28c   :  { %3032 = vmatprep.subr.bf16.mxu0 %v7758_v61  ;;  %v7807_v61 = vld [vmem:[%s11051_s1 + $0xb34] ss:$8 sps:$4 sm:$0xff]  }
 0x28f   :  { %3033 = vmatpush1.bf16.msra.mxu0 %v7756_v62  ;;  %v7805_v62 = vld [vmem:[%s11051_s1 + $0xb30] ss:$8 sps:$4 sm:$0xff]  }
 0x290   :  { %3034 = vmatprep.subr.bf16.mxu0 %v7761_v63  ;;  %v7810_v63 = vld [vmem:[%s11051_s1 + $0xb44] ss:$8 sps:$4 sm:$0xff]  }
 0x293   :  { %3035 = vmatpush1.bf16.msra.mxu0 %v7759_v0  ;;  %v7808_v0 = vld [vmem:[%s11051_s1 + $0xb40] ss:$8 sps:$4 sm:$0xff]  }
 0x294   :  { %3036 = vmatprep.subr.bf16.mxu0 %v7764_v1  ;;  %v7813_v1 = vld [vmem:[%s11051_s1 + $0xb54] ss:$8 sps:$4 sm:$0xff]  }
 0x297   :  { %3037 = vmatpush1.bf16.msra.mxu0 %v7762_v2  ;;  %v7811_v2 = vld [vmem:[%s11051_s1 + $0xb50] ss:$8 sps:$4 sm:$0xff]  }
 0x298   :  { %3038 = vmatprep.subr.bf16.mxu0 %v7767_v3  ;;  %v7816_v3 = vld [vmem:[%s11051_s1 + $0xb64] ss:$8 sps:$4 sm:$0xff]  }
 0x29b   :  { %3039 = vmatpush1.bf16.msra.mxu0 %v7765_v7  ;;  %v7822_v7 = vld [vmem:[%s11051_s1 + $0xb84] ss:$8 sps:$4 sm:$0xff]  }
 0x29c   :  { %3040 = vmatprep.subr.bf16.mxu0 %v7770_v10  ;;  %v7823_v10 = vld [vmem:[%s11051_s1 + $0xb90] ss:$8 sps:$4 sm:$0xff]  }
 0x29f   :  { %3041 = vmatpush1.bf16.msra.mxu0 %v7768_v11  ;;  %v7828_v11 = vld [vmem:[%s11051_s1 + $0xba4] ss:$8 sps:$4 sm:$0xff]  }
 0x2a0   :  { %3042 = vmatprep.subr.bf16.mxu0 %v7773_v15  ;;  %v7829_v15 = vld [vmem:[%s11051_s1 + $0xbb0] ss:$8 sps:$4 sm:$0xff]  }
 0x2a3   :  { %3043 = vmatpush1.bf16.msra.mxu0 %v7771_v17  ;;  %v7834_v17 = vld [vmem:[%s11051_s1 + $0xbc4] ss:$8 sps:$4 sm:$0xff]  }
 0x2a4   :  { %3044 = vmatprep.subr.bf16.mxu0 %v7776_v21  ;;  %v7835_v21 = vld [vmem:[%s11051_s1 + $0xbd0] ss:$8 sps:$4 sm:$0xff]  }
 0x2a7   :  { %3045 = vmatpush1.bf16.msra.mxu0 %v7774_v22  ;;  %v7840_v22 = vld [vmem:[%s11051_s1 + $0xbe4] ss:$8 sps:$4 sm:$0xff]  }
 0x2a8   :  { %3046 = vmatprep.subr.bf16.mxu0 %v7779_v25  ;;  %v7841_v25 = vld [vmem:[%s11051_s1 + $0xbf0] ss:$8 sps:$4 sm:$0xff]  }
 0x2ab   :  { %3047 = vmatpush1.bf16.msra.mxu0 %v7777_v26  ;;  %v7846_v26 = vld [vmem:[%s11051_s1 + $0xc04] ss:$8 sps:$4 sm:$0xff]  }
 0x2ac   :  { %3048 = vmatprep.subr.bf16.mxu0 %v7782_v29  ;;  %v7849_v29 = vld [vmem:[%s11051_s1 + $0xc14] ss:$8 sps:$4 sm:$0xff]  }
 0x2af   :  { %3049 = vmatpush1.bf16.msra.mxu0 %v7780_v31  ;;  %v8373_v31 = vmov 0  }
 0x2b0   :  { %3050 = vmatprep.subr.bf16.mxu0 %v7785_v33  ;;  %v7850_v33 = vld [vmem:[%s11051_s1 + $0xc20] ss:$8 sps:$4 sm:$0xff]  }
 0x2b3   :  { %3051 = vmatpush1.bf16.msra.mxu0 %v7783_v34  ;;  %v7853_v34 = vld [vmem:[%s11051_s1 + $0xc30] ss:$8 sps:$4 sm:$0xff]  }
 0x2b4   :  { %3052 = vmatprep.subr.bf16.mxu0 %v7788_v36  ;;  %v627_v36 = vrot.slane %v6345_v35, %v8492_v16  ;;  %v7903_v16 = vld [vmem:[%s11053_s3 + $0x1e0] ss:$16 sps:$4 sm:$0xff]  }
 0x2b5   :  { %v7964_v35 = vld [vmem:[%s11054_s5 + $0x80] ss:$16 sps:$4 sm:$0xff]  }
 0x2b7   :  { %3053 = vmatpush1.bf16.msra.mxu0 %v7786_v39  ;;  %v7900_v39 = vld [vmem:[%s11053_s3 + $0x1c0] ss:$16 sps:$4 sm:$0xff]  }
 0x2b8   :  { %3054 = vmatprep.subr.bf16.mxu0 %v7791_v41  ;;  %3588 = vmatpush1.bf16.msra.mxu1 %v7900_v39  ;;  %v7906_v41 = vld [vmem:[%s11053_s3 + $0xc] ss:$16 sps:$4 sm:$0xff]   ;;  %v7972_v39 = vld [vmem:[%s11054_s5 + $0xc4] ss:$16 sps:$4 sm:$0xff]  }
 0x2b9   :  { %3589 = vmatprep.subr.bf16.mxu1 %v7901_v40  ;;  %v7970_v40 = vld [vmem:[%s11054_s5 + $0xc0] ss:$16 sps:$4 sm:$0xff]  }
 0x2bb   :  { %3055 = vmatpush1.bf16.msra.mxu0 %v7789_v43  ;;  %v451_v43 = vld [vmem:[%s11055_s2] sm:$0x3] }
 0x2bc   :  { %3056 = vmatprep.subr.bf16.mxu0 %v7794_v45  ;;  %3590 = vmatpush1.bf16.msra.mxu1 %v7903_v16  ;;  %v456_v45 = vrot.slane %v451_v43, %v9865_v42  ;;  %v460_v46 = vrot.slane %v451_v43, %v9871_v44  ;;  %v7975_v16 = vld [vmem:[%s11054_s5 + $0xe4] ss:$16 sps:$4 sm:$0xff]  }
 0x2bd   :  { %3600 = vmatprep.subr.bf16.mxu1 %v7906_v41  ;;  %v7973_v41 = vld [vmem:[%s11054_s5 + $0xe0] ss:$16 sps:$4 sm:$0xff]   ;;  %v7978_v43 = vld [vmem:[%s11054_s5 + $0x104] ss:$16 sps:$4 sm:$0xff]  }
 0x2bf   :  { %3057 = vmatpush1.bf16.msra.mxu0 %v7792_v47 }
 0x2c0   :  { %3067 = vmatprep.subr.bf16.mxu0 %v7798_v49 }
 0x2c2   :  { %3059 = vmatmul.mubr.bf16.vlgmr.msra.gmra.mrb[0].mxu0 %v9704_v51 }
 0x2c3   :  { %3068 = vmatpush1.bf16.msra.mxu0 %v7796_v52  ;;  %3099 = vmatprep.mubr.bf16.mxu0 %v613_v53 }
 0x2c4   :  { %3069 = vmatprep.subr.bf16.mxu0 %v7801_v50 }
 0x2c7   :  { %3070 = vmatpush1.bf16.msra.mxu0 %v7799_v56 }
 0x2c8   :  { %3071 = vmatprep.subr.bf16.mxu0 %v7804_v58  ;;  %v7907_v58 = vld [vmem:[%s11053_s3 + $0x28] ss:$16 sps:$4 sm:$0xff]  }
 0x2cb   :  { %3072 = vmatpush1.bf16.msra.mxu0 %v7802_v60  ;;  %v7910_v60 = vld [vmem:[%s11053_s3 + $0x48] ss:$16 sps:$4 sm:$0xff]  }
 0x2cc   :  { %3073 = vmatprep.subr.bf16.mxu0 %v7807_v61  ;;  %v7915_v61 = vld [vmem:[%s11053_s3 + $0x6c] ss:$16 sps:$4 sm:$0xff]  }
 0x2cf   :  { %3074 = vmatpush1.bf16.msra.mxu0 %v7805_v62  ;;  %v7913_v62 = vld [vmem:[%s11053_s3 + $0x68] ss:$16 sps:$4 sm:$0xff]  }
 0x2d0   :  { %3075 = vmatprep.subr.bf16.mxu0 %v7810_v63  ;;  %v7918_v63 = vld [vmem:[%s11053_s3 + $0x8c] ss:$16 sps:$4 sm:$0xff]  }
 0x2d3   :  { %3076 = vmatpush1.bf16.msra.mxu0 %v7808_v0  ;;  %v7916_v0 = vld [vmem:[%s11053_s3 + $0x88] ss:$16 sps:$4 sm:$0xff]  }
 0x2d4   :  { %3077 = vmatprep.subr.bf16.mxu0 %v7813_v1  ;;  %v7921_v1 = vld [vmem:[%s11053_s3 + $0xac] ss:$16 sps:$4 sm:$0xff]  }
 0x2d7   :  { %3078 = vmatpush1.bf16.msra.mxu0 %v7811_v2  ;;  %v7919_v2 = vld [vmem:[%s11053_s3 + $0xa8] ss:$16 sps:$4 sm:$0xff]  }
 0x2d8   :  { %3079 = vmatprep.subr.bf16.mxu0 %v7816_v3  ;;  %v7924_v3 = vld [vmem:[%s11053_s3 + $0xcc] ss:$16 sps:$4 sm:$0xff]  }
 0x2db   :  { %3080 = vmatpush1.bf16.msra.mxu0 %v7814_v4  ;;  %v7922_v4 = vld [vmem:[%s11053_s3 + $0xc8] ss:$16 sps:$4 sm:$0xff]  }
 0x2dc   :  { %3081 = vmatprep.subr.bf16.mxu0 %v7819_v5  ;;  %v7927_v5 = vld [vmem:[%s11053_s3 + $0xec] ss:$16 sps:$4 sm:$0xff]  }
 0x2df   :  { %3082 = vmatpush1.bf16.msra.mxu0 %v7817_v6  ;;  %v7925_v6 = vld [vmem:[%s11053_s3 + $0xe8] ss:$16 sps:$4 sm:$0xff]  }
 0x2e0   :  { %3083 = vmatprep.subr.bf16.mxu0 %v7822_v7  ;;  %v7930_v7 = vld [vmem:[%s11053_s3 + $0x10c] ss:$16 sps:$4 sm:$0xff]  }
 0x2e3   :  { %3084 = vmatpush1.bf16.msra.mxu0 %v7820_v8  ;;  %v7928_v8 = vld [vmem:[%s11053_s3 + $0x108] ss:$16 sps:$4 sm:$0xff]  }
 0x2e4   :  { %3085 = vmatprep.subr.bf16.mxu0 %v7825_v9  ;;  %v7933_v9 = vld [vmem:[%s11053_s3 + $0x12c] ss:$16 sps:$4 sm:$0xff]  }
 0x2e7   :  { %3086 = vmatpush1.bf16.msra.mxu0 %v7823_v10  ;;  %v7931_v10 = vld [vmem:[%s11053_s3 + $0x128] ss:$16 sps:$4 sm:$0xff]  }
 0x2e8   :  { %3087 = vmatprep.subr.bf16.mxu0 %v7828_v11  ;;  %v7936_v11 = vld [vmem:[%s11053_s3 + $0x14c] ss:$16 sps:$4 sm:$0xff]  }
 0x2eb   :  { %3088 = vmatpush1.bf16.msra.mxu0 %v7826_v13  ;;  %v7934_v13 = vld [vmem:[%s11053_s3 + $0x148] ss:$16 sps:$4 sm:$0xff]  }
 0x2ec   :  { %3089 = vmatprep.subr.bf16.mxu0 %v7831_v14  ;;  %v7939_v14 = vld [vmem:[%s11053_s3 + $0x16c] ss:$16 sps:$4 sm:$0xff]  }
 0x2ef   :  { %3090 = vmatpush1.bf16.msra.mxu0 %v7829_v15  ;;  %v7937_v15 = vld [vmem:[%s11053_s3 + $0x168] ss:$16 sps:$4 sm:$0xff]  }
 0x2f0   :  { %3091 = vmatprep.subr.bf16.mxu0 %v7834_v17  ;;  %v7942_v17 = vld [vmem:[%s11053_s3 + $0x18c] ss:$16 sps:$4 sm:$0xff]  }
 0x2f3   :  { %3092 = vmatpush1.bf16.msra.mxu0 %v7832_v18  ;;  %v7940_v18 = vld [vmem:[%s11053_s3 + $0x188] ss:$16 sps:$4 sm:$0xff]  }
 0x2f4   :  { %3093 = vmatprep.subr.bf16.mxu0 %v7837_v19  ;;  %v7945_v19 = vld [vmem:[%s11053_s3 + $0x1ac] ss:$16 sps:$4 sm:$0xff]  }
 0x2f7   :  { %3094 = vmatpush1.bf16.msra.mxu0 %v7835_v21  ;;  %v7943_v21 = vld [vmem:[%s11053_s3 + $0x1a8] ss:$16 sps:$4 sm:$0xff]  }
 0x2f8   :  { %3095 = vmatprep.subr.bf16.mxu0 %v7840_v22  ;;  %v7948_v22 = vld [vmem:[%s11053_s3 + $0x1cc] ss:$16 sps:$4 sm:$0xff]  }
 0x2fb   :  { %3096 = vmatpush1.bf16.msra.mxu0 %v7838_v23  ;;  %v7946_v23 = vld [vmem:[%s11053_s3 + $0x1c8] ss:$16 sps:$4 sm:$0xff]  }
 0x2fc   :  { %3097 = vmatprep.subr.bf16.mxu0 %v7843_v24  ;;  %v7951_v24 = vld [vmem:[%s11053_s3 + $0x1ec] ss:$16 sps:$4 sm:$0xff]  }
 0x2ff   :  { %3098 = vmatpush1.bf16.msra.mxu0 %v7841_v25  ;;  %v7949_v25 = vld [vmem:[%s11053_s3 + $0x1e8] ss:$16 sps:$4 sm:$0xff]  }
 0x300   :  { %3108 = vmatprep.subr.bf16.mxu0 %v7846_v26  ;;  %v7954_v26 = vld [vmem:[%s11054_s5 + $0x4] ss:$16 sps:$4 sm:$0xff]  }
 0x302   :  { %3100 = vmatmul.mubr.bf16.vlgmr.msra.gmra.mrb[0].mxu0 %v611_v27  ;;  %v7952_v27 = vld [vmem:[%s11054_s5] ss:$16 sps:$4 sm:$0xff]  }
 0x303   :  { %3109 = vmatpush1.bf16.msra.mxu0 %v7844_v28  ;;  %3140 = vmatprep.mubr.bf16.mxu0 %v8373_v31  ;;  %v7957_v28 = vld [vmem:[%s11054_s5 + $0x24] ss:$16 sps:$4 sm:$0xff]  }
 0x304   :  { %3110 = vmatprep.subr.bf16.mxu0 %v7849_v29  ;;  %v7955_v29 = vld [vmem:[%s11054_s5 + $0x20] ss:$16 sps:$4 sm:$0xff]  }
 0x307   :  { %3111 = vmatpush1.bf16.msra.mxu0 %v7847_v30  ;;  %v7960_v30 = vld [vmem:[%s11054_s5 + $0x44] ss:$16 sps:$4 sm:$0xff]  }
 0x308   :  { %3112 = vmatprep.subr.bf16.mxu0 %v7852_v32  ;;  %v7958_v32 = vld [vmem:[%s11054_s5 + $0x40] ss:$16 sps:$4 sm:$0xff]  }
 0x30b   :  { %3113 = vmatpush1.bf16.msra.mxu0 %v7850_v33  ;;  %v7963_v33 = vld [vmem:[%s11054_s5 + $0x64] ss:$16 sps:$4 sm:$0xff]  }
 0x30c   :  { %3114 = vmatprep.subr.bf16.mxu0 %v7855_v20  ;;  %v7961_v20 = vld [vmem:[%s11054_s5 + $0x60] ss:$16 sps:$4 sm:$0xff]  }
 0x30f   :  { %3115 = vmatpush1.bf16.msra.mxu0 %v7853_v34  ;;  %v7966_v34 = vld [vmem:[%s11054_s5 + $0x84] ss:$16 sps:$4 sm:$0xff]  }
 0x312   :  { %6738 = vmatmul.mubr.msk.bf16.vlgmr.msra.gmra.mrb[0].mxu0 %vm2612_vm0, %v627_v36  ;;  %v7969_v36 = vld [vmem:[%s11054_s5 + $0xa4] ss:$16 sps:$4 sm:$0xff]  }
 0x3e5   :  { %v3142_v47 = vpop.f32.mrb[0].mxu0 }
 0x3e6   :  { %v7187_v48 = vadd.f32 %v3142_v47, %v456_v45  ;;  %v3144_v49 = vpop.f32.mrb[1].mxu0  ;;  %v7976_v45 = vld [vmem:[%s11054_s5 + $0x100] ss:$16 sps:$4 sm:$0xff]  }
 0x3e7   :  { %v7188_v51 = vadd.f32 %v3144_v49, %v460_v46  ;;  %v3146_v38 = vpop.f32.mrb[2].mxu0  ;;  %v7981_v46 = vld [vmem:[%s11054_s5 + $0x124] ss:$16 sps:$4 sm:$0xff]   ;;  %v7979_v47 = vld [vmem:[%s11054_s5 + $0x120] ss:$16 sps:$4 sm:$0xff]  }
 0x3e8   :  { %v3149_v52 = vmax.f32 %v7187_v48, 0.0  ;;  %v3147_v53 = vpop.f32.mrb[3].mxu0  ;;  %v7984_v48 = vld [vmem:[%s11054_s5 + $0x144] ss:$16 sps:$4 sm:$0xff]   ;;  %v7982_v49 = vld [vmem:[%s11054_s5 + $0x140] ss:$16 sps:$4 sm:$0xff]  }
 0x3e9   :  { %v3150_v50 = vmax.f32 %v7188_v51, 0.0  ;;  %v7987_v51 = vld [vmem:[%s11054_s5 + $0x164] ss:$16 sps:$4 sm:$0xff]   ;;  %v7985_v38 = vld [vmem:[%s11054_s5 + $0x160] ss:$16 sps:$4 sm:$0xff]  }
 0x3ea   :  { %v9878_v56 = vpack.c.bf16 %v3149_v52, %v3149_v52  ;;  %v7990_v52 = vld [vmem:[%s11054_s5 + $0x184] ss:$16 sps:$4 sm:$0xff]   ;;  %v7988_v53 = vld [vmem:[%s11054_s5 + $0x180] ss:$16 sps:$4 sm:$0xff]  }
 0x3eb   :  { %v3152_v54 = vpack.c.bf16 %v3150_v50, %v3150_v50  ;;  %v7993_v50 = vld [vmem:[%s11054_s5 + $0x1a4] ss:$16 sps:$4 sm:$0xff]  }
 0x3ed   :  { %3591 = vmatprep.mubr.bf16.mxu1 %v3152_v54 }
 0x3ee   :  { %3592 = vmatmul.mubr.bf16.vlgmr.msra.gmra.mrb[0].mxu1 %v9878_v56 }
 0x3ef   :  { %3601 = vmatpush1.bf16.msra.mxu1 %v7904_v55  ;;  %3632 = vmatprep.mubr.bf16.mxu1 %v3152_v54  ;;  %v7991_v54 = vld [vmem:[%s11054_s5 + $0x1a0] ss:$16 sps:$4 sm:$0xff]   ;;  %v7996_v55 = vld [vmem:[%s11054_s5 + $0x1c4] ss:$16 sps:$4 sm:$0xff]  }
 0x3f0   :  { %3602 = vmatprep.subr.bf16.mxu1 %v7909_v57  ;;  %v7999_v57 = vld [vmem:[%s11054_s5 + $0x1e4] ss:$16 sps:$4 sm:$0xff]  }
 0x3f3   :  { %3603 = vmatpush1.bf16.msra.mxu1 %v7907_v58  ;;  %v7997_v58 = vld [vmem:[%s11054_s5 + $0x1e0] ss:$16 sps:$4 sm:$0xff]  }
 0x3f4   :  { %3604 = vmatprep.subr.bf16.mxu1 %v7912_v59  ;;  %v8002_v59 = vld [vmem:[%s11054_s5 + $0x204] ss:$16 sps:$4 sm:$0xff]  }
 0x3f7   :  { %3605 = vmatpush1.bf16.msra.mxu1 %v7910_v60  ;;  %v10074_v60 = vld [vmem:[%s11056_s4] sm:$0xf] }
 0x3f8   :  { %3606 = vmatprep.subr.bf16.mxu1 %v7915_v61  ;;  %v3222_v61 = vrot.slane %v10074_v60, %v9865_v42 }
 0x3fb   :  { %3607 = vmatpush1.bf16.msra.mxu1 %v7913_v62  ;;  %v3226_v62 = vrot.slane %v10074_v60, %v9871_v44 }
 0x3fc   :  { %3608 = vmatprep.subr.bf16.mxu1 %v7918_v63 }
 0x3ff   :  { %3609 = vmatpush1.bf16.msra.mxu1 %v7916_v0 }
 0x400   :  { %3610 = vmatprep.subr.bf16.mxu1 %v7921_v1 }
 0x403   :  { %3611 = vmatpush1.bf16.msra.mxu1 %v7919_v2 }
 0x404   :  { %3612 = vmatprep.subr.bf16.mxu1 %v7924_v3 }
 0x407   :  { %3613 = vmatpush1.bf16.msra.mxu1 %v7922_v4 }
 0x408   :  { %3614 = vmatprep.subr.bf16.mxu1 %v7927_v5 }
 0x40b   :  { %3615 = vmatpush1.bf16.msra.mxu1 %v7925_v6 }
 0x40c   :  { %3616 = vmatprep.subr.bf16.mxu1 %v7930_v7 }
 0x40f   :  { %3617 = vmatpush1.bf16.msra.mxu1 %v7928_v8  ;;  %v8000_v8 = vld [vmem:[%s11054_s5 + $0x200] ss:$16 sps:$4 sm:$0xff]  }
 0x410   :  { %3618 = vmatprep.subr.bf16.mxu1 %v7933_v9 }
 0x413   :  { %3619 = vmatpush1.bf16.msra.mxu1 %v7931_v10  ;;  %v8005_v10 = vld [vmem:[%s11054_s5 + $0x224] ss:$16 sps:$4 sm:$0xff]  }
 0x414   :  { %3620 = vmatprep.subr.bf16.mxu1 %v7936_v11  ;;  %v8003_v11 = vld [vmem:[%s11054_s5 + $0x220] ss:$16 sps:$4 sm:$0xff]  }
 0x417   :  { %3621 = vmatpush1.bf16.msra.mxu1 %v7934_v13  ;;  %v8008_v13 = vld [vmem:[%s11054_s5 + $0x244] ss:$16 sps:$4 sm:$0xff]  }
 0x418   :  { %3622 = vmatprep.subr.bf16.mxu1 %v7939_v14  ;;  %v8006_v14 = vld [vmem:[%s11054_s5 + $0x240] ss:$16 sps:$4 sm:$0xff]  }
 0x41b   :  { %3623 = vmatpush1.bf16.msra.mxu1 %v7937_v15  ;;  %v8011_v15 = vld [vmem:[%s11054_s5 + $0x264] ss:$16 sps:$4 sm:$0xff]  }
 0x41c   :  { %3624 = vmatprep.subr.bf16.mxu1 %v7942_v17  ;;  %v8009_v17 = vld [vmem:[%s11054_s5 + $0x260] ss:$16 sps:$4 sm:$0xff]  }
 0x41f   :  { %3625 = vmatpush1.bf16.msra.mxu1 %v7940_v18  ;;  %v8014_v18 = vld [vmem:[%s11054_s5 + $0x284] ss:$16 sps:$4 sm:$0xff]  }
 0x420   :  { %3626 = vmatprep.subr.bf16.mxu1 %v7945_v19  ;;  %v8012_v19 = vld [vmem:[%s11054_s5 + $0x280] ss:$16 sps:$4 sm:$0xff]  }
 0x423   :  { %3627 = vmatpush1.bf16.msra.mxu1 %v7943_v21  ;;  %v8017_v21 = vld [vmem:[%s11054_s5 + $0x2a4] ss:$16 sps:$4 sm:$0xff]  }
 0x424   :  { %3628 = vmatprep.subr.bf16.mxu1 %v7948_v22  ;;  %v8015_v22 = vld [vmem:[%s11054_s5 + $0x2a0] ss:$16 sps:$4 sm:$0xff]  }
 0x427   :  { %3629 = vmatpush1.bf16.msra.mxu1 %v7946_v23  ;;  %v8020_v23 = vld [vmem:[%s11054_s5 + $0x2c4] ss:$16 sps:$4 sm:$0xff]  }
 0x428   :  { %3630 = vmatprep.subr.bf16.mxu1 %v7951_v24  ;;  %v8018_v24 = vld [vmem:[%s11054_s5 + $0x2c0] ss:$16 sps:$4 sm:$0xff]  }
 0x42b   :  { %3631 = vmatpush1.bf16.msra.mxu1 %v7949_v25  ;;  %v8023_v25 = vld [vmem:[%s11054_s5 + $0x2e4] ss:$16 sps:$4 sm:$0xff]  }
 0x42c   :  { %4346 = vmatprep.subr.bf16.mxu1 %v7954_v26  ;;  %v8021_v26 = vld [vmem:[%s11054_s5 + $0x2e0] ss:$16 sps:$4 sm:$0xff]  }
 0x42e   :  { %3633 = vmatmul.mubr.bf16.vlgmr.msra.gmra.mrb[4].mxu1 %v9878_v56  ;;  %v7994_v56 = vld [vmem:[%s11054_s5 + $0x1c0] ss:$16 sps:$4 sm:$0xff]  }
 0x42f   :  { %4347 = vmatpush1.bf16.msra.mxu1 %v7952_v27  ;;  %v8026_v27 = vld [vmem:[%s11054_s5 + $0x304] ss:$16 sps:$4 sm:$0xff]  }
 0x430   :  { %4348 = vmatprep.subr.bf16.mxu1 %v7957_v28  ;;  %v8024_v28 = vld [vmem:[%s11054_s5 + $0x300] ss:$16 sps:$4 sm:$0xff]  }
 0x433   :  { %4349 = vmatpush1.bf16.msra.mxu1 %v7955_v29  ;;  %v8029_v29 = vld [vmem:[%s11054_s5 + $0x324] ss:$16 sps:$4 sm:$0xff]  }
 0x434   :  { %4350 = vmatprep.subr.bf16.mxu1 %v7960_v30  ;;  %v8027_v30 = vld [vmem:[%s11054_s5 + $0x320] ss:$16 sps:$4 sm:$0xff]  }
 0x437   :  { %4351 = vmatpush1.bf16.msra.mxu1 %v7958_v32  ;;  %v8032_v32 = vld [vmem:[%s11054_s5 + $0x344] ss:$16 sps:$4 sm:$0xff]  }
 0x438   :  { %4352 = vmatprep.subr.bf16.mxu1 %v7963_v33  ;;  %v8030_v33 = vld [vmem:[%s11054_s5 + $0x340] ss:$16 sps:$4 sm:$0xff]  }
 0x43b   :  { %4353 = vmatpush1.bf16.msra.mxu1 %v7961_v20  ;;  %v8035_v20 = vld [vmem:[%s11054_s5 + $0x364] ss:$16 sps:$4 sm:$0xff]  }
 0x43c   :  { %4354 = vmatprep.subr.bf16.mxu1 %v7966_v34  ;;  %v8033_v34 = vld [vmem:[%s11054_s5 + $0x360] ss:$16 sps:$4 sm:$0xff]  }
 0x43f   :  { %4355 = vmatpush1.bf16.msra.mxu1 %v7964_v35  ;;  %v8038_v35 = vld [vmem:[%s11054_s5 + $0xc] ss:$16 sps:$4 sm:$0xff]  }
 0x440   :  { %4356 = vmatprep.subr.bf16.mxu1 %v7969_v36  ;;  %v10167_v36 = vsub.s32 2, %v8483_v12 }
 0x443   :  { %4357 = vmatpush1.bf16.msra.mxu1 %v7967_v37  ;;  %v10170_v37 = vsub.s32 3, %v8483_v12 }
 0x444   :  { %4358 = vmatprep.subr.bf16.mxu1 %v7972_v39  ;;  %v3230_v39 = vrot.slane %v10074_v60, %v10167_v36 }
 0x447   :  { %4359 = vmatpush1.bf16.msra.mxu1 %v7970_v40  ;;  %v3234_v40 = vrot.slane %v10074_v60, %v10170_v37  ;;  %v8051_v60 = vld [vmem:[%s11054_s5 + $0xa8] ss:$16 sps:$4 sm:$0xff]  }
 0x448   :  { %4360 = vmatprep.subr.bf16.mxu1 %v7975_v16 }
 0x44b   :  { %4361 = vmatpush1.bf16.msra.mxu1 %v7973_v41 }
 0x44c   :  { %4362 = vmatprep.subr.bf16.mxu1 %v7978_v43 }
 0x44f   :  { %4363 = vmatpush1.bf16.msra.mxu1 %v7976_v45 }
 0x450   :  { %4364 = vmatprep.subr.bf16.mxu1 %v7981_v46 }
 0x453   :  { %4365 = vmatpush1.bf16.msra.mxu1 %v7979_v47 }
 0x454   :  { %4366 = vmatprep.subr.bf16.mxu1 %v7984_v48 }
 0x457   :  { %4367 = vmatpush1.bf16.msra.mxu1 %v7982_v49 }
 0x458   :  { %4368 = vmatprep.subr.bf16.mxu1 %v7987_v51  ;;  %v8036_v51 = vld [vmem:[%s11054_s5 + $0x8] ss:$16 sps:$4 sm:$0xff]  }
 0x45b   :  { %4369 = vmatpush1.bf16.msra.mxu1 %v7985_v38 }
 0x45c   :  { %4370 = vmatprep.subr.bf16.mxu1 %v7990_v52  ;;  %v8041_v52 = vld [vmem:[%s11054_s5 + $0x2c] ss:$16 sps:$4 sm:$0xff]  }
 0x45f   :  { %4371 = vmatpush1.bf16.msra.mxu1 %v7988_v53  ;;  %v8039_v53 = vld [vmem:[%s11054_s5 + $0x28] ss:$16 sps:$4 sm:$0xff]  }
 0x460   :  { %4372 = vmatprep.subr.bf16.mxu1 %v7993_v50  ;;  %v8044_v50 = vld [vmem:[%s11054_s5 + $0x4c] ss:$16 sps:$4 sm:$0xff]  }
 0x463   :  { %4373 = vmatpush1.bf16.msra.mxu1 %v7991_v54  ;;  %v8042_v54 = vld [vmem:[%s11054_s5 + $0x48] ss:$16 sps:$4 sm:$0xff]  }
 0x464   :  { %4374 = vmatprep.subr.bf16.mxu1 %v7996_v55  ;;  %v8047_v55 = vld [vmem:[%s11054_s5 + $0x6c] ss:$16 sps:$4 sm:$0xff]  }
 0x467   :  { %4375 = vmatpush1.bf16.msra.mxu1 %v7994_v56  ;;  %v8045_v56 = vld [vmem:[%s11054_s5 + $0x68] ss:$16 sps:$4 sm:$0xff]  }
 0x468   :  { %4376 = vmatprep.subr.bf16.mxu1 %v7999_v57  ;;  %v8050_v57 = vld [vmem:[%s11054_s5 + $0x8c] ss:$16 sps:$4 sm:$0xff]  }
 0x46b   :  { %4377 = vmatpush1.bf16.msra.mxu1 %v7997_v58  ;;  %v8048_v58 = vld [vmem:[%s11054_s5 + $0x88] ss:$16 sps:$4 sm:$0xff]  }
 0x46c   :  { %4387 = vmatprep.subr.bf16.mxu1 %v8002_v59  ;;  %v8053_v59 = vld [vmem:[%s11054_s5 + $0xac] ss:$16 sps:$4 sm:$0xff]  }
 0x4c1   :  { %v3593_v63 = vpop.f32.mrb[0].mxu1 }
 0x4c2   :  { %v3594_v0 = vadd.f32 %v3593_v63, %v3222_v61  ;;  %v3595_v1 = vpop.f32.mrb[1].mxu1  ;;  %v8056_v61 = vld [vmem:[%s11054_s5 + $0xcc] ss:$16 sps:$4 sm:$0xff]  }
 0x4c3   :  { %v3596_v2 = vadd.f32 %v3595_v1, %v3226_v62  ;;  %v3597_v3 = vpop.f32.mrb[2].mxu1  ;;  %v8054_v62 = vld [vmem:[%s11054_s5 + $0xc8] ss:$16 sps:$4 sm:$0xff]   ;;  %v8059_v63 = vld [vmem:[%s11054_s5 + $0xec] ss:$16 sps:$4 sm:$0xff]  }
 0x4c4   :  { %v10080_v4 = vmax.f32 %v3594_v0, 0.0  ;;  %v3598_v5 = vpop.f32.mrb[3].mxu1  ;;  %v8057_v0 = vld [vmem:[%s11054_s5 + $0xe8] ss:$16 sps:$4 sm:$0xff]   ;;  %v8062_v1 = vld [vmem:[%s11054_s5 + $0x10c] ss:$16 sps:$4 sm:$0xff]  }
 0x4c5   :  { %v10082_v6 = vmax.f32 %v3596_v2, 0.0  ;;  %v8060_v2 = vld [vmem:[%s11054_s5 + $0x108] ss:$16 sps:$4 sm:$0xff]   ;;  %v8065_v3 = vld [vmem:[%s11054_s5 + $0x12c] ss:$16 sps:$4 sm:$0xff]  }
 0x4c6   :  { %v10093_v9 = vpack.c.bf16 %v10080_v4, %v10080_v4  ;;  %v8063_v5 = vld [vmem:[%s11054_s5 + $0x128] ss:$16 sps:$4 sm:$0xff]  }
 0x4c7   :  { %v10086_v7 = vpack.c.bf16 %v10082_v6, %v10082_v6 }
 0x4c9   :  { %4378 = vmatprep.mubr.bf16.mxu1 %v10086_v7 }
 0x4ca   :  { %4379 = vmatmul.mubr.bf16.vlgmr.msra.gmra.mrb[8].mxu1 %v10093_v9 }
 0x4cb   :  { %4388 = vmatpush1.bf16.msra.mxu1 %v8000_v8  ;;  %v8068_v8 = vld [vmem:[%s11054_s5 + $0x14c] ss:$16 sps:$4 sm:$0xff]  }
 0x4cc   :  { %4389 = vmatprep.subr.bf16.mxu1 %v8005_v10  ;;  %v8066_v10 = vld [vmem:[%s11054_s5 + $0x148] ss:$16 sps:$4 sm:$0xff]  }
 0x4cf   :  { %4390 = vmatpush1.bf16.msra.mxu1 %v8003_v11  ;;  %v8071_v11 = vld [vmem:[%s11054_s5 + $0x16c] ss:$16 sps:$4 sm:$0xff]  }
 0x4d0   :  { %4391 = vmatprep.subr.bf16.mxu1 %v8008_v13  ;;  %v8069_v13 = vld [vmem:[%s11054_s5 + $0x168] ss:$16 sps:$4 sm:$0xff]  }
 0x4d3   :  { %4392 = vmatpush1.bf16.msra.mxu1 %v8006_v14  ;;  %v8074_v14 = vld [vmem:[%s11054_s5 + $0x18c] ss:$16 sps:$4 sm:$0xff]  }
 0x4d4   :  { %4393 = vmatprep.subr.bf16.mxu1 %v8011_v15  ;;  %v8072_v15 = vld [vmem:[%s11054_s5 + $0x188] ss:$16 sps:$4 sm:$0xff]  }
 0x4d7   :  { %4394 = vmatpush1.bf16.msra.mxu1 %v8009_v17  ;;  %v8077_v17 = vld [vmem:[%s11054_s5 + $0x1ac] ss:$16 sps:$4 sm:$0xff]  }
 0x4d8   :  { %4395 = vmatprep.subr.bf16.mxu1 %v8014_v18  ;;  %v8075_v18 = vld [vmem:[%s11054_s5 + $0x1a8] ss:$16 sps:$4 sm:$0xff]  }
 0x4db   :  { %4396 = vmatpush1.bf16.msra.mxu1 %v8012_v19  ;;  %v8080_v19 = vld [vmem:[%s11054_s5 + $0x1cc] ss:$16 sps:$4 sm:$0xff]  }
 0x4dc   :  { %4397 = vmatprep.subr.bf16.mxu1 %v8017_v21  ;;  %v8078_v21 = vld [vmem:[%s11054_s5 + $0x1c8] ss:$16 sps:$4 sm:$0xff]  }
 0x4df   :  { %4398 = vmatpush1.bf16.msra.mxu1 %v8015_v22  ;;  %v8083_v22 = vld [vmem:[%s11054_s5 + $0x1ec] ss:$16 sps:$4 sm:$0xff]  }
 0x4e0   :  { %4399 = vmatprep.subr.bf16.mxu1 %v8020_v23  ;;  %v8081_v23 = vld [vmem:[%s11054_s5 + $0x1e8] ss:$16 sps:$4 sm:$0xff]  }
 0x4e3   :  { %4400 = vmatpush1.bf16.msra.mxu1 %v8018_v24  ;;  %v8086_v24 = vld [vmem:[%s11054_s5 + $0x20c] ss:$16 sps:$4 sm:$0xff]  }
 0x4e4   :  { %4401 = vmatprep.subr.bf16.mxu1 %v8023_v25  ;;  %v8084_v25 = vld [vmem:[%s11054_s5 + $0x208] ss:$16 sps:$4 sm:$0xff]  }
 0x4e7   :  { %4402 = vmatpush1.bf16.msra.mxu1 %v8021_v26  ;;  %v8089_v26 = vld [vmem:[%s11054_s5 + $0x22c] ss:$16 sps:$4 sm:$0xff]  }
 0x4e8   :  { %4403 = vmatprep.subr.bf16.mxu1 %v8026_v27  ;;  %v8087_v27 = vld [vmem:[%s11054_s5 + $0x228] ss:$16 sps:$4 sm:$0xff]  }
 0x4eb   :  { %4404 = vmatpush1.bf16.msra.mxu1 %v8024_v28  ;;  %v8092_v28 = vld [vmem:[%s11054_s5 + $0x24c] ss:$16 sps:$4 sm:$0xff]  }
 0x4ec   :  { %4405 = vmatprep.subr.bf16.mxu1 %v8029_v29  ;;  %v8090_v29 = vld [vmem:[%s11054_s5 + $0x248] ss:$16 sps:$4 sm:$0xff]  }
 0x4ef   :  { %4406 = vmatpush1.bf16.msra.mxu1 %v8027_v30  ;;  %v8095_v30 = vld [vmem:[%s11054_s5 + $0x26c] ss:$16 sps:$4 sm:$0xff]  }
 0x4f0   :  { %4407 = vmatprep.subr.bf16.mxu1 %v8032_v32  ;;  %v8093_v32 = vld [vmem:[%s11054_s5 + $0x268] ss:$16 sps:$4 sm:$0xff]  }
 0x4f3   :  { %4408 = vmatpush1.bf16.msra.mxu1 %v8030_v33  ;;  %v8098_v33 = vld [vmem:[%s11054_s5 + $0x28c] ss:$16 sps:$4 sm:$0xff]  }
 0x4f4   :  { %4409 = vmatprep.subr.bf16.mxu1 %v8035_v20  ;;  %v8096_v20 = vld [vmem:[%s11054_s5 + $0x288] ss:$16 sps:$4 sm:$0xff]  }
 0x4f7   :  { %4410 = vmatpush1.bf16.msra.mxu1 %v8033_v34  ;;  %v8101_v34 = vld [vmem:[%s11054_s5 + $0x2ac] ss:$16 sps:$4 sm:$0xff]  }
 0x4f8   :  { %4428 = vmatprep.subr.bf16.mxu1 %v8038_v35  ;;  %v8099_v35 = vld [vmem:[%s11054_s5 + $0x2a8] ss:$16 sps:$4 sm:$0xff]  }
 0x501   :  { %v3634_v16 = vpop.f32.mrb[4].mxu1 }
 0x502   :  { %v3635_v41 = vadd.f32 %v3634_v16, %v3230_v39  ;;  %v3636_v43 = vpop.f32.mrb[5].mxu1  ;;  %v8104_v39 = vld [vmem:[%s11054_s5 + $0x2cc] ss:$16 sps:$4 sm:$0xff]  }
 0x503   :  { %v3637_v45 = vadd.f32 %v3636_v43, %v3234_v40  ;;  %v3638_v46 = vpop.f32.mrb[6].mxu1  ;;  %v8102_v40 = vld [vmem:[%s11054_s5 + $0x2c8] ss:$16 sps:$4 sm:$0xff]   ;;  %v8107_v16 = vld [vmem:[%s11054_s5 + $0x2ec] ss:$16 sps:$4 sm:$0xff]  }
 0x504   :  { %v10176_v47 = vmax.f32 %v3635_v41, 0.0  ;;  %v3639_v48 = vpop.f32.mrb[7].mxu1  ;;  %v8105_v41 = vld [vmem:[%s11054_s5 + $0x2e8] ss:$16 sps:$4 sm:$0xff]   ;;  %v8110_v43 = vld [vmem:[%s11054_s5 + $0x30c] ss:$16 sps:$4 sm:$0xff]  }
 0x505   :  { %v10178_v49 = vmax.f32 %v3637_v45, 0.0  ;;  %v8108_v45 = vld [vmem:[%s11054_s5 + $0x308] ss:$16 sps:$4 sm:$0xff]   ;;  %v8113_v46 = vld [vmem:[%s11054_s5 + $0x32c] ss:$16 sps:$4 sm:$0xff]  }
 0x506   :  { %v10189_v38 = vpack.c.bf16 %v10176_v47, %v10176_v47  ;;  %v8111_v48 = vld [vmem:[%s11054_s5 + $0x328] ss:$16 sps:$4 sm:$0xff]  }
 0x507   :  { %v10182_v12 = vpack.c.bf16 %v10178_v49, %v10178_v49 }
 0x509   :  { %6915 = vmatprep.mubr.msk.bf16.mxu1 %vm2612_vm0, %v10182_v12 }
 0x50a   :  { %4420 = vmatmul.mubr.bf16.vlgmr.msra.gmra.mrb[8].mxu1 %v10189_v38 }
 0x50b   :  { %4429 = vmatpush1.bf16.msra.mxu1 %v8036_v51  ;;  %4460 = vmatprep.mubr.bf16.mxu1 %v10086_v7  ;;  %v8116_v51 = vld [vmem:[%s11054_s5 + $0x34c] ss:$16 sps:$4 sm:$0xff]  }
 0x50c   :  { %4430 = vmatprep.subr.bf16.mxu1 %v8041_v52  ;;  %v8114_v52 = vld [vmem:[%s11054_s5 + $0x348] ss:$16 sps:$4 sm:$0xff]  }
 0x50f   :  { %4431 = vmatpush1.bf16.msra.mxu1 %v8039_v53  ;;  %v8119_v53 = vld [vmem:[%s11054_s5 + $0x36c] ss:$16 sps:$4 sm:$0xff]  }
 0x510   :  { %4432 = vmatprep.subr.bf16.mxu1 %v8044_v50  ;;  %v8117_v50 = vld [vmem:[%s11054_s5 + $0x368] ss:$16 sps:$4 sm:$0xff]  }
 0x513   :  { %4433 = vmatpush1.bf16.msra.mxu1 %v8042_v54  ;;  %v8120_v54 = vld [vmem:[%s11057_s7 + $0x40] sm:$0xff]  }
 0x514   :  { %4434 = vmatprep.subr.bf16.mxu1 %v8047_v55  ;;  %v8121_v55 = vld [vmem:[%s11057_s7] sm:$0xff]  }
 0x517   :  { %4435 = vmatpush1.bf16.msra.mxu1 %v8045_v56  ;;  %v8122_v56 = vld [vmem:[%s11057_s7 + $0x48] sm:$0xff]  }
 0x518   :  { %4436 = vmatprep.subr.bf16.mxu1 %v8050_v57  ;;  %v8123_v57 = vld [vmem:[%s11057_s7 + $0x8] sm:$0xff]  }
 0x51b   :  { %4437 = vmatpush1.bf16.msra.mxu1 %v8048_v58  ;;  %v8124_v58 = vld [vmem:[%s11057_s7 + $0x50] sm:$0xff]  }
 0x51c   :  { %4438 = vmatprep.subr.bf16.mxu1 %v8053_v59  ;;  %v8125_v59 = vld [vmem:[%s11057_s7 + $0x10] sm:$0xff]  }
 0x51f   :  { %4439 = vmatpush1.bf16.msra.mxu1 %v8051_v60  ;;  %v8126_v60 = vld [vmem:[%s11057_s7 + $0x58] sm:$0xff]  }
 0x520   :  { %4440 = vmatprep.subr.bf16.mxu1 %v8056_v61  ;;  %v8127_v61 = vld [vmem:[%s11057_s7 + $0x18] sm:$0xff]  }
 0x523   :  { %4441 = vmatpush1.bf16.msra.mxu1 %v8054_v62  ;;  %v8128_v62 = vld [vmem:[%s11057_s7 + $0x60] sm:$0xff]  }
 0x524   :  { %4442 = vmatprep.subr.bf16.mxu1 %v8059_v63  ;;  %v8129_v63 = vld [vmem:[%s11057_s7 + $0x20] sm:$0xff]  }
 0x527   :  { %4443 = vmatpush1.bf16.msra.mxu1 %v8057_v0  ;;  %v8130_v0 = vld [vmem:[%s11057_s7 + $0x68] sm:$0xff]  }
 0x528   :  { %4444 = vmatprep.subr.bf16.mxu1 %v8062_v1  ;;  %v8131_v1 = vld [vmem:[%s11057_s7 + $0x28] sm:$0xff]  }
 0x52b   :  { %4445 = vmatpush1.bf16.msra.mxu1 %v8060_v2  ;;  %v8132_v2 = vld [vmem:[%s11057_s7 + $0x70] sm:$0xff]  }
 0x52c   :  { %4446 = vmatprep.subr.bf16.mxu1 %v8065_v3  ;;  %v8133_v3 = vld [vmem:[%s11057_s7 + $0x30] sm:$0xff]  }
 0x52f   :  { %4447 = vmatpush1.bf16.msra.mxu1 %v8063_v5  ;;  %v8134_v5 = vld [vmem:[%s11057_s7 + $0x78] sm:$0xff]  }
 0x530   :  { %4448 = vmatprep.subr.bf16.mxu1 %v8068_v8  ;;  %v8135_v8 = vld [vmem:[%s11057_s7 + $0x38] sm:$0xff]  }
 0x533   :  { %4449 = vmatpush1.bf16.msra.mxu1 %v8066_v10  ;;  %v3761_v10 = vld [vmem:[%s11059_s6] sm:$0xf] }
 0x534   :  { %4450 = vmatprep.subr.bf16.mxu1 %v8071_v11  ;;  %v3766_v11 = vrot.slane %v3761_v10, %v9865_v42 }
 0x537   :  { %4451 = vmatpush1.bf16.msra.mxu1 %v8069_v13  ;;  %v3770_v13 = vrot.slane %v3761_v10, %v9871_v44 }
 0x538   :  { %4452 = vmatprep.subr.bf16.mxu1 %v8074_v14 }
 0x53b   :  { %4453 = vmatpush1.bf16.msra.mxu1 %v8072_v15 }
 0x53c   :  { %4454 = vmatprep.subr.bf16.mxu1 %v8077_v17 }
 0x53f   :  { %4455 = vmatpush1.bf16.msra.mxu1 %v8075_v18 }
 0x540   :  { %4456 = vmatprep.subr.bf16.mxu1 %v8080_v19 }
 0x543   :  { %4457 = vmatpush1.bf16.msra.mxu1 %v8078_v21 }
 0x544   :  { %4458 = vmatprep.subr.bf16.mxu1 %v8083_v22 }
 0x547   :  { %4459 = vmatpush1.bf16.msra.mxu1 %v8081_v23 }
 0x548   :  { %4469 = vmatprep.subr.bf16.mxu1 %v8086_v24 }
 0x54a   :  { %4461 = vmatmul.mubr.bf16.vlgmr.msra.gmra.mrb[12].mxu1 %v10093_v9 }
 0x54b   :  { %4470 = vmatpush1.bf16.msra.mxu1 %v8084_v25  ;;  %6916 = vmatprep.mubr.msk.bf16.mxu1 %vm2612_vm0, %v10182_v12  ;;  %v8136_v25 = vld [vmem:[%s11057_s7 + $0x80] sm:$0xff]  }
 0x54c   :  { %4471 = vmatprep.subr.bf16.mxu1 %v8089_v26 }
 0x54f   :  { %4472 = vmatpush1.bf16.msra.mxu1 %v8087_v27  ;;  %v8137_v27 = vld [vmem:[%s11057_s7 + $0x88] sm:$0xff]  }
 0x550   :  { %4473 = vmatprep.subr.bf16.mxu1 %v8092_v28  ;;  %v8138_v28 = vld [vmem:[%s11057_s7 + $0x90] sm:$0xff]  }
 0x553   :  { %4474 = vmatpush1.bf16.msra.mxu1 %v8090_v29  ;;  %v8139_v29 = vld [vmem:[%s11057_s7 + $0x98] sm:$0xff]  }
 0x554   :  { %4475 = vmatprep.subr.bf16.mxu1 %v8095_v30  ;;  %v8140_v30 = vld [vmem:[%s11057_s7 + $0xa0] sm:$0xff]  }
 0x557   :  { %4476 = vmatpush1.bf16.msra.mxu1 %v8093_v32  ;;  %v8141_v32 = vld [vmem:[%s11057_s7 + $0xa8] sm:$0xff]  }
 0x558   :  { %4477 = vmatprep.subr.bf16.mxu1 %v8098_v33  ;;  %v8142_v33 = vld [vmem:[%s11057_s7 + $0xb0] sm:$0xff]  }
 0x55b   :  { %4478 = vmatpush1.bf16.msra.mxu1 %v8096_v20  ;;  %v8143_v20 = vld [vmem:[%s11057_s7 + $0xb8] sm:$0xff]  }
 0x55c   :  { %4479 = vmatprep.subr.bf16.mxu1 %v8101_v34  ;;  %v8144_v34 = vld [vmem:[%s11057_s7 + $0xc0] sm:$0xff]  }
 0x55f   :  { %4480 = vmatpush1.bf16.msra.mxu1 %v8099_v35  ;;  %v8145_v35 = vld [vmem:[%s11057_s7 + $0xc8] sm:$0xff]  }
 0x560   :  { %4481 = vmatprep.subr.bf16.mxu1 %v8104_v39  ;;  %v8146_v39 = vld [vmem:[%s11057_s7 + $0xd0] sm:$0xff]  }
 0x563   :  { %4482 = vmatpush1.bf16.msra.mxu1 %v8102_v40  ;;  %v8147_v40 = vld [vmem:[%s11057_s7 + $0xd8] sm:$0xff]  }
 0x564   :  { %4483 = vmatprep.subr.bf16.mxu1 %v8107_v16  ;;  %v8150_v16 = vld [vmem:[%s11058_s9 + $0x4] ss:$16 sps:$4 sm:$0xff]  }
 0x567   :  { %4484 = vmatpush1.bf16.msra.mxu1 %v8105_v41  ;;  %v3774_v41 = vrot.slane %v3761_v10, %v10167_v36 }
 0x568   :  { %4485 = vmatprep.subr.bf16.mxu1 %v8110_v43  ;;  %v3778_v43 = vrot.slane %v3761_v10, %v10170_v37  ;;  %v8171_v10 = vld [vmem:[%s11058_s9 + $0xe4] ss:$16 sps:$4 sm:$0xff]  }
 0x56b   :  { %4486 = vmatpush1.bf16.msra.mxu1 %v8108_v45 }
 0x56c   :  { %4487 = vmatprep.subr.bf16.mxu1 %v8113_v46 }
 0x56f   :  { %4488 = vmatpush1.bf16.msra.mxu1 %v8111_v48 }
 0x570   :  { %4489 = vmatprep.subr.bf16.mxu1 %v8116_v51 }
 0x573   :  { %4490 = vmatpush1.bf16.msra.mxu1 %v8114_v52 }
 0x574   :  { %4491 = vmatprep.subr.bf16.mxu1 %v8119_v53 }
 0x577   :  { %4492 = vmatpush1.bf16.msra.mxu1 %v8117_v50 }
 0x578   :  { %7121 = vmatprep.subr.bf16.mxu1 %v8120_v54 }
 0x57a   :  { %4502 = vmatmul.mubr.bf16.vlgmr.msra.gmra.mrb[12].mxu1 %v10189_v38 }
 0x57b   :  { %7122 = vmatpush3.bf16.msra.mxu1 %v8121_v55 }
 0x57c   :  { %7123 = vmatprep.subr.bf16.mxu1 %v8122_v56  ;;  %v8148_v56 = vld [vmem:[%s11058_s9] ss:$16 sps:$4 sm:$0xff]  }
 0x57f   :  { %7124 = vmatpush3.bf16.msra.mxu1 %v8123_v57 }
 0x580   :  { %7125 = vmatprep.subr.bf16.mxu1 %v8124_v58  ;;  %v8153_v58 = vld [vmem:[%s11058_s9 + $0x24] ss:$16 sps:$4 sm:$0xff]  }
 0x583   :  { %7126 = vmatpush3.bf16.msra.mxu1 %v8125_v59  ;;  %v8151_v59 = vld [vmem:[%s11058_s9 + $0x20] ss:$16 sps:$4 sm:$0xff]  }
 0x584   :  { %7127 = vmatprep.subr.bf16.mxu1 %v8126_v60  ;;  %v8156_v60 = vld [vmem:[%s11058_s9 + $0x44] ss:$16 sps:$4 sm:$0xff]  }
 0x587   :  { %7128 = vmatpush3.bf16.msra.mxu1 %v8127_v61  ;;  %v8154_v61 = vld [vmem:[%s11058_s9 + $0x40] ss:$16 sps:$4 sm:$0xff]  }
 0x588   :  { %7129 = vmatprep.subr.bf16.mxu1 %v8128_v62  ;;  %v8159_v62 = vld [vmem:[%s11058_s9 + $0x64] ss:$16 sps:$4 sm:$0xff]  }
 0x58b   :  { %7130 = vmatpush3.bf16.msra.mxu1 %v8129_v63  ;;  %v8157_v63 = vld [vmem:[%s11058_s9 + $0x60] ss:$16 sps:$4 sm:$0xff]  }
 0x58c   :  { %7131 = vmatprep.subr.bf16.mxu1 %v8130_v0  ;;  %v8162_v0 = vld [vmem:[%s11058_s9 + $0x84] ss:$16 sps:$4 sm:$0xff]  }
 0x58f   :  { %7132 = vmatpush3.bf16.msra.mxu1 %v8131_v1  ;;  %v8160_v1 = vld [vmem:[%s11058_s9 + $0x80] ss:$16 sps:$4 sm:$0xff]  }
 0x590   :  { %7133 = vmatprep.subr.bf16.mxu1 %v8132_v2  ;;  %v8165_v2 = vld [vmem:[%s11058_s9 + $0xa4] ss:$16 sps:$4 sm:$0xff]  }
 0x593   :  { %7134 = vmatpush3.bf16.msra.mxu1 %v8133_v3  ;;  %v8163_v3 = vld [vmem:[%s11058_s9 + $0xa0] ss:$16 sps:$4 sm:$0xff]  }
 0x594   :  { %7135 = vmatprep.subr.bf16.mxu1 %v8134_v5  ;;  %v8168_v5 = vld [vmem:[%s11058_s9 + $0xc4] ss:$16 sps:$4 sm:$0xff]  }
 0x597   :  { %7136 = vmatpush3.bf16.msra.mxu1 %v8135_v8  ;;  %v8166_v8 = vld [vmem:[%s11058_s9 + $0xc0] ss:$16 sps:$4 sm:$0xff]  }
 0x598   :  { %4792 = vmatprep.subr.bf16.mxu1 %v8373_v31 }
 0x5dd   :  { %v4421_v14 = vpop.f32.mrb[8].mxu1 }
 0x5de   :  { %v7189_v15 = vadd.f32 %v4421_v14, %v3766_v11  ;;  %v4423_v17 = vpop.f32.mrb[9].mxu1  ;;  %v8169_v11 = vld [vmem:[%s11058_s9 + $0xe0] ss:$16 sps:$4 sm:$0xff]  }
 0x5df   :  { %v7190_v18 = vadd.f32 %v4423_v17, %v3770_v13  ;;  %v4425_v19 = vpop.f32.mrb[10].mxu1  ;;  %v8174_v13 = vld [vmem:[%s11058_s9 + $0x104] ss:$16 sps:$4 sm:$0xff]   ;;  %v8172_v14 = vld [vmem:[%s11058_s9 + $0x100] ss:$16 sps:$4 sm:$0xff]  }
 0x5e0   :  { %v4510_v21 = vmax.f32 %v7189_v15, 0.0  ;;  %v4426_v22 = vpop.f32.mrb[11].mxu1  ;;  %v8177_v15 = vld [vmem:[%s11058_s9 + $0x124] ss:$16 sps:$4 sm:$0xff]   ;;  %v8175_v17 = vld [vmem:[%s11058_s9 + $0x120] ss:$16 sps:$4 sm:$0xff]  }
 0x5e1   :  { %v4511_v23 = vmax.f32 %v7190_v18, 0.0  ;;  %v8180_v18 = vld [vmem:[%s11058_s9 + $0x144] ss:$16 sps:$4 sm:$0xff]   ;;  %v8178_v19 = vld [vmem:[%s11058_s9 + $0x140] ss:$16 sps:$4 sm:$0xff]  }
 0x5e2   :  { %v4514_v26 = vpack.c.bf16 %v4510_v21, %v4510_v21  ;;  %v8183_v21 = vld [vmem:[%s11058_s9 + $0x164] ss:$16 sps:$4 sm:$0xff]   ;;  %v8181_v22 = vld [vmem:[%s11058_s9 + $0x160] ss:$16 sps:$4 sm:$0xff]  }
 0x5e3   :  { %v4515_v24 = vpack.c.bf16 %v4511_v23, %v4511_v23  ;;  %v8186_v23 = vld [vmem:[%s11058_s9 + $0x184] ss:$16 sps:$4 sm:$0xff]  }
 0x5e5   :  { %4784 = vmatprep.mubr.bf16.mxu1 %v4515_v24  ;;  %v8184_v24 = vld [vmem:[%s11058_s9 + $0x180] ss:$16 sps:$4 sm:$0xff]  }
 0x5e6   :  { %4785 = vmatmul.mubr.bf16.vlgmr.msra.gmra.mrb[16].mxu1 %v4514_v26  ;;  %v8187_v26 = vld [vmem:[%s11058_s9 + $0x1a0] ss:$16 sps:$4 sm:$0xff]  }
 0x5e7   :  { %4793 = vmatpush1.bf16.msra.mxu1 %v8136_v25  ;;  %v8189_v25 = vld [vmem:[%s11058_s9 + $0x1a4] ss:$16 sps:$4 sm:$0xff]  }
 0x5e8   :  { %4794 = vmatprep.subr.bf16.mxu1 %v8373_v31 }
 0x5eb   :  { %4795 = vmatpush1.bf16.msra.mxu1 %v8137_v27  ;;  %v8192_v27 = vld [vmem:[%s11058_s9 + $0x1c4] ss:$16 sps:$4 sm:$0xff]  }
 0x5ec   :  { %4796 = vmatprep.subr.bf16.mxu1 %v8373_v31 }
 0x5ef   :  { %4797 = vmatpush1.bf16.msra.mxu1 %v8138_v28  ;;  %v8190_v28 = vld [vmem:[%s11058_s9 + $0x1c0] ss:$16 sps:$4 sm:$0xff]  }
 0x5f0   :  { %4798 = vmatprep.subr.bf16.mxu1 %v8373_v31 }
 0x5f3   :  { %4799 = vmatpush1.bf16.msra.mxu1 %v8139_v29  ;;  %v8195_v29 = vld [vmem:[%s11058_s9 + $0x1e4] ss:$16 sps:$4 sm:$0xff]  }
 0x5f4   :  { %4800 = vmatprep.subr.bf16.mxu1 %v8373_v31 }
 0x5f7   :  { %4801 = vmatpush1.bf16.msra.mxu1 %v8140_v30  ;;  %v8193_v30 = vld [vmem:[%s11058_s9 + $0x1e0] ss:$16 sps:$4 sm:$0xff]  }
 0x5f8   :  { %4802 = vmatprep.subr.bf16.mxu1 %v8373_v31 }
 0x5fb   :  { %4803 = vmatpush1.bf16.msra.mxu1 %v8141_v32  ;;  %v8198_v32 = vld [vmem:[%s11058_s9 + $0x204] ss:$16 sps:$4 sm:$0xff]  }
 0x5fc   :  { %4804 = vmatprep.subr.bf16.mxu1 %v8373_v31 }
 0x5ff   :  { %4805 = vmatpush1.bf16.msra.mxu1 %v8142_v33  ;;  %v8196_v33 = vld [vmem:[%s11058_s9 + $0x200] ss:$16 sps:$4 sm:$0xff]  }
 0x600   :  { %4806 = vmatprep.subr.bf16.mxu1 %v8373_v31 }
 0x603   :  { %4807 = vmatpush1.bf16.msra.mxu1 %v8143_v20  ;;  %v8201_v20 = vld [vmem:[%s11058_s9 + $0x224] ss:$16 sps:$4 sm:$0xff]  }
 0x604   :  { %4808 = vmatprep.subr.bf16.mxu1 %v8373_v31 }
 0x607   :  { %4809 = vmatpush1.bf16.msra.mxu1 %v8144_v34  ;;  %v8199_v34 = vld [vmem:[%s11058_s9 + $0x220] ss:$16 sps:$4 sm:$0xff]  }
 0x608   :  { %4810 = vmatprep.subr.bf16.mxu1 %v8373_v31 }
 0x60b   :  { %4811 = vmatpush1.bf16.msra.mxu1 %v8145_v35  ;;  %v8204_v35 = vld [vmem:[%s11058_s9 + $0x244] ss:$16 sps:$4 sm:$0xff]  }
 0x60c   :  { %4812 = vmatprep.subr.bf16.mxu1 %v8373_v31 }
 0x60f   :  { %4813 = vmatpush1.bf16.msra.mxu1 %v8146_v39  ;;  %v8202_v39 = vld [vmem:[%s11058_s9 + $0x240] ss:$16 sps:$4 sm:$0xff]  }
 0x610   :  { %4814 = vmatprep.subr.bf16.mxu1 %v8373_v31 }
 0x613   :  { %4815 = vmatpush1.bf16.msra.mxu1 %v8147_v40  ;;  %v8207_v40 = vld [vmem:[%s11058_s9 + $0x264] ss:$16 sps:$4 sm:$0xff]  }
 0x614   :  { %5526 = vmatprep.subr.bf16.mxu1 %v8150_v16  ;;  %v8205_v16 = vld [vmem:[%s11058_s9 + $0x260] ss:$16 sps:$4 sm:$0xff]  }
 0x64d   :  { %v4503_v45 = vpop.f32.mrb[12].mxu1 }
 0x64e   :  { %v7191_v46 = vadd.f32 %v4503_v45, %v3774_v41  ;;  %v4505_v48 = vpop.f32.mrb[13].mxu1  ;;  %v8210_v41 = vld [vmem:[%s11058_s9 + $0x284] ss:$16 sps:$4 sm:$0xff]  }
 0x64f   :  { %v7192_v51 = vadd.f32 %v4505_v48, %v3778_v43  ;;  %v4507_v52 = vpop.f32.mrb[14].mxu1  ;;  %v8208_v43 = vld [vmem:[%s11058_s9 + $0x280] ss:$16 sps:$4 sm:$0xff]   ;;  %v8213_v45 = vld [vmem:[%s11058_s9 + $0x2a4] ss:$16 sps:$4 sm:$0xff]  }
 0x650   :  { %v4512_v53 = vmax.f32 %v7191_v46, 0.0  ;;  %v4508_v50 = vpop.f32.mrb[15].mxu1  ;;  %v8211_v46 = vld [vmem:[%s11058_s9 + $0x2a0] ss:$16 sps:$4 sm:$0xff]   ;;  %v8216_v48 = vld [vmem:[%s11058_s9 + $0x2c4] ss:$16 sps:$4 sm:$0xff]  }
 0x651   :  { %v4513_v54 = vmax.f32 %v7192_v51, 0.0  ;;  %v8214_v51 = vld [vmem:[%s11058_s9 + $0x2c0] ss:$16 sps:$4 sm:$0xff]   ;;  %v8219_v52 = vld [vmem:[%s11058_s9 + $0x2e4] ss:$16 sps:$4 sm:$0xff]  }
 0x652   :  { %v4516_v57 = vpack.c.bf16 %v4512_v53, %v4512_v53  ;;  %v8217_v53 = vld [vmem:[%s11058_s9 + $0x2e0] ss:$16 sps:$4 sm:$0xff]   ;;  %v8222_v50 = vld [vmem:[%s11058_s9 + $0x304] ss:$16 sps:$4 sm:$0xff]  }
 0x653   :  { %v4517_v55 = vpack.c.bf16 %v4513_v54, %v4513_v54  ;;  %v8220_v54 = vld [vmem:[%s11058_s9 + $0x300] ss:$16 sps:$4 sm:$0xff]  }
 0x655   :  { %6946 = vmatprep.mubr.msk.bf16.mxu1 %vm2612_vm0, %v4517_v55  ;;  %v8225_v55 = vld [vmem:[%s11058_s9 + $0x324] ss:$16 sps:$4 sm:$0xff]  }
 0x656   :  { %4825 = vmatmul.mubr.bf16.vlgmr.msra.gmra.mrb[20].mxu1 %v4516_v57  ;;  %v8228_v57 = vld [vmem:[%s11058_s9 + $0x344] ss:$16 sps:$4 sm:$0xff]  }
 0x657   :  { %5527 = vmatpush1.bf16.msra.mxu1 %v8148_v56  ;;  %5558 = vmatprep.mubr.bf16.mxu1 %v10086_v7  ;;  %v8223_v56 = vld [vmem:[%s11058_s9 + $0x320] ss:$16 sps:$4 sm:$0xff]  }
 0x658   :  { %5528 = vmatprep.subr.bf16.mxu1 %v8153_v58 }
 0x65b   :  { %5529 = vmatpush1.bf16.msra.mxu1 %v8151_v59  ;;  %v8226_v59 = vld [vmem:[%s11058_s9 + $0x340] ss:$16 sps:$4 sm:$0xff]  }
 0x65c   :  { %5530 = vmatprep.subr.bf16.mxu1 %v8156_v60 }
 0x65f   :  { %5531 = vmatpush1.bf16.msra.mxu1 %v8154_v61  ;;  %v8231_v61 = vld [vmem:[%s11058_s9 + $0x364] ss:$16 sps:$4 sm:$0xff]  }
 0x660   :  { %5532 = vmatprep.subr.bf16.mxu1 %v8159_v62 }
 0x663   :  { %5533 = vmatpush1.bf16.msra.mxu1 %v8157_v63 }
 0x664   :  { %5534 = vmatprep.subr.bf16.mxu1 %v8162_v0 }
 0x667   :  { %5535 = vmatpush1.bf16.msra.mxu1 %v8160_v1  ;;  %v8229_v1 = vld [vmem:[%s11058_s9 + $0x360] ss:$16 sps:$4 sm:$0xff]  }
 0x668   :  { %5536 = vmatprep.subr.bf16.mxu1 %v8165_v2  ;;  %v8234_v2 = vld [vmem:[%s11058_s9 + $0xc] ss:$16 sps:$4 sm:$0xff]  }
 0x66b   :  { %5537 = vmatpush1.bf16.msra.mxu1 %v8163_v3  ;;  %v8232_v3 = vld [vmem:[%s11058_s9 + $0x8] ss:$16 sps:$4 sm:$0xff]  }
 0x66c   :  { %5538 = vmatprep.subr.bf16.mxu1 %v8168_v5  ;;  %v8237_v5 = vld [vmem:[%s11058_s9 + $0x2c] ss:$16 sps:$4 sm:$0xff]  }
 0x66f   :  { %5539 = vmatpush1.bf16.msra.mxu1 %v8166_v8  ;;  %v8235_v8 = vld [vmem:[%s11058_s9 + $0x28] ss:$16 sps:$4 sm:$0xff]  }
 0x670   :  { %5540 = vmatprep.subr.bf16.mxu1 %v8171_v10  ;;  %v8240_v10 = vld [vmem:[%s11058_s9 + $0x4c] ss:$16 sps:$4 sm:$0xff]  }
 0x673   :  { %5541 = vmatpush1.bf16.msra.mxu1 %v8169_v11  ;;  %v8238_v11 = vld [vmem:[%s11058_s9 + $0x48] ss:$16 sps:$4 sm:$0xff]  }
 0x674   :  { %5542 = vmatprep.subr.bf16.mxu1 %v8174_v13  ;;  %v8243_v13 = vld [vmem:[%s11058_s9 + $0x6c] ss:$16 sps:$4 sm:$0xff]  }
 0x677   :  { %5543 = vmatpush1.bf16.msra.mxu1 %v8172_v14  ;;  %v8246_v14 = vld [vmem:[%s11058_s9 + $0x8c] ss:$16 sps:$4 sm:$0xff]  }
 0x678   :  { %5544 = vmatprep.subr.bf16.mxu1 %v8177_v15  ;;  %v8244_v15 = vld [vmem:[%s11058_s9 + $0x88] ss:$16 sps:$4 sm:$0xff]  }
 0x67b   :  { %5545 = vmatpush1.bf16.msra.mxu1 %v8175_v17  ;;  %v8249_v17 = vld [vmem:[%s11058_s9 + $0xac] ss:$16 sps:$4 sm:$0xff]  }
 0x67c   :  { %5546 = vmatprep.subr.bf16.mxu1 %v8180_v18  ;;  %v8247_v18 = vld [vmem:[%s11058_s9 + $0xa8] ss:$16 sps:$4 sm:$0xff]  }
 0x67f   :  { %5547 = vmatpush1.bf16.msra.mxu1 %v8178_v19  ;;  %v8252_v19 = vld [vmem:[%s11058_s9 + $0xcc] ss:$16 sps:$4 sm:$0xff]  }
 0x680   :  { %5548 = vmatprep.subr.bf16.mxu1 %v8183_v21  ;;  %v8250_v21 = vld [vmem:[%s11058_s9 + $0xc8] ss:$16 sps:$4 sm:$0xff]  }
 0x683   :  { %5549 = vmatpush1.bf16.msra.mxu1 %v8181_v22  ;;  %v8255_v22 = vld [vmem:[%s11058_s9 + $0xec] ss:$16 sps:$4 sm:$0xff]  }
 0x684   :  { %5550 = vmatprep.subr.bf16.mxu1 %v8186_v23  ;;  %v8253_v23 = vld [vmem:[%s11058_s9 + $0xe8] ss:$16 sps:$4 sm:$0xff]  }
 0x687   :  { %5551 = vmatpush1.bf16.msra.mxu1 %v8184_v24  ;;  %v8258_v24 = vld [vmem:[%s11058_s9 + $0x10c] ss:$16 sps:$4 sm:$0xff]  }
 0x688   :  { %5552 = vmatprep.subr.bf16.mxu1 %v8189_v25  ;;  %v8256_v25 = vld [vmem:[%s11058_s9 + $0x108] ss:$16 sps:$4 sm:$0xff]  }
 0x68b   :  { %5553 = vmatpush1.bf16.msra.mxu1 %v8187_v26  ;;  %v8261_v26 = vld [vmem:[%s11058_s9 + $0x12c] ss:$16 sps:$4 sm:$0xff]  }
 0x68c   :  { %5554 = vmatprep.subr.bf16.mxu1 %v8192_v27  ;;  %v8259_v27 = vld [vmem:[%s11058_s9 + $0x128] ss:$16 sps:$4 sm:$0xff]  }
 0x68f   :  { %5555 = vmatpush1.bf16.msra.mxu1 %v8190_v28  ;;  %v8264_v28 = vld [vmem:[%s11058_s9 + $0x14c] ss:$16 sps:$4 sm:$0xff]  }
 0x690   :  { %5556 = vmatprep.subr.bf16.mxu1 %v8195_v29  ;;  %v8262_v29 = vld [vmem:[%s11058_s9 + $0x148] ss:$16 sps:$4 sm:$0xff]  }
 0x693   :  { %5557 = vmatpush1.bf16.msra.mxu1 %v8193_v30  ;;  %v8267_v30 = vld [vmem:[%s11058_s9 + $0x16c] ss:$16 sps:$4 sm:$0xff]  }
 0x694   :  { %5567 = vmatprep.subr.bf16.mxu1 %v8198_v32  ;;  %v8265_v32 = vld [vmem:[%s11058_s9 + $0x168] ss:$16 sps:$4 sm:$0xff]  }
 0x696   :  { %5559 = vmatmul.mubr.bf16.vlgmr.msra.gmra.mrb[24].mxu1 %v10093_v9 }
 0x697   :  { %5568 = vmatpush1.bf16.msra.mxu1 %v8196_v33  ;;  %7059 = vmatprep.mubr.msk.bf16.mxu1 %vm2612_vm0, %v10182_v12  ;;  %v8270_v33 = vld [vmem:[%s11058_s9 + $0x18c] ss:$16 sps:$4 sm:$0xff]  }
 0x698   :  { %5569 = vmatprep.subr.bf16.mxu1 %v8201_v20  ;;  %v8268_v20 = vld [vmem:[%s11058_s9 + $0x188] ss:$16 sps:$4 sm:$0xff]  }
 0x69b   :  { %5570 = vmatpush1.bf16.msra.mxu1 %v8199_v34  ;;  %v8273_v34 = vld [vmem:[%s11058_s9 + $0x1ac] ss:$16 sps:$4 sm:$0xff]  }
 0x69c   :  { %5571 = vmatprep.subr.bf16.mxu1 %v8204_v35  ;;  %v8271_v35 = vld [vmem:[%s11058_s9 + $0x1a8] ss:$16 sps:$4 sm:$0xff]  }
 0x69f   :  { %5572 = vmatpush1.bf16.msra.mxu1 %v8202_v39  ;;  %v8276_v39 = vld [vmem:[%s11058_s9 + $0x1cc] ss:$16 sps:$4 sm:$0xff]  }
 0x6a0   :  { %5573 = vmatprep.subr.bf16.mxu1 %v8207_v40  ;;  %v8274_v40 = vld [vmem:[%s11058_s9 + $0x1c8] ss:$16 sps:$4 sm:$0xff]  }
 0x6a3   :  { %5574 = vmatpush1.bf16.msra.mxu1 %v8205_v16  ;;  %v8279_v16 = vld [vmem:[%s11058_s9 + $0x1ec] ss:$16 sps:$4 sm:$0xff]  }
 0x6a4   :  { %5575 = vmatprep.subr.bf16.mxu1 %v8210_v41  ;;  %v8277_v41 = vld [vmem:[%s11058_s9 + $0x1e8] ss:$16 sps:$4 sm:$0xff]  }
 0x6a7   :  { %5576 = vmatpush1.bf16.msra.mxu1 %v8208_v43  ;;  %v8282_v43 = vld [vmem:[%s11058_s9 + $0x20c] ss:$16 sps:$4 sm:$0xff]  }
 0x6a8   :  { %5577 = vmatprep.subr.bf16.mxu1 %v8213_v45  ;;  %v8280_v45 = vld [vmem:[%s11058_s9 + $0x208] ss:$16 sps:$4 sm:$0xff]  }
 0x6ab   :  { %5578 = vmatpush1.bf16.msra.mxu1 %v8211_v46  ;;  %v8285_v46 = vld [vmem:[%s11058_s9 + $0x22c] ss:$16 sps:$4 sm:$0xff]  }
 0x6ac   :  { %5579 = vmatprep.subr.bf16.mxu1 %v8216_v48  ;;  %v8283_v48 = vld [vmem:[%s11058_s9 + $0x228] ss:$16 sps:$4 sm:$0xff]  }
 0x6af   :  { %5580 = vmatpush1.bf16.msra.mxu1 %v8214_v51  ;;  %v8288_v51 = vld [vmem:[%s11058_s9 + $0x24c] ss:$16 sps:$4 sm:$0xff]  }
 0x6b0   :  { %5581 = vmatprep.subr.bf16.mxu1 %v8219_v52  ;;  %v8286_v52 = vld [vmem:[%s11058_s9 + $0x248] ss:$16 sps:$4 sm:$0xff]  }
 0x6b3   :  { %5582 = vmatpush1.bf16.msra.mxu1 %v8217_v53  ;;  %v8294_v53 = vld [vmem:[%s11058_s9 + $0x28c] ss:$16 sps:$4 sm:$0xff]  }
 0x6b4   :  { %5583 = vmatprep.subr.bf16.mxu1 %v8222_v50  ;;  %v8292_v50 = vld [vmem:[%s11058_s9 + $0x288] ss:$16 sps:$4 sm:$0xff]  }
 0x6b7   :  { %5584 = vmatpush1.bf16.msra.mxu1 %v8220_v54  ;;  %v8297_v54 = vld [vmem:[%s11058_s9 + $0x2ac] ss:$16 sps:$4 sm:$0xff]  }
 0x6b8   :  { %5585 = vmatprep.subr.bf16.mxu1 %v8225_v55  ;;  %v8295_v55 = vld [vmem:[%s11058_s9 + $0x2a8] ss:$16 sps:$4 sm:$0xff]  }
 0x6b9   :  { %v7137_v58 = vpop.f32.mrb[16].mxu1 }
 0x6ba   :  { %v7138_v60 = vpop.f32.mrb[17].mxu1 }
 0x6bb   :  { %5586 = vmatpush1.bf16.msra.mxu1 %v8223_v56  ;;  %v10634_v62 = vadd.f32 %v7138_v60, %v7137_v58  ;;  %v7140_v63 = vpop.f32.mrb[18].mxu1  ;;  %v8300_v56 = vld [vmem:[%s11058_s9 + $0x2cc] ss:$16 sps:$4 sm:$0xff]  }
 0x6bc   :  { %v7141_v0 = vpop.f32.mrb[19].mxu1  ;;  %5587 = vmatprep.subr.bf16.mxu1 %v8228_v57  ;;  %v8298_v57 = vld [vmem:[%s11058_s9 + $0x2c8] ss:$16 sps:$4 sm:$0xff]   ;;  %v8303_v58 = vld [vmem:[%s11058_s9 + $0x2ec] ss:$16 sps:$4 sm:$0xff]  }
 0x6bd   :  { %v8306_v60 = vld [vmem:[%s11058_s9 + $0x30c] ss:$16 sps:$4 sm:$0xff]   ;;  %v6917_v0 = vld [vmem:[%s11061_s8] ss:$0 sm:$0xff] }
 0x6be   :  { %v8309_v63 = vld [vmem:[%s11058_s9 + $0x32c] ss:$16 sps:$4 sm:$0xff]  }
 0x6bf   :  { %5588 = vmatpush1.bf16.msra.mxu1 %v8226_v59  ;;  %v8301_v59 = vld [vmem:[%s11058_s9 + $0x2e8] ss:$16 sps:$4 sm:$0xff]  }
 0x6c0   :  { %5589 = vmatprep.subr.bf16.mxu1 %v8231_v61  ;;  %v8304_v61 = vld [vmem:[%s11058_s9 + $0x308] ss:$16 sps:$4 sm:$0xff]  }
 0x6c3   :  { %5590 = vmatpush1.bf16.msra.mxu1 %v8229_v1  ;;  %v8307_v1 = vld [vmem:[%s11058_s9 + $0x328] ss:$16 sps:$4 sm:$0xff]  }
 0x6c4   :  { %5608 = vmatprep.subr.bf16.mxu1 %v8234_v2  ;;  %v4787_v2 = vadd.f32 %v10634_v62, %v6917_v0 }
 0x6c6   :  { %5600 = vmatmul.mubr.bf16.vlgmr.msra.gmra.mrb[24].mxu1 %v10189_v38 }
 0x6c7   :  { %5609 = vmatpush1.bf16.msra.mxu1 %v8232_v3  ;;  %5640 = vmatprep.mubr.bf16.mxu1 %v10086_v7  ;;  %v8241_v7 = vld [vmem:[%s11058_s9 + $0x68] ss:$16 sps:$4 sm:$0xff]   ;;  %v8312_v3 = vld [vmem:[%s11058_s9 + $0x34c] ss:$16 sps:$4 sm:$0xff]  }
 0x6c8   :  { %5610 = vmatprep.subr.bf16.mxu1 %v8237_v5 }
 0x6cb   :  { %5611 = vmatpush1.bf16.msra.mxu1 %v8235_v8 }
 0x6cc   :  { %5612 = vmatprep.subr.bf16.mxu1 %v8240_v10 }
 0x6cf   :  { %5613 = vmatpush1.bf16.msra.mxu1 %v8238_v11 }
 0x6d0   :  { %5614 = vmatprep.subr.bf16.mxu1 %v8243_v13  ;;  %v8310_v13 = vld [vmem:[%s11058_s9 + $0x348] ss:$16 sps:$4 sm:$0xff]  }
 0x6d3   :  { %5615 = vmatpush1.bf16.msra.mxu1 %v8241_v7  ;;  %v8315_v7 = vld [vmem:[%s11058_s9 + $0x36c] ss:$16 sps:$4 sm:$0xff]  }
 0x6d4   :  { %5616 = vmatprep.subr.bf16.mxu1 %v8246_v14  ;;  %v8313_v14 = vld [vmem:[%s11058_s9 + $0x368] ss:$16 sps:$4 sm:$0xff]  }
 0x6d7   :  { %5617 = vmatpush1.bf16.msra.mxu1 %v8244_v15  ;;  %v8316_v15 = vld [vmem:[%s11060_s11 + $0x40] sm:$0xff]  }
 0x6d8   :  { %5618 = vmatprep.subr.bf16.mxu1 %v8249_v17  ;;  %v8317_v17 = vld [vmem:[%s11060_s11] sm:$0xff]  }
 0x6db   :  { %5619 = vmatpush1.bf16.msra.mxu1 %v8247_v18  ;;  %v8318_v18 = vld [vmem:[%s11060_s11 + $0x48] sm:$0xff]  }
 0x6dc   :  { %5620 = vmatprep.subr.bf16.mxu1 %v8252_v19  ;;  %v8319_v19 = vld [vmem:[%s11060_s11 + $0x8] sm:$0xff]  }
 0x6df   :  { %5621 = vmatpush1.bf16.msra.mxu1 %v8250_v21  ;;  %v8320_v21 = vld [vmem:[%s11060_s11 + $0x50] sm:$0xff]  }
 0x6e0   :  { %5622 = vmatprep.subr.bf16.mxu1 %v8255_v22  ;;  %v8321_v22 = vld [vmem:[%s11060_s11 + $0x10] sm:$0xff]  }
 0x6e3   :  { %5623 = vmatpush1.bf16.msra.mxu1 %v8253_v23  ;;  %v8323_v23 = vld [vmem:[%s11060_s11 + $0x18] sm:$0xff]  }
 0x6e4   :  { %5624 = vmatprep.subr.bf16.mxu1 %v8258_v24  ;;  %v8324_v24 = vld [vmem:[%s11060_s11 + $0x60] sm:$0xff]  }
 0x6e7   :  { %5625 = vmatpush1.bf16.msra.mxu1 %v8256_v25  ;;  %v8325_v25 = vld [vmem:[%s11060_s11 + $0x20] sm:$0xff]  }
 0x6e8   :  { %5626 = vmatprep.subr.bf16.mxu1 %v8261_v26  ;;  %v8326_v26 = vld [vmem:[%s11060_s11 + $0x68] sm:$0xff]  }
 0x6eb   :  { %5627 = vmatpush1.bf16.msra.mxu1 %v8259_v27  ;;  %v8327_v27 = vld [vmem:[%s11060_s11 + $0x28] sm:$0xff]  }
 0x6ec   :  { %5628 = vmatprep.subr.bf16.mxu1 %v8264_v28  ;;  %v8328_v28 = vld [vmem:[%s11060_s11 + $0x70] sm:$0xff]  }
 0x6ef   :  { %5629 = vmatpush1.bf16.msra.mxu1 %v8262_v29  ;;  %v8329_v29 = vld [vmem:[%s11060_s11 + $0x30] sm:$0xff]  }
 0x6f0   :  { %5630 = vmatprep.subr.bf16.mxu1 %v8267_v30  ;;  %v8330_v30 = vld [vmem:[%s11060_s11 + $0x78] sm:$0xff]  }
 0x6f3   :  { %5631 = vmatpush1.bf16.msra.mxu1 %v8265_v32  ;;  %v8331_v32 = vld [vmem:[%s11060_s11 + $0x38] sm:$0xff]  }
 0x6f4   :  { %5632 = vmatprep.subr.bf16.mxu1 %v8270_v33  ;;  %v10872_v33 = vld [vmem:[%s11063_s10] sm:$0xf] }
 0x6f7   :  { %5633 = vmatpush1.bf16.msra.mxu1 %v8268_v20  ;;  %v4949_v20 = vrot.slane %v10872_v33, %v9865_v42  ;;  %v8332_v42 = vld [vmem:[%s11060_s11 + $0x80] sm:$0xff]  }
 0x6f8   :  { %5634 = vmatprep.subr.bf16.mxu1 %v8273_v34  ;;  %v4953_v34 = vrot.slane %v10872_v33, %v9871_v44  ;;  %v8333_v44 = vld [vmem:[%s11060_s11 + $0x88] sm:$0xff]  }
 0x6fb   :  { %5635 = vmatpush1.bf16.msra.mxu1 %v8271_v35 }
 0x6fc   :  { %5636 = vmatprep.subr.bf16.mxu1 %v8276_v39 }
 0x6ff   :  { %5637 = vmatpush1.bf16.msra.mxu1 %v8274_v40 }
 0x700   :  { %5638 = vmatprep.subr.bf16.mxu1 %v8279_v16 }
 0x703   :  { %5639 = vmatpush1.bf16.msra.mxu1 %v8277_v41 }
 0x704   :  { %5649 = vmatprep.subr.bf16.mxu1 %v8282_v43 }
 0x706   :  { %5641 = vmatmul.mubr.bf16.vlgmr.msra.gmra.mrb[28].mxu1 %v10093_v9  ;;  %v8291_v9 = vld [vmem:[%s11058_s9 + $0x26c] ss:$16 sps:$4 sm:$0xff]  }
 0x707   :  { %5650 = vmatpush1.bf16.msra.mxu1 %v8280_v45  ;;  %7060 = vmatprep.mubr.msk.bf16.mxu1 %vm2612_vm0, %v10182_v12  ;;  %v8289_v12 = vld [vmem:[%s11058_s9 + $0x268] ss:$16 sps:$4 sm:$0xff]  }
 0x708   :  { %5651 = vmatprep.subr.bf16.mxu1 %v8285_v46 }
 0x70b   :  { %5652 = vmatpush1.bf16.msra.mxu1 %v8283_v48 }
 0x70c   :  { %5653 = vmatprep.subr.bf16.mxu1 %v8288_v51 }
 0x70f   :  { %5654 = vmatpush1.bf16.msra.mxu1 %v8286_v52 }
 0x710   :  { %5655 = vmatprep.subr.bf16.mxu1 %v8291_v9 }
 0x713   :  { %5656 = vmatpush1.bf16.msra.mxu1 %v8289_v12  ;;  %v8336_v12 = vld [vmem:[%s11060_s11 + $0xa0] sm:$0xff]  }
 0x714   :  { %5657 = vmatprep.subr.bf16.mxu1 %v8294_v53  ;;  %v8337_v53 = vld [vmem:[%s11060_s11 + $0xa8] sm:$0xff]  }
 0x717   :  { %5658 = vmatpush1.bf16.msra.mxu1 %v8292_v50  ;;  %v8338_v50 = vld [vmem:[%s11060_s11 + $0xb0] sm:$0xff]  }
 0x718   :  { %5659 = vmatprep.subr.bf16.mxu1 %v8297_v54  ;;  %v8339_v54 = vld [vmem:[%s11060_s11 + $0xb8] sm:$0xff]  }
 0x71b   :  { %5660 = vmatpush1.bf16.msra.mxu1 %v8295_v55  ;;  %v8340_v55 = vld [vmem:[%s11060_s11 + $0xc0] sm:$0xff]  }
 0x71c   :  { %5661 = vmatprep.subr.bf16.mxu1 %v8300_v56  ;;  %v8341_v56 = vld [vmem:[%s11060_s11 + $0xc8] sm:$0xff]  }
 0x71f   :  { %5662 = vmatpush1.bf16.msra.mxu1 %v8298_v57  ;;  %v8342_v57 = vld [vmem:[%s11060_s11 + $0xd0] sm:$0xff]  }
 0x720   :  { %5663 = vmatprep.subr.bf16.mxu1 %v8303_v58  ;;  %v8343_v58 = vld [vmem:[%s11060_s11 + $0xd8] sm:$0xff]  }
 0x723   :  { %5664 = vmatpush1.bf16.msra.mxu1 %v8301_v59  ;;  %v8344_v59 = vld [vmem:[%s11064_s13 + $0x40] sm:$0xff]  }
 0x724   :  { %5665 = vmatprep.subr.bf16.mxu1 %v8306_v60  ;;  %v20_v60 = vstv %s11065_s12 }
 0x725   :  { %21 = vst [vmem:[#allocation2] sm:$0x1] %v20_v60 }
 0x727   :  { %5666 = vmatpush1.bf16.msra.mxu1 %v8304_v61  ;;  %v4957_v61 = vrot.slane %v10872_v33, %v10167_v36  ;;  %v8345_v36 = vld [vmem:[%s11064_s13] sm:$0xff]  }
 0x728   :  { %5667 = vmatprep.subr.bf16.mxu1 %v8309_v63  ;;  %v4961_v63 = vrot.slane %v10872_v33, %v10170_v37  ;;  %v8346_v37 = vld [vmem:[%s11064_s13 + $0x48] sm:$0xff]  }
 0x729   :  { %v4826_v5 = vpop.f32.mrb[20].mxu1  ;;  %v8365_v33 = vld [vmem:[%s11064_s13 + $0xa8] sm:$0xff]  }
 0x72a   :  { %v4827_v8 = vadd.f32 %v4826_v5, %v4787_v2  ;;  %v4828_v10 = vpop.f32.mrb[21].mxu1 }
 0x72b   :  { %5668 = vmatpush1.bf16.msra.mxu1 %v8307_v1  ;;  %v4829_v11 = vpop.f32.mrb[22].mxu1 }
 0x72c   :  { %6328 = vst.msk [vmem:[%s11062_s15] sm:$0x3] %vm6327_vm1, %v4827_v8  ;;  %v4830_v62 = vpop.f32.mrb[23].mxu1  ;;  %5669 = vmatprep.subr.bf16.mxu1 %v8312_v3 }
 0x72f   :  { %5670 = vmatpush1.bf16.msra.mxu1 %v8310_v13 }
 0x730   :  { %5671 = vmatprep.subr.bf16.mxu1 %v8315_v7 }
 0x733   :  { %5672 = vmatpush1.bf16.msra.mxu1 %v8313_v14 }
 0x734   :  { %7143 = vmatprep.subr.bf16.mxu1 %v8316_v15  ;;  %v8349_v15 = vld [vmem:[%s11064_s13 + $0x10] sm:$0xff]  }
 0x736   :  { %5682 = vmatmul.mubr.bf16.vlgmr.msra.gmra.mrb[28].mxu1 %v10189_v38  ;;  %v8322_v38 = vld [vmem:[%s11060_s11 + $0x58] sm:$0xff]  }
 0x737   :  { %7144 = vmatpush3.bf16.msra.mxu1 %v8317_v17  ;;  %v8350_v17 = vld [vmem:[%s11064_s13 + $0x58] sm:$0xff]  }
 0x738   :  { %7145 = vmatprep.subr.bf16.mxu1 %v8318_v18  ;;  %v8351_v18 = vld [vmem:[%s11064_s13 + $0x18] sm:$0xff]  }
 0x73b   :  { %7146 = vmatpush3.bf16.msra.mxu1 %v8319_v19  ;;  %v8352_v19 = vld [vmem:[%s11064_s13 + $0x60] sm:$0xff]  }
 0x73c   :  { %7147 = vmatprep.subr.bf16.mxu1 %v8320_v21  ;;  %v8353_v21 = vld [vmem:[%s11064_s13 + $0x20] sm:$0xff]  }
 0x73f   :  { %7148 = vmatpush3.bf16.msra.mxu1 %v8321_v22  ;;  %v8354_v22 = vld [vmem:[%s11064_s13 + $0x68] sm:$0xff]  }
 0x740   :  { %7149 = vmatprep.subr.bf16.mxu1 %v8322_v38  ;;  %v8355_v38 = vld [vmem:[%s11064_s13 + $0x28] sm:$0xff]  }
 0x743   :  { %7150 = vmatpush3.bf16.msra.mxu1 %v8323_v23  ;;  %v8356_v23 = vld [vmem:[%s11064_s13 + $0x70] sm:$0xff]  }
 0x744   :  { %7151 = vmatprep.subr.bf16.mxu1 %v8324_v24  ;;  %v8357_v24 = vld [vmem:[%s11064_s13 + $0x30] sm:$0xff]  }
 0x747   :  { %7152 = vmatpush3.bf16.msra.mxu1 %v8325_v25  ;;  %v8358_v25 = vld [vmem:[%s11064_s13 + $0x78] sm:$0xff]  }
 0x748   :  { %7153 = vmatprep.subr.bf16.mxu1 %v8326_v26  ;;  %v8359_v26 = vld [vmem:[%s11064_s13 + $0x38] sm:$0xff]  }
 0x74b   :  { %7154 = vmatpush3.bf16.msra.mxu1 %v8327_v27  ;;  %v8360_v27 = vld [vmem:[%s11064_s13 + $0x80] sm:$0xff]  }
 0x74c   :  { %7155 = vmatprep.subr.bf16.mxu1 %v8328_v28  ;;  %v8361_v28 = vld [vmem:[%s11064_s13 + $0x88] sm:$0xff]  }
 0x74f   :  { %7156 = vmatpush3.bf16.msra.mxu1 %v8329_v29  ;;  %v8362_v29 = vld [vmem:[%s11064_s13 + $0x90] sm:$0xff]  }
 0x750   :  { %7157 = vmatprep.subr.bf16.mxu1 %v8330_v30  ;;  %v8363_v30 = vld [vmem:[%s11064_s13 + $0x98] sm:$0xff]  }
 0x753   :  { %7158 = vmatpush3.bf16.msra.mxu1 %v8331_v32  ;;  %v8364_v32 = vld [vmem:[%s11064_s13 + $0xa0] sm:$0xff]  }
 0x754   :  { %5976 = vmatprep.subr.bf16.mxu1 %v8373_v31 }
 0x799   :  { %v5601_v35 = vpop.f32.mrb[24].mxu1 }
 0x79a   :  { %v7193_v39 = vadd.f32 %v5601_v35, %v4949_v20  ;;  %v5603_v40 = vpop.f32.mrb[25].mxu1  ;;  %v8366_v20 = vld [vmem:[%s11064_s13 + $0xb0] sm:$0xff]   ;;  %v8368_v35 = vld [vmem:[%s11064_s13 + $0xc0] sm:$0xff]  }
 0x79b   :  { %v7194_v16 = vadd.f32 %v5603_v40, %v4953_v34  ;;  %v5605_v41 = vpop.f32.mrb[26].mxu1  ;;  %v8367_v34 = vld [vmem:[%s11064_s13 + $0xb8] sm:$0xff]   ;;  %v8370_v40 = vld [vmem:[%s11064_s13 + $0xd0] sm:$0xff]  }
 0x79c   :  { %v5690_v43 = vmax.f32 %v7193_v39, 0.0  ;;  %v5606_v45 = vpop.f32.mrb[27].mxu1  ;;  %v8369_v39 = vld [vmem:[%s11064_s13 + $0xc8] sm:$0xff]  }
 0x79d   :  { %v5691_v46 = vmax.f32 %v7194_v16, 0.0  ;;  %v8371_v16 = vld [vmem:[%s11064_s13 + $0xd8] sm:$0xff]  }
 0x79e   :  { %v5694_v48 = vadd.f32 %v5690_v43, %v10080_v4  ;;  %v8334_v4 = vld [vmem:[%s11060_s11 + $0x90] sm:$0xff]  }
 0x79f   :  { %v5695_v51 = vadd.f32 %v5691_v46, %v10082_v6  ;;  %v8335_v6 = vld [vmem:[%s11060_s11 + $0x98] sm:$0xff]  }
 0x7a0   :  { %v10883_v9 = vpack.c.bf16 %v5694_v48, %v5694_v48 }
 0x7a1   :  { %v5699_v52 = vpack.c.bf16 %v5695_v51, %v5695_v51  ;;  %v22_v51 = vstv %s11066_s14  ;;  %s8375_s14 = smov 7  }
 0x7a2   :  { %23 = vst [vmem:[#allocation3] sm:$0x1] %v22_v51 }
 0x7a3   :  { %5968 = vmatprep.mubr.bf16.mxu1 %v5699_v52 }
 0x7a4   :  { %5969 = vmatmul.mubr.bf16.vlgmr.msra.gmra.mrb[32].mxu1 %v10883_v9 }
 0x7a5   :  { %5977 = vmatpush1.bf16.msra.mxu1 %v8332_v42 }
 0x7a6   :  { %5978 = vmatprep.subr.bf16.mxu1 %v8373_v31 }
 0x7a9   :  { %5979 = vmatpush1.bf16.msra.mxu1 %v8333_v44 }
 0x7aa   :  { %5980 = vmatprep.subr.bf16.mxu1 %v8373_v31 }
 0x7ad   :  { %5981 = vmatpush1.bf16.msra.mxu1 %v8334_v4 }
 0x7ae   :  { %5982 = vmatprep.subr.bf16.mxu1 %v8373_v31 }
 0x7b1   :  { %5983 = vmatpush1.bf16.msra.mxu1 %v8335_v6 }
 0x7b2   :  { %5984 = vmatprep.subr.bf16.mxu1 %v8373_v31 }
 0x7b5   :  { %5985 = vmatpush1.bf16.msra.mxu1 %v8336_v12 }
 0x7b6   :  { %5986 = vmatprep.subr.bf16.mxu1 %v8373_v31 }
 0x7b9   :  { %5987 = vmatpush1.bf16.msra.mxu1 %v8337_v53 }
 0x7ba   :  { %5988 = vmatprep.subr.bf16.mxu1 %v8373_v31 }
 0x7bd   :  { %5989 = vmatpush1.bf16.msra.mxu1 %v8338_v50 }
 0x7be   :  { %5990 = vmatprep.subr.bf16.mxu1 %v8373_v31 }
 0x7c1   :  { %5991 = vmatpush1.bf16.msra.mxu1 %v8339_v54 }
 0x7c2   :  { %5992 = vmatprep.subr.bf16.mxu1 %v8373_v31 }
 0x7c5   :  { %5993 = vmatpush1.bf16.msra.mxu1 %v8340_v55 }
 0x7c6   :  { %5994 = vmatprep.subr.bf16.mxu1 %v8373_v31 }
 0x7c9   :  { %5995 = vmatpush1.bf16.msra.mxu1 %v8341_v56  ;;  %v7091_v56 = vld [vmem:[#allocation3] ss:$0 sm:$0xff] }
 0x7ca   :  { %5996 = vmatprep.subr.bf16.mxu1 %v8373_v31 }
 0x7cd   :  { %5997 = vmatpush1.bf16.msra.mxu1 %v8342_v57 }
 0x7ce   :  { %5998 = vmatprep.subr.bf16.mxu1 %v8373_v31 }
 0x7d1   :  { %5999 = vmatpush1.bf16.msra.mxu1 %v8343_v58 }
 0x7d2   :  { %7165 = vmatprep.subr.bf16.mxu1 %v8344_v59 }
 0x809   :  { %v5683_v0 = vpop.f32.mrb[28].mxu1 }
 0x80a   :  { %v7195_v1 = vadd.f32 %v5683_v0, %v4957_v61  ;;  %v5685_v2 = vpop.f32.mrb[29].mxu1 }
 0x80b   :  { %v7196_v3 = vadd.f32 %v5685_v2, %v4961_v63  ;;  %v5687_v5 = vpop.f32.mrb[30].mxu1 }
 0x80c   :  { %v5692_v8 = vmax.f32 %v7195_v1, 0.0  ;;  %v5688_v10 = vpop.f32.mrb[31].mxu1 }
 0x80d   :  { %v5693_v11 = vmax.f32 %v7196_v3, 0.0 }
 0x80e   :  { %v5696_v13 = vadd.f32 %v5692_v8, %v10176_v47  ;;  %v8347_v47 = vld [vmem:[%s11064_s13 + $0x8] sm:$0xff]  }
 0x80f   :  { %v5697_v62 = vadd.f32 %v5693_v11, %v10178_v49  ;;  %v8348_v49 = vld [vmem:[%s11064_s13 + $0x50] sm:$0xff]   ;;  %s8374_s13 = smov 6  }
 0x810   :  { %v10945_v14 = vpack.c.bf16 %v5696_v13, %v5696_v13 }
 0x811   :  { %v5701_v7 = vpack.c.bf16 %v5697_v62, %v5697_v62 }
 0x813   :  { %7090 = vmatprep.mubr.msk.bf16.mxu1 %vm2612_vm0, %v5701_v7 }
 0x814   :  { %6009 = vmatmul.mubr.bf16.vlgmr.msra.gmra.mrb[36].mxu1 %v10945_v14 }
 0x815   :  { %7166 = vmatpush3.bf16.msra.mxu1 %v8345_v36  ;;  %6279 = vmatprep.mubr.bf16.mxu1 %v5699_v52  ;;  %v7061_v52 = vld [vmem:[#allocation2] ss:$0 sm:$0xff] }
 0x816   :  { %7167 = vmatprep.subr.bf16.mxu1 %v8346_v37 }
 0x819   :  { %7168 = vmatpush3.bf16.msra.mxu1 %v8347_v47 }
 0x81a   :  { %7169 = vmatprep.subr.bf16.mxu1 %v8348_v49 }
 0x81d   :  { %7170 = vmatpush3.bf16.msra.mxu1 %v8349_v15 }
 0x81e   :  { %7171 = vmatprep.subr.bf16.mxu1 %v8350_v17 }
 0x821   :  { %7172 = vmatpush3.bf16.msra.mxu1 %v8351_v18 }
 0x822   :  { %7173 = vmatprep.subr.bf16.mxu1 %v8352_v19 }
 0x825   :  { %7174 = vmatpush3.bf16.msra.mxu1 %v8353_v21 }
 0x826   :  { %7175 = vmatprep.subr.bf16.mxu1 %v8354_v22 }
 0x829   :  { %7176 = vmatpush3.bf16.msra.mxu1 %v8355_v38 }
 0x82a   :  { %7177 = vmatprep.subr.bf16.mxu1 %v8356_v23 }
 0x82d   :  { %7178 = vmatpush3.bf16.msra.mxu1 %v8357_v24 }
 0x82e   :  { %7179 = vmatprep.subr.bf16.mxu1 %v8358_v25 }
 0x831   :  { %7180 = vmatpush3.bf16.msra.mxu1 %v8359_v26 }
 0x832   :  { %6287 = vmatprep.subr.bf16.mxu1 %v8373_v31 }
 0x834   :  { %6280 = vmatmul.mubr.bf16.vlgmr.msra.gmra.mrb[40].mxu1 %v10883_v9 }
 0x835   :  { %6288 = vmatpush1.bf16.msra.mxu1 %v8360_v27  ;;  %7120 = vmatprep.mubr.msk.bf16.mxu1 %vm2612_vm0, %v5701_v7 }
 0x836   :  { %6289 = vmatprep.subr.bf16.mxu1 %v8373_v31 }
 0x839   :  { %6290 = vmatpush1.bf16.msra.mxu1 %v8361_v28 }
 0x83a   :  { %6291 = vmatprep.subr.bf16.mxu1 %v8373_v31 }
 0x83d   :  { %6292 = vmatpush1.bf16.msra.mxu1 %v8362_v29 }
 0x83e   :  { %6293 = vmatprep.subr.bf16.mxu1 %v8373_v31 }
 0x841   :  { %6294 = vmatpush1.bf16.msra.mxu1 %v8363_v30 }
 0x842   :  { %6295 = vmatprep.subr.bf16.mxu1 %v8373_v31 }
 0x845   :  { %6296 = vmatpush1.bf16.msra.mxu1 %v8364_v32 }
 0x846   :  { %6297 = vmatprep.subr.bf16.mxu1 %v8373_v31 }
 0x849   :  { %6298 = vmatpush1.bf16.msra.mxu1 %v8365_v33 }
 0x84a   :  { %6299 = vmatprep.subr.bf16.mxu1 %v8373_v31 }
 0x84d   :  { %6300 = vmatpush1.bf16.msra.mxu1 %v8366_v20 }
 0x84e   :  { %6301 = vmatprep.subr.bf16.mxu1 %v8373_v31 }
 0x851   :  { %6302 = vmatpush1.bf16.msra.mxu1 %v8367_v34 }
 0x852   :  { %6303 = vmatprep.subr.bf16.mxu1 %v8373_v31 }
 0x855   :  { %6304 = vmatpush1.bf16.msra.mxu1 %v8368_v35 }
 0x856   :  { %6305 = vmatprep.subr.bf16.mxu1 %v8373_v31 }
 0x859   :  { %6306 = vmatpush1.bf16.msra.mxu1 %v8369_v39 }
 0x85a   :  { %6307 = vmatprep.subr.bf16.mxu1 %v8373_v31 }
 0x85d   :  { %6308 = vmatpush1.bf16.msra.mxu1 %v8370_v40 }
 0x85e   :  { %6309 = vmatprep.subr.bf16.mxu1 %v8373_v31 }
 0x861   :  { %6310 = vmatpush1.bf16.msra.mxu1 %v8371_v16 }
 0x864   :  { %6320 = vmatmul.mubr.bf16.vlgmr.msra.gmra.mrb[44].mxu1 %v10945_v14 }
 0x877   :  { %v7159_v41 = vpop.f32.mrb[32].mxu1 }
 0x878   :  { %v7160_v43 = vpop.f32.mrb[33].mxu1 }
 0x879   :  { %v7161_v45 = vadd.f32 %v7160_v43, %v7159_v41  ;;  %v7162_v46 = vpop.f32.mrb[34].mxu1 }
 0x87a   :  { %v7163_v48 = vpop.f32.mrb[35].mxu1 }
 0x87b   :  { %v5971_v42 = vadd.f32 %v7161_v45, %v7061_v52 }
 0x8e7   :  { %v6010_v9 = vpop.f32.mrb[36].mxu1 }
 0x8e8   :  { %v6011_v44 = vadd.f32 %v6010_v9, %v5971_v42  ;;  %v6012_v4 = vpop.f32.mrb[37].mxu1 }
 0x8e9   :  { %v6013_v6 = vpop.f32.mrb[38].mxu1 }
 0x8ea   :  { %v6014_v31 = vpop.f32.mrb[39].mxu1  ;;  %6330 = vrot.lane.b32.xlu0 %v6011_v44, %s8374_s13 }
 0x907   :  { %v7181_v12 = vpop.f32.mrb[40].mxu1 }
 0x908   :  { %v7182_v53 = vpop.f32.mrb[41].mxu1 }
 0x909   :  { %v7183_v50 = vadd.f32 %v7182_v53, %v7181_v12  ;;  %v7184_v54 = vpop.f32.mrb[42].mxu1 }
 0x90a   :  { %v7185_v55 = vpop.f32.mrb[43].mxu1 }
 0x90b   :  { %v6282_v57 = vadd.f32 %v7183_v50, %v7091_v56 }
 0x937   :  { %v6321_v58 = vpop.f32.mrb[44].mxu1 }
 0x938   :  { %v6322_v59 = vadd.f32 %v6321_v58, %v6282_v57  ;;  %v6323_v60 = vpop.f32.mrb[45].mxu1 }
 0x939   :  { %v6324_v61 = vpop.f32.mrb[46].mxu1 }
 0x93a   :  { %v6325_v63 = vpop.f32.mrb[47].mxu1  ;;  %6336 = vrot.lane.b32.xlu0 %v6322_v59, %s8375_s14 }
 0x95c   :  { %v6331_v0 = vpop.permute.xlu0 %6330 }
 0x95d   :  { %6334 = vst.msk [vmem:[%s11062_s15] sm:$0x3] %vm6333_vm2, %v6331_v0 }
 0x9ac   :  { %v6337_v1 = vpop.permute.xlu0 %6336 }
 0x9ad   :  { %6340 = vst.msk [vmem:[%s11062_s15] sm:$0x3] %vm6339_vm3, %v6337_v1 }

</bundles_post_ra>
